<compile_context>
chip_gen: v5e
topology: v5e:2x2
jax: 0.10.0
libtpu: 0.0.40
codegen_flags: <defaults>
</compile_context>

<pallas_src>
import math

import jax
import jax.numpy as jnp
from jax import lax
from jax.experimental import pallas as pl
from jax.experimental.pallas import tpu as pltpu

# architecture constants (fixed by the PyTorch module)
C_IN, C_OUT = 3, 6
KH = KW = 10
PAD = 1
HIDDEN = 256
N_CLASSES = 30
N_PAD = 128        # fc2 outputs padded to one full 128-lane (unmasked) store
CO_PAD = 16        # conv channels padded 6 -> 16 so pooled lanes = wp2*16 = 128


def _conv_out_hw(h, w):
    return h + 2 * PAD - KH + 1, w + 2 * PAD - KW + 1


def _vmem_limit_bytes():
    # Generation-aware: ~half of physical VMEM (128 MiB on v5e/v6e, 64 MiB/TC
    # on v7x).  Working set here is only a few MiB, so this is plenty.
    try:
        cap = pltpu.get_tpu_info().vmem_capacity_bytes
    except Exception:
        cap = 64 * 1024 * 1024
    return int(min(max(cap // 2, 32 * 1024 * 1024), 96 * 1024 * 1024))


# ------------------------------ fused kernel --------------------------------

def _make_kernel(tb, hp2, wp2):
    lanes = wp2 * CO_PAD          # pooled lanes: (pooled_col, channel)  (=128)
    n_conv = 2 * lanes            # conv lanes:   (col_parity, pooled_col, ch)

    def kernel(xs_ref, wt_ref, bc_ref, w1_ref, b1_ref, w2_ref, b2_ref, o_ref):
        # ---- conv1 (10x10, pad=1): KH banded-Toeplitz matmuls ----------------
        # xs_ref: [2(row parity), R, tb, L]  with L = C_IN * Wpad, rows pre-split
        #         by parity so every slab below is a contiguous static slice.
        # wt_ref: [KH, L, 2*lanes]  (columns ordered (col_parity, pooled_col, ch))
        acc = [None, None]                       # one accumulator per row parity
        for ky in range(KH):
            w_ky = wt_ref[ky]                                   # [L, 2*lanes]
            for qr in (0, 1):                                   # output-row parity
                p = (ky + qr) & 1
                r0 = (ky + qr) >> 1
                slab = xs_ref[p, pl.ds(r0, hp2), :, :]          # [hp2, tb, L]
                slab = slab.reshape(hp2 * tb, slab.shape[-1])   # rows = (m, b)
                c = jnp.dot(slab, w_ky, preferred_element_type=jnp.float32)
                acc[qr] = c if acc[qr] is None else acc[qr] + c

        # bias + ReLU + 2x2 max-pool.  Column pooling = elementwise max of the
        # two contiguous 128-lane column-parity halves; row pooling = max over
        # the two row-parity accumulators.  Pure VPU, no gathers.
        pooled = None
        for qr in (0, 1):
            conv = jnp.maximum(acc[qr] + bc_ref[...], 0.0)      # [hp2*tb, 2*lanes]
            half = jnp.maximum(conv[:, :lanes], conv[:, lanes:])
            pooled = half if pooled is None else jnp.maximum(pooled, half)
        # pooled: [hp2*tb, lanes]  rows=(pooled_row, image), lanes=(pooled_col, ch)

        # ---- flatten + fc1 + ReLU -------------------------------------------
        # torch.flatten(x,1) (NCHW) order is folded into w1's row permutation;
        # the contraction over pooled_row is hp2 single-(128-wide)-K-tile dots.
        acc1 = None
        for m in range(hp2):
            c = jnp.dot(pooled[m * tb:(m + 1) * tb, :], w1_ref[m],
                        preferred_element_type=jnp.float32)
            acc1 = c if acc1 is None else acc1 + c
        h = jnp.maximum(acc1 + b1_ref[...], 0.0)                # [tb, HIDDEN]

        # TODO(synk): Dropout(0.2) is eval-mode identity here; training-mode
        # stochastic mask + 1/(1-p) scaling is not implemented.

        # ---- fc2 (30 logits zero-padded to 128 lanes) -------------------------
        o_ref[...] = jnp.dot(h, w2_ref[...],
                             preferred_element_type=jnp.float32) + b2_ref[...]

    return kernel


# ------------------------------- parameters ---------------------------------

def init_params(key, h, w):
    """PyTorch-style uniform init, PyTorch weight layouts."""
    ho, wo = _conv_out_hw(h, w)
    flat = C_OUT * (ho // 2) * (wo // 2)        # LazyLinear resolves in-features
    kc, kcb, k1, k1b, k2, k2b = jax.random.split(key, 6)
    bc = 1.0 / math.sqrt(C_IN * KH * KW)
    b1 = 1.0 / math.sqrt(flat)
    b2 = 1.0 / math.sqrt(HIDDEN)
    u = jax.random.uniform
    return {
        "conv_w": u(kc, (C_OUT, C_IN, KH, KW), jnp.float32, -bc, bc),
        "conv_b": u(kcb, (C_OUT,), jnp.float32, -bc, bc),
        "fc1_w": u(k1, (HIDDEN, flat), jnp.float32, -b1, b1),
        "fc1_b": u(k1b, (HIDDEN,), jnp.float32, -b1, b1),
        "fc2_w": u(k2, (N_CLASSES, HIDDEN), jnp.float32, -b2, b2),
        "fc2_b": u(k2b, (N_CLASSES,), jnp.float32, -b2, b2),
    }


def prepare_params(params, h, w):
    """One-time re-layout of PyTorch weights into the kernel-friendly form."""
    ho, wo = _conv_out_hw(h, w)
    assert ho % 2 == 0 and wo % 2 == 0, "2x2 pool path assumes even conv output"
    hp2, wp2 = ho // 2, wo // 2
    wpad = w + 2 * PAD
    lanes = wp2 * CO_PAD

    # conv1 -> per-kernel-row banded (Toeplitz) matmul weights:
    #   wt[ky, ci*Wpad + ix, qc*lanes + k*CO_PAD + co] =
    #       conv_w[co, ci, ky, ix - (2k+qc)]   if 0 <= ix-(2k+qc) < KW else 0
    ix = jnp.arange(wpad)
    ox = 2 * jnp.arange(wp2)[None, :] + jnp.arange(2)[:, None]        # [2, wp2]
    kx = ix[None, None, :] - ox[:, :, None]                           # [2, wp2, Wpad]
    valid = (kx >= 0) & (kx < KW)
    kxc = jnp.clip(kx, 0, KW - 1)
    wt = params["conv_w"][:, :, :, kxc]                # [CO, CI, KH, 2, wp2, Wpad]
    wt = wt * valid[None, None, None].astype(wt.dtype)
    wt = wt.transpose(2, 1, 5, 3, 4, 0)                # [KH, CI, Wpad, 2, wp2, CO]
    wt = jnp.pad(wt, ((0, 0),) * 5 + ((0, CO_PAD - C_OUT),))
    wt = wt.reshape(KH, C_IN * wpad, 2 * lanes)

    bc = jnp.pad(params["conv_b"], (0, CO_PAD - C_OUT))
    bc = jnp.tile(bc, 2 * wp2).reshape(1, 2 * lanes)

    # fc1: fold torch.flatten(x,1) (NCHW: c*hp2*wp2 + m*wp2 + k) into a row
    # permutation; pad the channel dim 6->16; split over pooled_row.
    w1 = params["fc1_w"].reshape(HIDDEN, C_OUT, hp2, wp2)
    w1 = w1.transpose(2, 3, 1, 0)                      # [hp2, wp2, CO, HIDDEN]
    w1 = jnp.pad(w1, ((0, 0), (0, 0), (0, CO_PAD - C_OUT), (0, 0)))
    w1 = w1.reshape(hp2, lanes, HIDDEN)
    b1 = params["fc1_b"].reshape(1, HIDDEN)

    # fc2: transpose + zero-pad 30 -> 128 output lanes (unmasked stores).
    w2 = jnp.pad(params["fc2_w"].T, ((0, 0), (0, N_PAD - N_CLASSES)))
    b2 = jnp.pad(params["fc2_b"], (0, N_PAD - N_CLASSES)).reshape(1, N_PAD)
    return {"wt": wt, "bc": bc, "w1": w1, "b1": b1, "w2": w2, "b2": b2}


# --------------------------------- forward ----------------------------------

@jax.jit
def net_forward(x, kp):
    """x: [B, 3, H, W] float32 (NCHW, PyTorch convention). Returns [B, 30]."""
    B, c, H, W = x.shape
    assert c == C_IN
    ho, wo = _conv_out_hw(H, W)
    assert ho % 2 == 0 and wo % 2 == 0
    hp2, wp2 = ho // 2, wo // 2
    hpad, wpad = H + 2 * PAD, W + 2 * PAD
    L = C_IN * wpad                  # conv-matmul contraction dim (75 for W=23)
    R = hp2 + 5                      # parity-split rows the kernel needs

    # Batch tile: always >= 8 images (f32 sublane alignment, unmasked stores,
    # amortized per-step overhead); pad the batch instead of falling back to 1.
    b_round = 8 * ((B + 7) // 8)
    tb = min(32, b_round)            # cap keeps 2x(input tile)+weights tiny (<4 MB)
    n_tiles = -(-b_round // tb)
    if n_tiles > 1 and n_tiles % 2 == 1:
        n_tiles += 1                 # even #tiles -> both v7x TensorCores busy
    b_pad = n_tiles * tb

    # Zero-pad spatial + batch, lanes = (channel, padded_col), split rows by
    # parity, batch second-to-last -> kernel conv rows are (pooled_row, image).
    xp = jnp.pad(x, ((0, b_pad - B), (0, 0), (PAD, PAD), (PAD, PAD)))
    xl = xp.transpose(0, 2, 1, 3).reshape(b_pad, hpad, L)
    xl = jnp.pad(xl, ((0, 0), (0, 2 * R - hpad), (0, 0)))
    xs = xl.reshape(b_pad, R, 2, L).transpose(2, 1, 0, 3)      # [2, R, b_pad, L]

    out = pl.pallas_call(
        _make_kernel(tb, hp2, wp2),
        grid=(n_tiles,),
        in_specs=[
            pl.BlockSpec((2, R, tb, L), lambda i: (0, 0, i, 0)),    # image tile
            pl.BlockSpec(kp["wt"].shape, lambda i: (0, 0, 0)),      # conv Toeplitz
            pl.BlockSpec(kp["bc"].shape, lambda i: (0, 0)),         # conv bias
            pl.BlockSpec(kp["w1"].shape, lambda i: (0, 0, 0)),      # fc1 weight
            pl.BlockSpec(kp["b1"].shape, lambda i: (0, 0)),         # fc1 bias
            pl.BlockSpec(kp["w2"].shape, lambda i: (0, 0)),         # fc2 weight
            pl.BlockSpec(kp["b2"].shape, lambda i: (0, 0)),         # fc2 bias
        ],
        out_specs=pl.BlockSpec((tb, N_PAD), lambda i: (i, 0)),
        out_shape=jax.ShapeDtypeStruct((b_pad, N_PAD), jnp.float32),
        compiler_params=pltpu.CompilerParams(
            dimension_semantics=("parallel",),
            vmem_limit_bytes=_vmem_limit_bytes()),
    )(xs, kp["wt"], kp["bc"], kp["w1"], kp["b1"], kp["w2"], kp["b2"])

    return out[:B, :N_CLASSES]


# ------------------------------ reference (JAX) ------------------------------

def _reference_forward(x, params):
    """Pure-JAX (non-Pallas) reference of the PyTorch forward, for checking."""
    conv = lax.conv_general_dilated(
        x, params["conv_w"], window_strides=(1, 1),
        padding=((PAD, PAD), (PAD, PAD)),
        dimension_numbers=("NCHW", "OIHW", "NCHW"),
        precision=lax.Precision.HIGHEST)
    conv = jax.nn.relu(conv + params["conv_b"][None, :, None, None])
    B, _, ho, wo = conv.shape
    pooled = jnp.max(conv.reshape(B, C_OUT, ho // 2, 2, wo // 2, 2), axis=(3, 5))
    flat = pooled.reshape(B, -1)                      # torch.flatten(x, 1) (NCHW)
    h = jax.nn.relu(jnp.dot(flat, params["fc1_w"].T,
                            precision=lax.Precision.HIGHEST) + params["fc1_b"])
    return jnp.dot(h, params["fc2_w"].T,
                   precision=lax.Precision.HIGHEST) + params["fc2_b"]


# ----------------------------------- main ------------------------------------

if __name__ == "__main__":
    key = jax.random.PRNGKey(0)
    kx, kparam = jax.random.split(key)

    # H=W=23 -> conv(10x10, pad=1) -> 16x16 -> pool -> 8x8 -> flat = 6*8*8 = 384
    B, H, W = 2, 23, 23
    x = jax.random.normal(kx, (B, C_IN, H, W), dtype=jnp.float32)

    params = init_params(kparam, H, W)
    kparams = prepare_params(params, H, W)

    logits = net_forward(x, kparams)
    jax.block_until_ready(logits)

    assert logits.shape == (B, N_CLASSES) and logits.dtype == jnp.float32

    # numerical check against the (HIGHEST-precision) pure-JAX reference;
    # the all-f32 MXU path typically lands around 1e-4.
    ref = _reference_forward(x, params)
    err = float(jnp.max(jnp.abs(logits - ref)))
    assert err < 2e-2, f"max abs error vs reference: {err}"

    print("KERNEL_OK")
</pallas_src>

<mosaic_0001>
module attributes {stable_mosaic.version = 11 : i64} {
  func.func @kernel(%arg0: i32, %arg1: memref<2x13x8x75xf32, #tpu.memory_space<vmem>>, %arg2: memref<10x75x256xf32, #tpu.memory_space<vmem>>, %arg3: memref<1x256xf32, #tpu.memory_space<vmem>>, %arg4: memref<8x128x256xf32, #tpu.memory_space<vmem>>, %arg5: memref<1x256xf32, #tpu.memory_space<vmem>>, %arg6: memref<256x128xf32, #tpu.memory_space<vmem>>, %arg7: memref<1x128xf32, #tpu.memory_space<vmem>>, %arg8: memref<8x128xf32, #tpu.memory_space<vmem>>) attributes {dimension_semantics = [#tpu.dimension_semantics<parallel>], iteration_bounds = array<i64: 1>, scalar_prefetch = 0 : i64, scratch_operands = 0 : i64, tpu.core_type = #tpu.core_type<tc>, window_params = [{transform_indices = @transform_0, window_bounds = array<i64: 2, 13, 8, 75>}, {pipeline_mode = #tpu.pipeline_mode<synchronous>, transform_indices = @transform_1, window_bounds = array<i64: 10, 75, 256>}, {pipeline_mode = #tpu.pipeline_mode<synchronous>, transform_indices = @transform_2, window_bounds = array<i64: 1, 256>}, {pipeline_mode = #tpu.pipeline_mode<synchronous>, transform_indices = @transform_3, window_bounds = array<i64: 8, 128, 256>}, {pipeline_mode = #tpu.pipeline_mode<synchronous>, transform_indices = @transform_4, window_bounds = array<i64: 1, 256>}, {pipeline_mode = #tpu.pipeline_mode<synchronous>, transform_indices = @transform_5, window_bounds = array<i64: 256, 128>}, {pipeline_mode = #tpu.pipeline_mode<synchronous>, transform_indices = @transform_6, window_bounds = array<i64: 1, 128>}, {transform_indices = @transform_7, window_bounds = array<i64: 8, 128>}]} {
    %c0 = arith.constant 0 : index
    %c0_0 = arith.constant 0 : index
    %c0_1 = arith.constant 0 : index
    %0 = vector.load %arg2[%c0, %c0_0, %c0_1] : memref<10x75x256xf32, #tpu.memory_space<vmem>>, vector<1x75x256xf32>
    %1 = vector.shape_cast %0 : vector<1x75x256xf32> to vector<75x256xf32>
    %c0_2 = arith.constant 0 : index
    %c0_3 = arith.constant 0 : index
    %c0_4 = arith.constant 0 : index
    %c0_5 = arith.constant 0 : index
    %2 = vector.load %arg1[%c0_2, %c0_3, %c0_4, %c0_5] : memref<2x13x8x75xf32, #tpu.memory_space<vmem>>, vector<1x8x8x75xf32>
    %3 = vector.shape_cast %2 : vector<1x8x8x75xf32> to vector<8x8x75xf32>
    %4 = vector.shape_cast %3 : vector<8x8x75xf32> to vector<64x75xf32>
    %cst = arith.constant dense<0.000000e+00> : vector<64x256xf32>
    %5 = tpu.matmul %4, %1, %cst {dimension_numbers = #tpu.dot_dimension_numbers<[1], [0], [0], [1], [0, 0, 1, 1], [], []>} : vector<64x75xf32>, vector<75x256xf32>, vector<64x256xf32> -> vector<64x256xf32>
    %c1 = arith.constant 1 : index
    %c0_6 = arith.constant 0 : index
    %c0_7 = arith.constant 0 : index
    %c0_8 = arith.constant 0 : index
    %6 = vector.load %arg1[%c1, %c0_6, %c0_7, %c0_8] : memref<2x13x8x75xf32, #tpu.memory_space<vmem>>, vector<1x8x8x75xf32>
    %7 = vector.shape_cast %6 : vector<1x8x8x75xf32> to vector<8x8x75xf32>
    %8 = vector.shape_cast %7 : vector<8x8x75xf32> to vector<64x75xf32>
    %cst_9 = arith.constant dense<0.000000e+00> : vector<64x256xf32>
    %9 = tpu.matmul %8, %1, %cst_9 {dimension_numbers = #tpu.dot_dimension_numbers<[1], [0], [0], [1], [0, 0, 1, 1], [], []>} : vector<64x75xf32>, vector<75x256xf32>, vector<64x256xf32> -> vector<64x256xf32>
    %c1_10 = arith.constant 1 : index
    %c0_11 = arith.constant 0 : index
    %c0_12 = arith.constant 0 : index
    %10 = vector.load %arg2[%c1_10, %c0_11, %c0_12] : memref<10x75x256xf32, #tpu.memory_space<vmem>>, vector<1x75x256xf32>
    %11 = vector.shape_cast %10 : vector<1x75x256xf32> to vector<75x256xf32>
    %c1_13 = arith.constant 1 : index
    %c0_14 = arith.constant 0 : index
    %c0_15 = arith.constant 0 : index
    %c0_16 = arith.constant 0 : index
    %12 = vector.load %arg1[%c1_13, %c0_14, %c0_15, %c0_16] : memref<2x13x8x75xf32, #tpu.memory_space<vmem>>, vector<1x8x8x75xf32>
    %13 = vector.shape_cast %12 : vector<1x8x8x75xf32> to vector<8x8x75xf32>
    %14 = vector.shape_cast %13 : vector<8x8x75xf32> to vector<64x75xf32>
    %cst_17 = arith.constant dense<0.000000e+00> : vector<64x256xf32>
    %15 = tpu.matmul %14, %11, %cst_17 {dimension_numbers = #tpu.dot_dimension_numbers<[1], [0], [0], [1], [0, 0, 1, 1], [], []>} : vector<64x75xf32>, vector<75x256xf32>, vector<64x256xf32> -> vector<64x256xf32>
    %16 = arith.addf %5, %15 : vector<64x256xf32>
    %c0_18 = arith.constant 0 : index
    %c1_19 = arith.constant 1 : index
    %c0_20 = arith.constant 0 : index
    %c0_21 = arith.constant 0 : index
    %17 = vector.load %arg1[%c0_18, %c1_19, %c0_20, %c0_21] : memref<2x13x8x75xf32, #tpu.memory_space<vmem>>, vector<1x8x8x75xf32>
    %18 = vector.shape_cast %17 : vector<1x8x8x75xf32> to vector<8x8x75xf32>
    %19 = vector.shape_cast %18 : vector<8x8x75xf32> to vector<64x75xf32>
    %cst_22 = arith.constant dense<0.000000e+00> : vector<64x256xf32>
    %20 = tpu.matmul %19, %11, %cst_22 {dimension_numbers = #tpu.dot_dimension_numbers<[1], [0], [0], [1], [0, 0, 1, 1], [], []>} : vector<64x75xf32>, vector<75x256xf32>, vector<64x256xf32> -> vector<64x256xf32>
    %21 = arith.addf %9, %20 : vector<64x256xf32>
    %c2 = arith.constant 2 : index
    %c0_23 = arith.constant 0 : index
    %c0_24 = arith.constant 0 : index
    %22 = vector.load %arg2[%c2, %c0_23, %c0_24] : memref<10x75x256xf32, #tpu.memory_space<vmem>>, vector<1x75x256xf32>
    %23 = vector.shape_cast %22 : vector<1x75x256xf32> to vector<75x256xf32>
    %c0_25 = arith.constant 0 : index
    %c1_26 = arith.constant 1 : index
    %c0_27 = arith.constant 0 : index
    %c0_28 = arith.constant 0 : index
    %24 = vector.load %arg1[%c0_25, %c1_26, %c0_27, %c0_28] : memref<2x13x8x75xf32, #tpu.memory_space<vmem>>, vector<1x8x8x75xf32>
    %25 = vector.shape_cast %24 : vector<1x8x8x75xf32> to vector<8x8x75xf32>
    %26 = vector.shape_cast %25 : vector<8x8x75xf32> to vector<64x75xf32>
    %cst_29 = arith.constant dense<0.000000e+00> : vector<64x256xf32>
    %27 = tpu.matmul %26, %23, %cst_29 {dimension_numbers = #tpu.dot_dimension_numbers<[1], [0], [0], [1], [0, 0, 1, 1], [], []>} : vector<64x75xf32>, vector<75x256xf32>, vector<64x256xf32> -> vector<64x256xf32>
    %28 = arith.addf %16, %27 : vector<64x256xf32>
    %c1_30 = arith.constant 1 : index
    %c1_31 = arith.constant 1 : index
    %c0_32 = arith.constant 0 : index
    %c0_33 = arith.constant 0 : index
    %29 = vector.load %arg1[%c1_30, %c1_31, %c0_32, %c0_33] : memref<2x13x8x75xf32, #tpu.memory_space<vmem>>, vector<1x8x8x75xf32>
    %30 = vector.shape_cast %29 : vector<1x8x8x75xf32> to vector<8x8x75xf32>
    %31 = vector.shape_cast %30 : vector<8x8x75xf32> to vector<64x75xf32>
    %cst_34 = arith.constant dense<0.000000e+00> : vector<64x256xf32>
    %32 = tpu.matmul %31, %23, %cst_34 {dimension_numbers = #tpu.dot_dimension_numbers<[1], [0], [0], [1], [0, 0, 1, 1], [], []>} : vector<64x75xf32>, vector<75x256xf32>, vector<64x256xf32> -> vector<64x256xf32>
    %33 = arith.addf %21, %32 : vector<64x256xf32>
    %c3 = arith.constant 3 : index
    %c0_35 = arith.constant 0 : index
    %c0_36 = arith.constant 0 : index
    %34 = vector.load %arg2[%c3, %c0_35, %c0_36] : memref<10x75x256xf32, #tpu.memory_space<vmem>>, vector<1x75x256xf32>
    %35 = vector.shape_cast %34 : vector<1x75x256xf32> to vector<75x256xf32>
    %c1_37 = arith.constant 1 : index
    %c1_38 = arith.constant 1 : index
    %c0_39 = arith.constant 0 : index
    %c0_40 = arith.constant 0 : index
    %36 = vector.load %arg1[%c1_37, %c1_38, %c0_39, %c0_40] : memref<2x13x8x75xf32, #tpu.memory_space<vmem>>, vector<1x8x8x75xf32>
    %37 = vector.shape_cast %36 : vector<1x8x8x75xf32> to vector<8x8x75xf32>
    %38 = vector.shape_cast %37 : vector<8x8x75xf32> to vector<64x75xf32>
    %cst_41 = arith.constant dense<0.000000e+00> : vector<64x256xf32>
    %39 = tpu.matmul %38, %35, %cst_41 {dimension_numbers = #tpu.dot_dimension_numbers<[1], [0], [0], [1], [0, 0, 1, 1], [], []>} : vector<64x75xf32>, vector<75x256xf32>, vector<64x256xf32> -> vector<64x256xf32>
    %40 = arith.addf %28, %39 : vector<64x256xf32>
    %c0_42 = arith.constant 0 : index
    %c2_43 = arith.constant 2 : index
    %c0_44 = arith.constant 0 : index
    %c0_45 = arith.constant 0 : index
    %41 = vector.load %arg1[%c0_42, %c2_43, %c0_44, %c0_45] : memref<2x13x8x75xf32, #tpu.memory_space<vmem>>, vector<1x8x8x75xf32>
    %42 = vector.shape_cast %41 : vector<1x8x8x75xf32> to vector<8x8x75xf32>
    %43 = vector.shape_cast %42 : vector<8x8x75xf32> to vector<64x75xf32>
    %cst_46 = arith.constant dense<0.000000e+00> : vector<64x256xf32>
    %44 = tpu.matmul %43, %35, %cst_46 {dimension_numbers = #tpu.dot_dimension_numbers<[1], [0], [0], [1], [0, 0, 1, 1], [], []>} : vector<64x75xf32>, vector<75x256xf32>, vector<64x256xf32> -> vector<64x256xf32>
    %45 = arith.addf %33, %44 : vector<64x256xf32>
    %c4 = arith.constant 4 : index
    %c0_47 = arith.constant 0 : index
    %c0_48 = arith.constant 0 : index
    %46 = vector.load %arg2[%c4, %c0_47, %c0_48] : memref<10x75x256xf32, #tpu.memory_space<vmem>>, vector<1x75x256xf32>
    %47 = vector.shape_cast %46 : vector<1x75x256xf32> to vector<75x256xf32>
    %c0_49 = arith.constant 0 : index
    %c2_50 = arith.constant 2 : index
    %c0_51 = arith.constant 0 : index
    %c0_52 = arith.constant 0 : index
    %48 = vector.load %arg1[%c0_49, %c2_50, %c0_51, %c0_52] : memref<2x13x8x75xf32, #tpu.memory_space<vmem>>, vector<1x8x8x75xf32>
    %49 = vector.shape_cast %48 : vector<1x8x8x75xf32> to vector<8x8x75xf32>
    %50 = vector.shape_cast %49 : vector<8x8x75xf32> to vector<64x75xf32>
    %cst_53 = arith.constant dense<0.000000e+00> : vector<64x256xf32>
    %51 = tpu.matmul %50, %47, %cst_53 {dimension_numbers = #tpu.dot_dimension_numbers<[1], [0], [0], [1], [0, 0, 1, 1], [], []>} : vector<64x75xf32>, vector<75x256xf32>, vector<64x256xf32> -> vector<64x256xf32>
    %52 = arith.addf %40, %51 : vector<64x256xf32>
    %c1_54 = arith.constant 1 : index
    %c2_55 = arith.constant 2 : index
    %c0_56 = arith.constant 0 : index
    %c0_57 = arith.constant 0 : index
    %53 = vector.load %arg1[%c1_54, %c2_55, %c0_56, %c0_57] : memref<2x13x8x75xf32, #tpu.memory_space<vmem>>, vector<1x8x8x75xf32>
    %54 = vector.shape_cast %53 : vector<1x8x8x75xf32> to vector<8x8x75xf32>
    %55 = vector.shape_cast %54 : vector<8x8x75xf32> to vector<64x75xf32>
    %cst_58 = arith.constant dense<0.000000e+00> : vector<64x256xf32>
    %56 = tpu.matmul %55, %47, %cst_58 {dimension_numbers = #tpu.dot_dimension_numbers<[1], [0], [0], [1], [0, 0, 1, 1], [], []>} : vector<64x75xf32>, vector<75x256xf32>, vector<64x256xf32> -> vector<64x256xf32>
    %57 = arith.addf %45, %56 : vector<64x256xf32>
    %c5 = arith.constant 5 : index
    %c0_59 = arith.constant 0 : index
    %c0_60 = arith.constant 0 : index
    %58 = vector.load %arg2[%c5, %c0_59, %c0_60] : memref<10x75x256xf32, #tpu.memory_space<vmem>>, vector<1x75x256xf32>
    %59 = vector.shape_cast %58 : vector<1x75x256xf32> to vector<75x256xf32>
    %c1_61 = arith.constant 1 : index
    %c2_62 = arith.constant 2 : index
    %c0_63 = arith.constant 0 : index
    %c0_64 = arith.constant 0 : index
    %60 = vector.load %arg1[%c1_61, %c2_62, %c0_63, %c0_64] : memref<2x13x8x75xf32, #tpu.memory_space<vmem>>, vector<1x8x8x75xf32>
    %61 = vector.shape_cast %60 : vector<1x8x8x75xf32> to vector<8x8x75xf32>
    %62 = vector.shape_cast %61 : vector<8x8x75xf32> to vector<64x75xf32>
    %cst_65 = arith.constant dense<0.000000e+00> : vector<64x256xf32>
    %63 = tpu.matmul %62, %59, %cst_65 {dimension_numbers = #tpu.dot_dimension_numbers<[1], [0], [0], [1], [0, 0, 1, 1], [], []>} : vector<64x75xf32>, vector<75x256xf32>, vector<64x256xf32> -> vector<64x256xf32>
    %64 = arith.addf %52, %63 : vector<64x256xf32>
    %c0_66 = arith.constant 0 : index
    %c3_67 = arith.constant 3 : index
    %c0_68 = arith.constant 0 : index
    %c0_69 = arith.constant 0 : index
    %65 = vector.load %arg1[%c0_66, %c3_67, %c0_68, %c0_69] : memref<2x13x8x75xf32, #tpu.memory_space<vmem>>, vector<1x8x8x75xf32>
    %66 = vector.shape_cast %65 : vector<1x8x8x75xf32> to vector<8x8x75xf32>
    %67 = vector.shape_cast %66 : vector<8x8x75xf32> to vector<64x75xf32>
    %cst_70 = arith.constant dense<0.000000e+00> : vector<64x256xf32>
    %68 = tpu.matmul %67, %59, %cst_70 {dimension_numbers = #tpu.dot_dimension_numbers<[1], [0], [0], [1], [0, 0, 1, 1], [], []>} : vector<64x75xf32>, vector<75x256xf32>, vector<64x256xf32> -> vector<64x256xf32>
    %69 = arith.addf %57, %68 : vector<64x256xf32>
    %c6 = arith.constant 6 : index
    %c0_71 = arith.constant 0 : index
    %c0_72 = arith.constant 0 : index
    %70 = vector.load %arg2[%c6, %c0_71, %c0_72] : memref<10x75x256xf32, #tpu.memory_space<vmem>>, vector<1x75x256xf32>
    %71 = vector.shape_cast %70 : vector<1x75x256xf32> to vector<75x256xf32>
    %c0_73 = arith.constant 0 : index
    %c3_74 = arith.constant 3 : index
    %c0_75 = arith.constant 0 : index
    %c0_76 = arith.constant 0 : index
    %72 = vector.load %arg1[%c0_73, %c3_74, %c0_75, %c0_76] : memref<2x13x8x75xf32, #tpu.memory_space<vmem>>, vector<1x8x8x75xf32>
    %73 = vector.shape_cast %72 : vector<1x8x8x75xf32> to vector<8x8x75xf32>
    %74 = vector.shape_cast %73 : vector<8x8x75xf32> to vector<64x75xf32>
    %cst_77 = arith.constant dense<0.000000e+00> : vector<64x256xf32>
    %75 = tpu.matmul %74, %71, %cst_77 {dimension_numbers = #tpu.dot_dimension_numbers<[1], [0], [0], [1], [0, 0, 1, 1], [], []>} : vector<64x75xf32>, vector<75x256xf32>, vector<64x256xf32> -> vector<64x256xf32>
    %76 = arith.addf %64, %75 : vector<64x256xf32>
    %c1_78 = arith.constant 1 : index
    %c3_79 = arith.constant 3 : index
    %c0_80 = arith.constant 0 : index
    %c0_81 = arith.constant 0 : index
    %77 = vector.load %arg1[%c1_78, %c3_79, %c0_80, %c0_81] : memref<2x13x8x75xf32, #tpu.memory_space<vmem>>, vector<1x8x8x75xf32>
    %78 = vector.shape_cast %77 : vector<1x8x8x75xf32> to vector<8x8x75xf32>
    %79 = vector.shape_cast %78 : vector<8x8x75xf32> to vector<64x75xf32>
    %cst_82 = arith.constant dense<0.000000e+00> : vector<64x256xf32>
    %80 = tpu.matmul %79, %71, %cst_82 {dimension_numbers = #tpu.dot_dimension_numbers<[1], [0], [0], [1], [0, 0, 1, 1], [], []>} : vector<64x75xf32>, vector<75x256xf32>, vector<64x256xf32> -> vector<64x256xf32>
    %81 = arith.addf %69, %80 : vector<64x256xf32>
    %c7 = arith.constant 7 : index
    %c0_83 = arith.constant 0 : index
    %c0_84 = arith.constant 0 : index
    %82 = vector.load %arg2[%c7, %c0_83, %c0_84] : memref<10x75x256xf32, #tpu.memory_space<vmem>>, vector<1x75x256xf32>
    %83 = vector.shape_cast %82 : vector<1x75x256xf32> to vector<75x256xf32>
    %c1_85 = arith.constant 1 : index
    %c3_86 = arith.constant 3 : index
    %c0_87 = arith.constant 0 : index
    %c0_88 = arith.constant 0 : index
    %84 = vector.load %arg1[%c1_85, %c3_86, %c0_87, %c0_88] : memref<2x13x8x75xf32, #tpu.memory_space<vmem>>, vector<1x8x8x75xf32>
    %85 = vector.shape_cast %84 : vector<1x8x8x75xf32> to vector<8x8x75xf32>
    %86 = vector.shape_cast %85 : vector<8x8x75xf32> to vector<64x75xf32>
    %cst_89 = arith.constant dense<0.000000e+00> : vector<64x256xf32>
    %87 = tpu.matmul %86, %83, %cst_89 {dimension_numbers = #tpu.dot_dimension_numbers<[1], [0], [0], [1], [0, 0, 1, 1], [], []>} : vector<64x75xf32>, vector<75x256xf32>, vector<64x256xf32> -> vector<64x256xf32>
    %88 = arith.addf %76, %87 : vector<64x256xf32>
    %c0_90 = arith.constant 0 : index
    %c4_91 = arith.constant 4 : index
    %c0_92 = arith.constant 0 : index
    %c0_93 = arith.constant 0 : index
    %89 = vector.load %arg1[%c0_90, %c4_91, %c0_92, %c0_93] : memref<2x13x8x75xf32, #tpu.memory_space<vmem>>, vector<1x8x8x75xf32>
    %90 = vector.shape_cast %89 : vector<1x8x8x75xf32> to vector<8x8x75xf32>
    %91 = vector.shape_cast %90 : vector<8x8x75xf32> to vector<64x75xf32>
    %cst_94 = arith.constant dense<0.000000e+00> : vector<64x256xf32>
    %92 = tpu.matmul %91, %83, %cst_94 {dimension_numbers = #tpu.dot_dimension_numbers<[1], [0], [0], [1], [0, 0, 1, 1], [], []>} : vector<64x75xf32>, vector<75x256xf32>, vector<64x256xf32> -> vector<64x256xf32>
    %93 = arith.addf %81, %92 : vector<64x256xf32>
    %c8 = arith.constant 8 : index
    %c0_95 = arith.constant 0 : index
    %c0_96 = arith.constant 0 : index
    %94 = vector.load %arg2[%c8, %c0_95, %c0_96] : memref<10x75x256xf32, #tpu.memory_space<vmem>>, vector<1x75x256xf32>
    %95 = vector.shape_cast %94 : vector<1x75x256xf32> to vector<75x256xf32>
    %c0_97 = arith.constant 0 : index
    %c4_98 = arith.constant 4 : index
    %c0_99 = arith.constant 0 : index
    %c0_100 = arith.constant 0 : index
    %96 = vector.load %arg1[%c0_97, %c4_98, %c0_99, %c0_100] : memref<2x13x8x75xf32, #tpu.memory_space<vmem>>, vector<1x8x8x75xf32>
    %97 = vector.shape_cast %96 : vector<1x8x8x75xf32> to vector<8x8x75xf32>
    %98 = vector.shape_cast %97 : vector<8x8x75xf32> to vector<64x75xf32>
    %cst_101 = arith.constant dense<0.000000e+00> : vector<64x256xf32>
    %99 = tpu.matmul %98, %95, %cst_101 {dimension_numbers = #tpu.dot_dimension_numbers<[1], [0], [0], [1], [0, 0, 1, 1], [], []>} : vector<64x75xf32>, vector<75x256xf32>, vector<64x256xf32> -> vector<64x256xf32>
    %100 = arith.addf %88, %99 : vector<64x256xf32>
    %c1_102 = arith.constant 1 : index
    %c4_103 = arith.constant 4 : index
    %c0_104 = arith.constant 0 : index
    %c0_105 = arith.constant 0 : index
    %101 = vector.load %arg1[%c1_102, %c4_103, %c0_104, %c0_105] : memref<2x13x8x75xf32, #tpu.memory_space<vmem>>, vector<1x8x8x75xf32>
    %102 = vector.shape_cast %101 : vector<1x8x8x75xf32> to vector<8x8x75xf32>
    %103 = vector.shape_cast %102 : vector<8x8x75xf32> to vector<64x75xf32>
    %cst_106 = arith.constant dense<0.000000e+00> : vector<64x256xf32>
    %104 = tpu.matmul %103, %95, %cst_106 {dimension_numbers = #tpu.dot_dimension_numbers<[1], [0], [0], [1], [0, 0, 1, 1], [], []>} : vector<64x75xf32>, vector<75x256xf32>, vector<64x256xf32> -> vector<64x256xf32>
    %105 = arith.addf %93, %104 : vector<64x256xf32>
    %c9 = arith.constant 9 : index
    %c0_107 = arith.constant 0 : index
    %c0_108 = arith.constant 0 : index
    %106 = vector.load %arg2[%c9, %c0_107, %c0_108] : memref<10x75x256xf32, #tpu.memory_space<vmem>>, vector<1x75x256xf32>
    %107 = vector.shape_cast %106 : vector<1x75x256xf32> to vector<75x256xf32>
    %c1_109 = arith.constant 1 : index
    %c4_110 = arith.constant 4 : index
    %c0_111 = arith.constant 0 : index
    %c0_112 = arith.constant 0 : index
    %108 = vector.load %arg1[%c1_109, %c4_110, %c0_111, %c0_112] : memref<2x13x8x75xf32, #tpu.memory_space<vmem>>, vector<1x8x8x75xf32>
    %109 = vector.shape_cast %108 : vector<1x8x8x75xf32> to vector<8x8x75xf32>
    %110 = vector.shape_cast %109 : vector<8x8x75xf32> to vector<64x75xf32>
    %cst_113 = arith.constant dense<0.000000e+00> : vector<64x256xf32>
    %111 = tpu.matmul %110, %107, %cst_113 {dimension_numbers = #tpu.dot_dimension_numbers<[1], [0], [0], [1], [0, 0, 1, 1], [], []>} : vector<64x75xf32>, vector<75x256xf32>, vector<64x256xf32> -> vector<64x256xf32>
    %112 = arith.addf %100, %111 : vector<64x256xf32>
    %c0_114 = arith.constant 0 : index
    %c5_115 = arith.constant 5 : index
    %c0_116 = arith.constant 0 : index
    %c0_117 = arith.constant 0 : index
    %113 = vector.load %arg1[%c0_114, %c5_115, %c0_116, %c0_117] : memref<2x13x8x75xf32, #tpu.memory_space<vmem>>, vector<1x8x8x75xf32>
    %114 = vector.shape_cast %113 : vector<1x8x8x75xf32> to vector<8x8x75xf32>
    %115 = vector.shape_cast %114 : vector<8x8x75xf32> to vector<64x75xf32>
    %cst_118 = arith.constant dense<0.000000e+00> : vector<64x256xf32>
    %116 = tpu.matmul %115, %107, %cst_118 {dimension_numbers = #tpu.dot_dimension_numbers<[1], [0], [0], [1], [0, 0, 1, 1], [], []>} : vector<64x75xf32>, vector<75x256xf32>, vector<64x256xf32> -> vector<64x256xf32>
    %117 = arith.addf %105, %116 : vector<64x256xf32>
    %c0_119 = arith.constant 0 : index
    %c0_120 = arith.constant 0 : index
    %118 = vector.load %arg3[%c0_119, %c0_120] : memref<1x256xf32, #tpu.memory_space<vmem>>, vector<1x256xf32>
    %119 = vector.broadcast %118 : vector<1x256xf32> to vector<64x256xf32>
    %120 = arith.addf %112, %119 : vector<64x256xf32>
    %cst_121 = arith.constant 0.000000e+00 : f32
    %121 = vector.broadcast %cst_121 : f32 to vector<64x256xf32>
    %122 = arith.maximumf %120, %121 : vector<64x256xf32>
    %123 = vector.extract_strided_slice %122 {offsets = [0, 0], sizes = [64, 128], strides = [1, 1]} : vector<64x256xf32> to vector<64x128xf32>
    %124 = vector.extract_strided_slice %122 {offsets = [0, 128], sizes = [64, 128], strides = [1, 1]} : vector<64x256xf32> to vector<64x128xf32>
    %125 = arith.maximumf %123, %124 : vector<64x128xf32>
    %c0_122 = arith.constant 0 : index
    %c0_123 = arith.constant 0 : index
    %126 = vector.load %arg3[%c0_122, %c0_123] : memref<1x256xf32, #tpu.memory_space<vmem>>, vector<1x256xf32>
    %127 = vector.broadcast %126 : vector<1x256xf32> to vector<64x256xf32>
    %128 = arith.addf %117, %127 : vector<64x256xf32>
    %cst_124 = arith.constant 0.000000e+00 : f32
    %129 = vector.broadcast %cst_124 : f32 to vector<64x256xf32>
    %130 = arith.maximumf %128, %129 : vector<64x256xf32>
    %131 = vector.extract_strided_slice %130 {offsets = [0, 0], sizes = [64, 128], strides = [1, 1]} : vector<64x256xf32> to vector<64x128xf32>
    %132 = vector.extract_strided_slice %130 {offsets = [0, 128], sizes = [64, 128], strides = [1, 1]} : vector<64x256xf32> to vector<64x128xf32>
    %133 = arith.maximumf %131, %132 : vector<64x128xf32>
    %134 = arith.maximumf %125, %133 : vector<64x128xf32>
    %135 = vector.extract_strided_slice %134 {offsets = [0, 0], sizes = [8, 128], strides = [1, 1]} : vector<64x128xf32> to vector<8x128xf32>
    %c0_125 = arith.constant 0 : index
    %c0_126 = arith.constant 0 : index
    %c0_127 = arith.constant 0 : index
    %136 = vector.load %arg4[%c0_125, %c0_126, %c0_127] : memref<8x128x256xf32, #tpu.memory_space<vmem>>, vector<1x128x256xf32>
    %137 = vector.shape_cast %136 : vector<1x128x256xf32> to vector<128x256xf32>
    %cst_128 = arith.constant dense<0.000000e+00> : vector<8x256xf32>
    %138 = tpu.matmul %135, %137, %cst_128 {dimension_numbers = #tpu.dot_dimension_numbers<[1], [0], [0], [1], [0, 0, 1, 1], [], []>} : vector<8x128xf32>, vector<128x256xf32>, vector<8x256xf32> -> vector<8x256xf32>
    %139 = vector.extract_strided_slice %134 {offsets = [8, 0], sizes = [8, 128], strides = [1, 1]} : vector<64x128xf32> to vector<8x128xf32>
    %c1_129 = arith.constant 1 : index
    %c0_130 = arith.constant 0 : index
    %c0_131 = arith.constant 0 : index
    %140 = vector.load %arg4[%c1_129, %c0_130, %c0_131] : memref<8x128x256xf32, #tpu.memory_space<vmem>>, vector<1x128x256xf32>
    %141 = vector.shape_cast %140 : vector<1x128x256xf32> to vector<128x256xf32>
    %cst_132 = arith.constant dense<0.000000e+00> : vector<8x256xf32>
    %142 = tpu.matmul %139, %141, %cst_132 {dimension_numbers = #tpu.dot_dimension_numbers<[1], [0], [0], [1], [0, 0, 1, 1], [], []>} : vector<8x128xf32>, vector<128x256xf32>, vector<8x256xf32> -> vector<8x256xf32>
    %143 = arith.addf %138, %142 : vector<8x256xf32>
    %144 = vector.extract_strided_slice %134 {offsets = [16, 0], sizes = [8, 128], strides = [1, 1]} : vector<64x128xf32> to vector<8x128xf32>
    %c2_133 = arith.constant 2 : index
    %c0_134 = arith.constant 0 : index
    %c0_135 = arith.constant 0 : index
    %145 = vector.load %arg4[%c2_133, %c0_134, %c0_135] : memref<8x128x256xf32, #tpu.memory_space<vmem>>, vector<1x128x256xf32>
    %146 = vector.shape_cast %145 : vector<1x128x256xf32> to vector<128x256xf32>
    %cst_136 = arith.constant dense<0.000000e+00> : vector<8x256xf32>
    %147 = tpu.matmul %144, %146, %cst_136 {dimension_numbers = #tpu.dot_dimension_numbers<[1], [0], [0], [1], [0, 0, 1, 1], [], []>} : vector<8x128xf32>, vector<128x256xf32>, vector<8x256xf32> -> vector<8x256xf32>
    %148 = arith.addf %143, %147 : vector<8x256xf32>
    %149 = vector.extract_strided_slice %134 {offsets = [24, 0], sizes = [8, 128], strides = [1, 1]} : vector<64x128xf32> to vector<8x128xf32>
    %c3_137 = arith.constant 3 : index
    %c0_138 = arith.constant 0 : index
    %c0_139 = arith.constant 0 : index
    %150 = vector.load %arg4[%c3_137, %c0_138, %c0_139] : memref<8x128x256xf32, #tpu.memory_space<vmem>>, vector<1x128x256xf32>
    %151 = vector.shape_cast %150 : vector<1x128x256xf32> to vector<128x256xf32>
    %cst_140 = arith.constant dense<0.000000e+00> : vector<8x256xf32>
    %152 = tpu.matmul %149, %151, %cst_140 {dimension_numbers = #tpu.dot_dimension_numbers<[1], [0], [0], [1], [0, 0, 1, 1], [], []>} : vector<8x128xf32>, vector<128x256xf32>, vector<8x256xf32> -> vector<8x256xf32>
    %153 = arith.addf %148, %152 : vector<8x256xf32>
    %154 = vector.extract_strided_slice %134 {offsets = [32, 0], sizes = [8, 128], strides = [1, 1]} : vector<64x128xf32> to vector<8x128xf32>
    %c4_141 = arith.constant 4 : index
    %c0_142 = arith.constant 0 : index
    %c0_143 = arith.constant 0 : index
    %155 = vector.load %arg4[%c4_141, %c0_142, %c0_143] : memref<8x128x256xf32, #tpu.memory_space<vmem>>, vector<1x128x256xf32>
    %156 = vector.shape_cast %155 : vector<1x128x256xf32> to vector<128x256xf32>
    %cst_144 = arith.constant dense<0.000000e+00> : vector<8x256xf32>
    %157 = tpu.matmul %154, %156, %cst_144 {dimension_numbers = #tpu.dot_dimension_numbers<[1], [0], [0], [1], [0, 0, 1, 1], [], []>} : vector<8x128xf32>, vector<128x256xf32>, vector<8x256xf32> -> vector<8x256xf32>
    %158 = arith.addf %153, %157 : vector<8x256xf32>
    %159 = vector.extract_strided_slice %134 {offsets = [40, 0], sizes = [8, 128], strides = [1, 1]} : vector<64x128xf32> to vector<8x128xf32>
    %c5_145 = arith.constant 5 : index
    %c0_146 = arith.constant 0 : index
    %c0_147 = arith.constant 0 : index
    %160 = vector.load %arg4[%c5_145, %c0_146, %c0_147] : memref<8x128x256xf32, #tpu.memory_space<vmem>>, vector<1x128x256xf32>
    %161 = vector.shape_cast %160 : vector<1x128x256xf32> to vector<128x256xf32>
    %cst_148 = arith.constant dense<0.000000e+00> : vector<8x256xf32>
    %162 = tpu.matmul %159, %161, %cst_148 {dimension_numbers = #tpu.dot_dimension_numbers<[1], [0], [0], [1], [0, 0, 1, 1], [], []>} : vector<8x128xf32>, vector<128x256xf32>, vector<8x256xf32> -> vector<8x256xf32>
    %163 = arith.addf %158, %162 : vector<8x256xf32>
    %164 = vector.extract_strided_slice %134 {offsets = [48, 0], sizes = [8, 128], strides = [1, 1]} : vector<64x128xf32> to vector<8x128xf32>
    %c6_149 = arith.constant 6 : index
    %c0_150 = arith.constant 0 : index
    %c0_151 = arith.constant 0 : index
    %165 = vector.load %arg4[%c6_149, %c0_150, %c0_151] : memref<8x128x256xf32, #tpu.memory_space<vmem>>, vector<1x128x256xf32>
    %166 = vector.shape_cast %165 : vector<1x128x256xf32> to vector<128x256xf32>
    %cst_152 = arith.constant dense<0.000000e+00> : vector<8x256xf32>
    %167 = tpu.matmul %164, %166, %cst_152 {dimension_numbers = #tpu.dot_dimension_numbers<[1], [0], [0], [1], [0, 0, 1, 1], [], []>} : vector<8x128xf32>, vector<128x256xf32>, vector<8x256xf32> -> vector<8x256xf32>
    %168 = arith.addf %163, %167 : vector<8x256xf32>
    %169 = vector.extract_strided_slice %134 {offsets = [56, 0], sizes = [8, 128], strides = [1, 1]} : vector<64x128xf32> to vector<8x128xf32>
    %c7_153 = arith.constant 7 : index
    %c0_154 = arith.constant 0 : index
    %c0_155 = arith.constant 0 : index
    %170 = vector.load %arg4[%c7_153, %c0_154, %c0_155] : memref<8x128x256xf32, #tpu.memory_space<vmem>>, vector<1x128x256xf32>
    %171 = vector.shape_cast %170 : vector<1x128x256xf32> to vector<128x256xf32>
    %cst_156 = arith.constant dense<0.000000e+00> : vector<8x256xf32>
    %172 = tpu.matmul %169, %171, %cst_156 {dimension_numbers = #tpu.dot_dimension_numbers<[1], [0], [0], [1], [0, 0, 1, 1], [], []>} : vector<8x128xf32>, vector<128x256xf32>, vector<8x256xf32> -> vector<8x256xf32>
    %173 = arith.addf %168, %172 : vector<8x256xf32>
    %c0_157 = arith.constant 0 : index
    %c0_158 = arith.constant 0 : index
    %174 = vector.load %arg5[%c0_157, %c0_158] : memref<1x256xf32, #tpu.memory_space<vmem>>, vector<1x256xf32>
    %175 = vector.broadcast %174 : vector<1x256xf32> to vector<8x256xf32>
    %176 = arith.addf %173, %175 : vector<8x256xf32>
    %cst_159 = arith.constant 0.000000e+00 : f32
    %177 = vector.broadcast %cst_159 : f32 to vector<8x256xf32>
    %178 = arith.maximumf %176, %177 : vector<8x256xf32>
    %c0_160 = arith.constant 0 : index
    %c0_161 = arith.constant 0 : index
    %179 = vector.load %arg6[%c0_160, %c0_161] : memref<256x128xf32, #tpu.memory_space<vmem>>, vector<256x128xf32>
    %cst_162 = arith.constant dense<0.000000e+00> : vector<8x128xf32>
    %180 = tpu.matmul %178, %179, %cst_162 {dimension_numbers = #tpu.dot_dimension_numbers<[1], [0], [0], [1], [0, 0, 1, 1], [], []>} : vector<8x256xf32>, vector<256x128xf32>, vector<8x128xf32> -> vector<8x128xf32>
    %c0_163 = arith.constant 0 : index
    %c0_164 = arith.constant 0 : index
    %181 = vector.load %arg7[%c0_163, %c0_164] : memref<1x128xf32, #tpu.memory_space<vmem>>, vector<1x128xf32>
    %182 = vector.broadcast %181 : vector<1x128xf32> to vector<8x128xf32>
    %183 = arith.addf %180, %182 : vector<8x128xf32>
    %c0_165 = arith.constant 0 : index
    %c0_166 = arith.constant 0 : index
    %184 = vector.load %arg8[%c0_165, %c0_166] : memref<8x128xf32, #tpu.memory_space<vmem>>, vector<8x128xf32>
    tpu.vector_store %arg8[%c0_165, %c0_166], %183 {strides = array<i32>} : memref<8x128xf32, #tpu.memory_space<vmem>>, vector<8x128xf32>,
    return
  }
  func.func @transform_0(%arg0: i32) -> (i32, i32, i32, i32) {
    %c0_i32 = arith.constant 0 : i32
    %c0_i32_0 = arith.constant 0 : i32
    %c0_i32_1 = arith.constant 0 : i32
    %c0_i32_2 = arith.constant 0 : i32
    return %c0_i32, %c0_i32_0, %arg0, %c0_i32_1 : i32, i32, i32, i32
  }
  func.func @transform_1(%arg0: i32) -> (i32, i32, i32) {
    %c0_i32 = arith.constant 0 : i32
    %c0_i32_0 = arith.constant 0 : i32
    %c0_i32_1 = arith.constant 0 : i32
    %c0_i32_2 = arith.constant 0 : i32
    return %c0_i32, %c0_i32_0, %c0_i32_1 : i32, i32, i32
  }
  func.func @transform_2(%arg0: i32) -> (i32, i32) {
    %c0_i32 = arith.constant 0 : i32
    %c0_i32_0 = arith.constant 0 : i32
    %c0_i32_1 = arith.constant 0 : i32
    return %c0_i32, %c0_i32_0 : i32, i32
  }
  func.func @transform_3(%arg0: i32) -> (i32, i32, i32) {
    %c0_i32 = arith.constant 0 : i32
    %c0_i32_0 = arith.constant 0 : i32
    %c0_i32_1 = arith.constant 0 : i32
    %c0_i32_2 = arith.constant 0 : i32
    return %c0_i32, %c0_i32_0, %c0_i32_1 : i32, i32, i32
  }
  func.func @transform_4(%arg0: i32) -> (i32, i32) {
    %c0_i32 = arith.constant 0 : i32
    %c0_i32_0 = arith.constant 0 : i32
    %c0_i32_1 = arith.constant 0 : i32
    return %c0_i32, %c0_i32_0 : i32, i32
  }
  func.func @transform_5(%arg0: i32) -> (i32, i32) {
    %c0_i32 = arith.constant 0 : i32
    %c0_i32_0 = arith.constant 0 : i32
    %c0_i32_1 = arith.constant 0 : i32
    return %c0_i32, %c0_i32_0 : i32, i32
  }
  func.func @transform_6(%arg0: i32) -> (i32, i32) {
    %c0_i32 = arith.constant 0 : i32
    %c0_i32_0 = arith.constant 0 : i32
    %c0_i32_1 = arith.constant 0 : i32
    return %c0_i32, %c0_i32_0 : i32, i32
  }
  func.func @transform_7(%arg0: i32) -> (i32, i32) {
    %c0_i32 = arith.constant 0 : i32
    %c0_i32_0 = arith.constant 0 : i32
    return %arg0, %c0_i32 : i32, i32
  }
}

</mosaic_0001>

<bundles_post_ra>
// kernel: net_forward.1
= control target key start
LH: loop header
LB: loop body
LE: loop exit
PB: predicated region body
PF: predicated region fallthrough
CT: control target
= control target key end

     0   :  { %vm109_vm0 = vcmask 1042432   ;;  %vm84_vm1 = vcmask 613376   ;;  %s7552_s1 = inlined_call_operand.vmem [shape: f32[10,75,256], index: 1, kind: input, shape index: {}]   ;;  %s7553_s0 = inlined_call_operand.vmem [shape: f32[2,13,8,75], index: 0, kind: input, shape index: {}]   ;;  %s7554_s3 = inlined_call_operand.vmem [shape: f32[8,128,256], index: 3, kind: input, shape index: {}]   ;;  %s7555_s2 = inlined_call_operand.vmem [shape: f32[1,256], index: 2, kind: input, shape index: {}]   ;;  %s7556_s6 = inlined_call_operand.vmem [shape: f32[1,128], index: 6, kind: input, shape index: {}]   ;;  %s7557_s5 = inlined_call_operand.vmem [shape: f32[256,128], index: 5, kind: input, shape index: {}]   ;;  %s7558_s4 = inlined_call_operand.vmem [shape: f32[1,256], index: 4, kind: input, shape index: {}]   ;;  %s7559_s7 = inlined_call_operand.vmem [shape: f32[8,128], index: 7, kind: output, shape index: {}]  }
   0x1   :  { %v4229_v0 = vld [vmem:[%s7552_s1 + $0x130] sm:$0x7]  ;;  %v4234_v1 = vld [vmem:[%s7552_s1 + $0x138] sm:$0x7]  ;;  %v4253_v4 = vld [vmem:[%s7552_s1 + $0x120] sm:$0xff] }
   0x2   :  { %v4239_v2 = vld [vmem:[%s7552_s1 + $0x90] sm:$0x7]  ;;  %3363 = vmatpush.msk.msra.mxu0 %vm109_vm0, %v4229_v0  ;;  %3372 = vmatpush.msk.msra.mxu1 %vm109_vm0, %v4234_v1  ;;  %v4248_v3 = vld [vmem:[%s7552_s1 + $0x98] sm:$0x7]  ;;  %v4258_v5 = vld [vmem:[%s7552_s1 + $0x128] sm:$0xff] }
   0x3   :  { %3381 = vmatpush.msk.msra.mxu2 %vm109_vm0, %v4239_v2  ;;  %3390 = vmatpush.msk.msra.mxu3 %vm109_vm0, %v4248_v3  ;;  %v4267_v6 = vld [vmem:[%s7552_s1 + $0x80] sm:$0xff]  ;;  %v4272_v7 = vld [vmem:[%s7552_s1 + $0x88] sm:$0xff]  ;;  %v4277_v8 = vld [vmem:[%s7552_s1 + $0x110] sm:$0xff] }
   0x4   :  { %123 = vmatpush.msra.mxu0 %v4253_v4  ;;  %164 = vmatpush.msra.mxu1 %v4258_v5  ;;  %v4284_v9 = vld [vmem:[%s7552_s1 + $0x118] sm:$0xff]  ;;  %v4289_v10 = vld [vmem:[%s7552_s1 + $0x70] sm:$0xff]  ;;  %v4301_v12 = vld [vmem:[%s7552_s1 + $0x100] sm:$0xff] }
   0x5   :  { %v4294_v11 = vld [vmem:[%s7552_s1 + $0x78] sm:$0xff]  ;;  %235 = vmatpush.msra.mxu2 %v4267_v6  ;;  %276 = vmatpush.msra.mxu3 %v4272_v7  ;;  %v4306_v13 = vld [vmem:[%s7552_s1 + $0x108] sm:$0xff]  ;;  %v4313_v14 = vld [vmem:[%s7552_s1 + $0x60] sm:$0xff] }
   0x6   :  { %124 = vmatpush.msra.mxu0 %v4277_v8  ;;  %165 = vmatpush.msra.mxu1 %v4284_v9  ;;  %v4318_v15 = vld [vmem:[%s7552_s1 + $0x68] sm:$0xff]  ;;  %v4325_v16 = vld [vmem:[%s7552_s1 + $0xf0] sm:$0xff]  ;;  %v4330_v17 = vld [vmem:[%s7552_s1 + $0xf8] sm:$0xff] }
   0x7   :  { %236 = vmatpush.msra.mxu2 %v4289_v10  ;;  %277 = vmatpush.msra.mxu3 %v4294_v11  ;;  %v4337_v18 = vld [vmem:[%s7552_s1 + $0x50] sm:$0xff]  ;;  %v4342_v19 = vld [vmem:[%s7552_s1 + $0x58] sm:$0xff]  ;;  %v4349_v20 = vld [vmem:[%s7552_s1 + $0xe0] sm:$0xff] }
   0x8   :  { %125 = vmatpush.msra.mxu0 %v4301_v12  ;;  %166 = vmatpush.msra.mxu1 %v4306_v13  ;;  %v4354_v21 = vld [vmem:[%s7552_s1 + $0xe8] sm:$0xff]  ;;  %v4361_v22 = vld [vmem:[%s7552_s1 + $0x40] sm:$0xff]  ;;  %v4373_v24 = vld [vmem:[%s7552_s1 + $0xd0] sm:$0xff] }
   0x9   :  { %237 = vmatpush.msra.mxu2 %v4313_v14  ;;  %278 = vmatpush.msra.mxu3 %v4318_v15  ;;  %v4366_v23 = vld [vmem:[%s7552_s1 + $0x48] sm:$0xff]  ;;  %v4378_v25 = vld [vmem:[%s7552_s1 + $0xd8] sm:$0xff]  ;;  %v4385_v26 = vld [vmem:[%s7552_s1 + $0x30] sm:$0xff] }
   0xa   :  { %126 = vmatpush.msra.mxu0 %v4325_v16  ;;  %167 = vmatpush.msra.mxu1 %v4330_v17  ;;  %v4390_v27 = vld [vmem:[%s7552_s1 + $0x38] sm:$0xff]  ;;  %v4397_v28 = vld [vmem:[%s7552_s1 + $0xc0] sm:$0xff]  ;;  %v4402_v29 = vld [vmem:[%s7552_s1 + $0xc8] sm:$0xff] }
   0xb   :  { %238 = vmatpush.msra.mxu2 %v4337_v18  ;;  %279 = vmatpush.msra.mxu3 %v4342_v19  ;;  %v4409_v30 = vld [vmem:[%s7552_s1 + $0x20] sm:$0xff]  ;;  %v4414_v31 = vld [vmem:[%s7552_s1 + $0x28] sm:$0xff]  ;;  %v4421_v32 = vld [vmem:[%s7552_s1 + $0xb0] sm:$0xff] }
   0xc   :  { %127 = vmatpush.msra.mxu0 %v4349_v20  ;;  %168 = vmatpush.msra.mxu1 %v4354_v21  ;;  %v4426_v33 = vld [vmem:[%s7552_s1 + $0xb8] sm:$0xff]  ;;  %v4433_v34 = vld [vmem:[%s7552_s1 + $0x10] sm:$0xff]  ;;  %v4445_v36 = vld [vmem:[%s7552_s1 + $0xa0] sm:$0xff] }
   0xd   :  { %239 = vmatpush.msra.mxu2 %v4361_v22  ;;  %280 = vmatpush.msra.mxu3 %v4366_v23  ;;  %v4438_v35 = vld [vmem:[%s7552_s1 + $0x18] sm:$0xff]  ;;  %v4450_v37 = vld [vmem:[%s7552_s1 + $0xa8] sm:$0xff]  ;;  %v4457_v38 = vld [vmem:[%s7552_s1] sm:$0xff] }
   0xe   :  { %128 = vmatpush.msra.mxu0 %v4373_v24  ;;  %169 = vmatpush.msra.mxu1 %v4378_v25  ;;  %v4462_v39 = vld [vmem:[%s7552_s1 + $0x8] sm:$0xff]  ;;  %v46_v41 = vld [vmem:[%s7553_s0] sm:$0xff]  ;;  %v4497_v42 = vld [vmem:[%s7553_s0 + $0x70] sm:$0xff] }
   0xf   :  { %240 = vmatpush.msra.mxu2 %v4385_v26  ;;  %281 = vmatpush.msra.mxu3 %v4390_v27  ;;  %v4469_v40 = vld [vmem:[%s7553_s0 + $0x68] sm:$0xff]  ;;  %v4527_v44 = vld [vmem:[%s7553_s0 + $0x78] sm:$0xff]  ;;  %v4534_v45 = vld [vmem:[%s7553_s0 + $0x10] sm:$0xff] }
  0x10   :  { %129 = vmatpush.msra.mxu0 %v4397_v28  ;;  %170 = vmatpush.msra.mxu1 %v4402_v29  ;;  %v4504_v43 = vld [vmem:[%s7553_s0 + $0x8] sm:$0xff]  ;;  %v4557_v46 = vld [vmem:[%s7553_s0 + $0x80] sm:$0xff]  ;;  %v4564_v47 = vld [vmem:[%s7553_s0 + $0x18] sm:$0xff] }
  0x11   :  { %241 = vmatpush.msra.mxu2 %v4409_v30  ;;  %282 = vmatpush.msra.mxu3 %v4414_v31  ;;  %v4585_v48 = vld [vmem:[%s7553_s0 + $0x88] sm:$0xff]  ;;  %v4590_v49 = vld [vmem:[%s7553_s0 + $0x20] sm:$0xff]  ;;  %v4603_v50 = vld [vmem:[%s7553_s0 + $0x90] sm:$0xff] }
  0x12   :  { %130 = vmatpush.msra.mxu0 %v4421_v32  ;;  %171 = vmatpush.msra.mxu1 %v4426_v33  ;;  %v4608_v51 = vld [vmem:[%s7553_s0 + $0x28] sm:$0xff]  ;;  %v3461_v52 = vld [vmem:[%s7552_s1 + $0x1d0] sm:$0x7]  ;;  %v3462_v53 = vld [vmem:[%s7552_s1 + $0x1d8] sm:$0x7] }
  0x13   :  { %242 = vmatpush.msra.mxu2 %v4433_v34  ;;  %283 = vmatpush.msra.mxu3 %v4438_v35  ;;  %v4631_v54 = vld [vmem:[%s7553_s0 + $0x98] sm:$0xff]  ;;  %v4636_v55 = vld [vmem:[%s7553_s0 + $0x30] sm:$0xff]  ;;  %v3459_v56 = vld [vmem:[%s7552_s1 + $0x1c0] sm:$0xff] }
  0x14   :  { %131 = vmatpush.msra.mxu0 %v4445_v36  ;;  %172 = vmatpush.msra.mxu1 %v4450_v37  ;;  %v3460_v57 = vld [vmem:[%s7552_s1 + $0x1c8] sm:$0xff]  ;;  %v3457_v58 = vld [vmem:[%s7552_s1 + $0x1b0] sm:$0xff]  ;;  %v3458_v59 = vld [vmem:[%s7552_s1 + $0x1b8] sm:$0xff] }
  0x15   :  { %243 = vmatpush.msra.mxu2 %v4457_v38  ;;  %284 = vmatpush.msra.mxu3 %v4462_v39  ;;  %v4661_v60 = vld [vmem:[%s7553_s0 + $0xa0] sm:$0xff]  ;;  %v4666_v61 = vld [vmem:[%s7553_s0 + $0x38] sm:$0xff]  ;;  %v3456_v63 = vld [vmem:[%s7552_s1 + $0x1a8] sm:$0xff] }
  0x16   :  { %3364 = vmatmul.msk.f32.vlgmr.msra.gmra.mxu0 %vm84_vm1, %v4469_v40  ;;  %3373 = vmatmul.msk.f32.vlgmr.msra.gmra.mxu1 %vm84_vm1, %v4469_v40  ;;  %v3455_v62 = vld [vmem:[%s7552_s1 + $0x1a0] sm:$0xff] }
  0x17   :  { %3382 = vmatmul.msk.f32.vlgmr.msra.gmra.mxu2 %vm84_vm1, %v46_v41  ;;  %3391 = vmatmul.msk.f32.vlgmr.msra.gmra.mxu3 %vm84_vm1, %v46_v41 }
  0x18   :  { %3425 = vmatpush.msk.msrb.mxu2 %vm109_vm0, %v4239_v2  ;;  %3434 = vmatpush.msk.msrb.mxu3 %vm109_vm0, %v4248_v3  ;;  %v3451_v2 = vld [vmem:[%s7552_s1 + $0x180] sm:$0xff]  ;;  %v3452_v3 = vld [vmem:[%s7552_s1 + $0x188] sm:$0xff] }
  0x19   :  { %3407 = vmatpush.msk.msrb.mxu0 %vm109_vm0, %v4229_v0  ;;  %3416 = vmatpush.msk.msrb.mxu1 %vm109_vm0, %v4234_v1  ;;  %v3453_v0 = vld [vmem:[%s7552_s1 + $0x190] sm:$0xff]  ;;  %v3454_v1 = vld [vmem:[%s7552_s1 + $0x198] sm:$0xff] }
  0x1a   :  { %432 = vmatpush.msrb.mxu2 %v4267_v6  ;;  %473 = vmatpush.msrb.mxu3 %v4272_v7  ;;  %v3447_v6 = vld [vmem:[%s7552_s1 + $0x160] sm:$0xff]  ;;  %v3448_v7 = vld [vmem:[%s7552_s1 + $0x168] sm:$0xff] }
  0x1b   :  { %350 = vmatpush.msrb.mxu0 %v4253_v4  ;;  %391 = vmatpush.msrb.mxu1 %v4258_v5  ;;  %v3449_v4 = vld [vmem:[%s7552_s1 + $0x170] sm:$0xff]  ;;  %v3450_v5 = vld [vmem:[%s7552_s1 + $0x178] sm:$0xff] }
  0x1c   :  { %433 = vmatpush.msrb.mxu2 %v4289_v10  ;;  %474 = vmatpush.msrb.mxu3 %v4294_v11  ;;  %v3443_v10 = vld [vmem:[%s7552_s1 + $0x140] sm:$0xff]  ;;  %v3444_v11 = vld [vmem:[%s7552_s1 + $0x148] sm:$0xff] }
  0x1d   :  { %351 = vmatpush.msrb.mxu0 %v4277_v8  ;;  %392 = vmatpush.msrb.mxu1 %v4284_v9  ;;  %v3445_v8 = vld [vmem:[%s7552_s1 + $0x150] sm:$0xff]  ;;  %v3446_v9 = vld [vmem:[%s7552_s1 + $0x158] sm:$0xff] }
  0x1e   :  { %3365 = vmatmul.msk.f32.gmra.mxu0 %vm84_vm1, %v4497_v42  ;;  %3374 = vmatmul.msk.f32.gmra.mxu1 %vm84_vm1, %v4497_v42 }
  0x1f   :  { %3383 = vmatmul.msk.f32.gmra.mxu2 %vm84_vm1, %v4504_v43  ;;  %3392 = vmatmul.msk.f32.gmra.mxu3 %vm84_vm1, %v4504_v43 }
  0x20   :  { %434 = vmatpush.msrb.mxu2 %v4313_v14  ;;  %475 = vmatpush.msrb.mxu3 %v4318_v15  ;;  %v3523_v14 = vld [vmem:[%s7552_s1 + $0x260] sm:$0xff]  ;;  %v3524_v15 = vld [vmem:[%s7552_s1 + $0x268] sm:$0xff] }
  0x21   :  { %352 = vmatpush.msrb.mxu0 %v4301_v12  ;;  %393 = vmatpush.msrb.mxu1 %v4306_v13  ;;  %v3525_v12 = vld [vmem:[%s7552_s1 + $0x270] sm:$0x7]  ;;  %v3526_v13 = vld [vmem:[%s7552_s1 + $0x278] sm:$0x7] }
  0x22   :  { %435 = vmatpush.msrb.mxu2 %v4337_v18  ;;  %476 = vmatpush.msrb.mxu3 %v4342_v19  ;;  %v3522_v18 = vld [vmem:[%s7552_s1 + $0x258] sm:$0xff] }
  0x23   :  { %353 = vmatpush.msrb.mxu0 %v4325_v16  ;;  %394 = vmatpush.msrb.mxu1 %v4330_v17  ;;  %v4793_v16 = vld [vmem:[%s7553_s0 + $0x40] sm:$0xff]  ;;  %v3521_v17 = vld [vmem:[%s7552_s1 + $0x250] sm:$0xff] }
  0x24   :  { %436 = vmatpush.msrb.mxu2 %v4361_v22  ;;  %477 = vmatpush.msrb.mxu3 %v4366_v23  ;;  %v3520_v22 = vld [vmem:[%s7552_s1 + $0x248] sm:$0xff] }
  0x25   :  { %354 = vmatpush.msrb.mxu0 %v4349_v20  ;;  %395 = vmatpush.msrb.mxu1 %v4354_v21  ;;  %v3519_v21 = vld [vmem:[%s7552_s1 + $0x240] sm:$0xff] }
  0x26   :  { %3366 = vmatmul.msk.f32.gmra.mxu0 %vm84_vm1, %v4527_v44  ;;  %3375 = vmatmul.msk.f32.gmra.mxu1 %vm84_vm1, %v4527_v44 }
  0x27   :  { %3384 = vmatmul.msk.f32.gmra.mxu2 %vm84_vm1, %v4534_v45  ;;  %3393 = vmatmul.msk.f32.gmra.mxu3 %vm84_vm1, %v4534_v45 }
  0x28   :  { %437 = vmatpush.msrb.mxu2 %v4385_v26  ;;  %478 = vmatpush.msrb.mxu3 %v4390_v27 }
  0x29   :  { %355 = vmatpush.msrb.mxu0 %v4373_v24  ;;  %396 = vmatpush.msrb.mxu1 %v4378_v25 }
  0x2a   :  { %438 = vmatpush.msrb.mxu2 %v4409_v30  ;;  %479 = vmatpush.msrb.mxu3 %v4414_v31  ;;  %v3518_v30 = vld [vmem:[%s7552_s1 + $0x238] sm:$0xff]  ;;  %v3515_v31 = vld [vmem:[%s7552_s1 + $0x220] sm:$0xff] }
  0x2b   :  { %356 = vmatpush.msrb.mxu0 %v4397_v28  ;;  %397 = vmatpush.msrb.mxu1 %v4402_v29  ;;  %v3517_v29 = vld [vmem:[%s7552_s1 + $0x230] sm:$0xff] }
  0x2c   :  { %439 = vmatpush.msrb.mxu2 %v4433_v34  ;;  %480 = vmatpush.msrb.mxu3 %v4438_v35 }
  0x2d   :  { %357 = vmatpush.msrb.mxu0 %v4421_v32  ;;  %398 = vmatpush.msrb.mxu1 %v4426_v33  ;;  %v3516_v32 = vld [vmem:[%s7552_s1 + $0x228] sm:$0xff] }
  0x2e   :  { %3367 = vmatmul.msk.f32.gmra.mxu0 %vm84_vm1, %v4557_v46  ;;  %3376 = vmatmul.msk.f32.gmra.mxu1 %vm84_vm1, %v4557_v46 }
  0x2f   :  { %3385 = vmatmul.msk.f32.gmra.mxu2 %vm84_vm1, %v4564_v47  ;;  %3394 = vmatmul.msk.f32.gmra.mxu3 %vm84_vm1, %v4564_v47 }
  0x30   :  { %358 = vmatpush.msrb.mxu0 %v4445_v36  ;;  %399 = vmatpush.msrb.mxu1 %v4450_v37 }
  0x31   :  { %440 = vmatpush.msrb.mxu2 %v4457_v38  ;;  %481 = vmatpush.msrb.mxu3 %v4462_v39  ;;  %v3513_v39 = vld [vmem:[%s7552_s1 + $0x210] sm:$0xff] }
  0x32   :  { %3463 = vmatpush.msk.msra.mxu0 %vm109_vm0, %v3461_v52  ;;  %3472 = vmatpush.msk.msra.mxu1 %vm109_vm0, %v3462_v53 }
  0x33   :  { %3489 = vmatpush.msk.msra.mxu2 %vm109_vm0, %v3461_v52  ;;  %3498 = vmatpush.msk.msra.mxu3 %vm109_vm0, %v3462_v53 }
  0x34   :  { %541 = vmatpush.msra.mxu0 %v3459_v56  ;;  %582 = vmatpush.msra.mxu1 %v3460_v57 }
  0x35   :  { %672 = vmatpush.msra.mxu2 %v3459_v56  ;;  %713 = vmatpush.msra.mxu3 %v3460_v57 }
  0x36   :  { %3368 = vmatmul.msk.f32.gmra.mxu0 %vm84_vm1, %v4585_v48  ;;  %3377 = vmatmul.msk.f32.gmra.mxu1 %vm84_vm1, %v4585_v48 }
  0x37   :  { %3386 = vmatmul.msk.f32.gmra.mxu2 %vm84_vm1, %v4590_v49  ;;  %3395 = vmatmul.msk.f32.gmra.mxu3 %vm84_vm1, %v4590_v49 }
  0x38   :  { %673 = vmatpush.msra.mxu2 %v3457_v58  ;;  %714 = vmatpush.msra.mxu3 %v3458_v59 }
  0x39   :  { %542 = vmatpush.msra.mxu0 %v3457_v58  ;;  %583 = vmatpush.msra.mxu1 %v3458_v59  ;;  %v3511_v58 = vld [vmem:[%s7552_s1 + $0x200] sm:$0xff]  ;;  %v3512_v59 = vld [vmem:[%s7552_s1 + $0x208] sm:$0xff] }
  0x3a   :  { %674 = vmatpush.msra.mxu2 %v3455_v62  ;;  %715 = vmatpush.msra.mxu3 %v3456_v63 }
  0x3b   :  { %543 = vmatpush.msra.mxu0 %v3455_v62  ;;  %584 = vmatpush.msra.mxu1 %v3456_v63 }
  0x3c   :  { %675 = vmatpush.msra.mxu2 %v3453_v0  ;;  %716 = vmatpush.msra.mxu3 %v3454_v1 }
  0x3d   :  { %544 = vmatpush.msra.mxu0 %v3453_v0  ;;  %585 = vmatpush.msra.mxu1 %v3454_v1 }
  0x3e   :  { %3369 = vmatmul.msk.f32.gmra.mxu0 %vm84_vm1, %v4603_v50  ;;  %3378 = vmatmul.msk.f32.gmra.mxu1 %vm84_vm1, %v4603_v50 }
  0x3f   :  { %3387 = vmatmul.msk.f32.gmra.mxu2 %vm84_vm1, %v4608_v51  ;;  %3396 = vmatmul.msk.f32.gmra.mxu3 %vm84_vm1, %v4608_v51 }
  0x40   :  { %676 = vmatpush.msra.mxu2 %v3451_v2  ;;  %717 = vmatpush.msra.mxu3 %v3452_v3 }
  0x41   :  { %545 = vmatpush.msra.mxu0 %v3451_v2  ;;  %586 = vmatpush.msra.mxu1 %v3452_v3 }
  0x42   :  { %677 = vmatpush.msra.mxu2 %v3449_v4  ;;  %718 = vmatpush.msra.mxu3 %v3450_v5 }
  0x43   :  { %546 = vmatpush.msra.mxu0 %v3449_v4  ;;  %587 = vmatpush.msra.mxu1 %v3450_v5  ;;  %v3509_v4 = vld [vmem:[%s7552_s1 + $0x1f0] sm:$0xff]  ;;  %v3510_v5 = vld [vmem:[%s7552_s1 + $0x1f8] sm:$0xff] }
  0x44   :  { %678 = vmatpush.msra.mxu2 %v3447_v6  ;;  %719 = vmatpush.msra.mxu3 %v3448_v7 }
  0x45   :  { %547 = vmatpush.msra.mxu0 %v3447_v6  ;;  %588 = vmatpush.msra.mxu1 %v3448_v7  ;;  %v3507_v6 = vld [vmem:[%s7552_s1 + $0x1e0] sm:$0xff]  ;;  %v3508_v7 = vld [vmem:[%s7552_s1 + $0x1e8] sm:$0xff] }
  0x46   :  { %3370 = vmatmul.msk.f32.gmra.mxu0 %vm84_vm1, %v4631_v54  ;;  %3379 = vmatmul.msk.f32.gmra.mxu1 %vm84_vm1, %v4631_v54 }
  0x47   :  { %3388 = vmatmul.msk.f32.gmra.mxu2 %vm84_vm1, %v4636_v55  ;;  %3397 = vmatmul.msk.f32.gmra.mxu3 %vm84_vm1, %v4636_v55 }
  0x48   :  { %548 = vmatpush.msra.mxu0 %v3445_v8  ;;  %589 = vmatpush.msra.mxu1 %v3446_v9 }
  0x49   :  { %679 = vmatpush.msra.mxu2 %v3445_v8  ;;  %720 = vmatpush.msra.mxu3 %v3446_v9 }
  0x4a   :  { %549 = vmatpush.msra.mxu0 %v3443_v10  ;;  %590 = vmatpush.msra.mxu1 %v3444_v11 }
  0x4b   :  { %680 = vmatpush.msra.mxu2 %v3443_v10  ;;  %721 = vmatpush.msra.mxu3 %v3444_v11 }
  0x4e   :  { %3371 = vmatmul.msk.f32.gmra.mxu0 %vm84_vm1, %v4661_v60  ;;  %3380 = vmatmul.msk.f32.gmra.mxu1 %vm84_vm1, %v4661_v60 }
  0x4f   :  { %3389 = vmatmul.msk.f32.gmra.mxu2 %vm84_vm1, %v4666_v61  ;;  %3398 = vmatmul.msk.f32.gmra.mxu3 %vm84_vm1, %v4666_v61 }
  0x56   :  { %3408 = vmatmul.msk.f32.vlgmr.msrb.gmra.mxu0 %vm84_vm1, %v4504_v43  ;;  %3417 = vmatmul.msk.f32.vlgmr.msrb.gmra.mxu1 %vm84_vm1, %v4504_v43 }
  0x57   :  { %3426 = vmatmul.msk.f32.vlgmr.msrb.gmra.mxu2 %vm84_vm1, %v4469_v40  ;;  %3435 = vmatmul.msk.f32.vlgmr.msrb.gmra.mxu3 %vm84_vm1, %v4469_v40  ;;  %v3514_v40 = vld [vmem:[%s7552_s1 + $0x218] sm:$0xff] }
  0x58   :  { %3553 = vmatpush.msk.msrb.mxu2 %vm109_vm0, %v3525_v12  ;;  %3562 = vmatpush.msk.msrb.mxu3 %vm109_vm0, %v3526_v13 }
  0x59   :  { %3527 = vmatpush.msk.msrb.mxu0 %vm109_vm0, %v3525_v12  ;;  %3536 = vmatpush.msk.msrb.mxu1 %vm109_vm0, %v3526_v13 }
  0x5a   :  { %928 = vmatpush.msrb.mxu2 %v3523_v14  ;;  %969 = vmatpush.msrb.mxu3 %v3524_v15 }
  0x5b   :  { %797 = vmatpush.msrb.mxu0 %v3523_v14  ;;  %838 = vmatpush.msrb.mxu1 %v3524_v15  ;;  %v3589_v14 = vld [vmem:[%s7552_s1 + $0x310] sm:$0x7]  ;;  %v3590_v15 = vld [vmem:[%s7552_s1 + $0x318] sm:$0x7] }
  0x5c   :  { %929 = vmatpush.msrb.mxu2 %v3521_v17  ;;  %970 = vmatpush.msrb.mxu3 %v3522_v18 }
  0x5d   :  { %798 = vmatpush.msrb.mxu0 %v3521_v17  ;;  %839 = vmatpush.msrb.mxu1 %v3522_v18 }
  0x5e   :  { %3409 = vmatmul.msk.f32.gmra.mxu0 %vm84_vm1, %v4534_v45  ;;  %3418 = vmatmul.msk.f32.gmra.mxu1 %vm84_vm1, %v4534_v45 }
  0x5f   :  { %3427 = vmatmul.msk.f32.gmra.mxu2 %vm84_vm1, %v4497_v42  ;;  %3436 = vmatmul.msk.f32.gmra.mxu3 %vm84_vm1, %v4497_v42 }
  0x60   :  { %930 = vmatpush.msrb.mxu2 %v3519_v21  ;;  %971 = vmatpush.msrb.mxu3 %v3520_v22 }
  0x61   :  { %799 = vmatpush.msrb.mxu0 %v3519_v21  ;;  %840 = vmatpush.msrb.mxu1 %v3520_v22 }
  0x62   :  { %931 = vmatpush.msrb.mxu2 %v3517_v29  ;;  %972 = vmatpush.msrb.mxu3 %v3518_v30 }
  0x63   :  { %800 = vmatpush.msrb.mxu0 %v3517_v29  ;;  %841 = vmatpush.msrb.mxu1 %v3518_v30 }
  0x64   :  { %932 = vmatpush.msrb.mxu2 %v3515_v31  ;;  %973 = vmatpush.msrb.mxu3 %v3516_v32 }
  0x65   :  { %801 = vmatpush.msrb.mxu0 %v3515_v31  ;;  %842 = vmatpush.msrb.mxu1 %v3516_v32 }
  0x66   :  { %3410 = vmatmul.msk.f32.gmra.mxu0 %vm84_vm1, %v4564_v47  ;;  %3419 = vmatmul.msk.f32.gmra.mxu1 %vm84_vm1, %v4564_v47 }
  0x67   :  { %3428 = vmatmul.msk.f32.gmra.mxu2 %vm84_vm1, %v4527_v44  ;;  %3437 = vmatmul.msk.f32.gmra.mxu3 %vm84_vm1, %v4527_v44 }
  0x68   :  { %933 = vmatpush.msrb.mxu2 %v3513_v39  ;;  %974 = vmatpush.msrb.mxu3 %v3514_v40 }
  0x69   :  { %802 = vmatpush.msrb.mxu0 %v3513_v39  ;;  %843 = vmatpush.msrb.mxu1 %v3514_v40 }
  0x6a   :  { %934 = vmatpush.msrb.mxu2 %v3511_v58  ;;  %975 = vmatpush.msrb.mxu3 %v3512_v59 }
  0x6b   :  { %803 = vmatpush.msrb.mxu0 %v3511_v58  ;;  %844 = vmatpush.msrb.mxu1 %v3512_v59  ;;  %v3584_v58 = vld [vmem:[%s7552_s1 + $0x2e8] sm:$0xff] }
  0x6c   :  { %935 = vmatpush.msrb.mxu2 %v3509_v4  ;;  %976 = vmatpush.msrb.mxu3 %v3510_v5 }
  0x6d   :  { %804 = vmatpush.msrb.mxu0 %v3509_v4  ;;  %845 = vmatpush.msrb.mxu1 %v3510_v5  ;;  %v3581_v5 = vld [vmem:[%s7552_s1 + $0x2d0] sm:$0xff] }
  0x6e   :  { %3411 = vmatmul.msk.f32.gmra.mxu0 %vm84_vm1, %v4590_v49  ;;  %3420 = vmatmul.msk.f32.gmra.mxu1 %vm84_vm1, %v4590_v49 }
  0x6f   :  { %3429 = vmatmul.msk.f32.gmra.mxu2 %vm84_vm1, %v4557_v46  ;;  %3438 = vmatmul.msk.f32.gmra.mxu3 %vm84_vm1, %v4557_v46 }
  0x70   :  { %805 = vmatpush.msrb.mxu0 %v3507_v6  ;;  %846 = vmatpush.msrb.mxu1 %v3508_v7 }
  0x71   :  { %936 = vmatpush.msrb.mxu2 %v3507_v6  ;;  %977 = vmatpush.msrb.mxu3 %v3508_v7  ;;  %v3579_v6 = vld [vmem:[%s7552_s1 + $0x2c0] sm:$0xff]  ;;  %v3580_v7 = vld [vmem:[%s7552_s1 + $0x2c8] sm:$0xff] }
  0x76   :  { %3412 = vmatmul.msk.f32.gmra.mxu0 %vm84_vm1, %v4608_v51  ;;  %3421 = vmatmul.msk.f32.gmra.mxu1 %vm84_vm1, %v4608_v51 }
  0x77   :  { %3430 = vmatmul.msk.f32.gmra.mxu2 %vm84_vm1, %v4585_v48  ;;  %3439 = vmatmul.msk.f32.gmra.mxu3 %vm84_vm1, %v4585_v48 }
  0x7e   :  { %3413 = vmatmul.msk.f32.gmra.mxu0 %vm84_vm1, %v4636_v55  ;;  %3422 = vmatmul.msk.f32.gmra.mxu1 %vm84_vm1, %v4636_v55 }
  0x7f   :  { %3431 = vmatmul.msk.f32.gmra.mxu2 %vm84_vm1, %v4603_v50  ;;  %3440 = vmatmul.msk.f32.gmra.mxu3 %vm84_vm1, %v4603_v50 }
  0x86   :  { %3414 = vmatmul.msk.f32.gmra.mxu0 %vm84_vm1, %v4666_v61  ;;  %3423 = vmatmul.msk.f32.gmra.mxu1 %vm84_vm1, %v4666_v61 }
  0x87   :  { %3432 = vmatmul.msk.f32.gmra.mxu2 %vm84_vm1, %v4631_v54  ;;  %3441 = vmatmul.msk.f32.gmra.mxu3 %vm84_vm1, %v4631_v54 }
  0x8e   :  { %3415 = vmatmul.msk.f32.gmra.mxu0 %vm84_vm1, %v4793_v16  ;;  %3424 = vmatmul.msk.f32.gmra.mxu1 %vm84_vm1, %v4793_v16 }
  0x8f   :  { %3433 = vmatmul.msk.f32.gmra.mxu2 %vm84_vm1, %v4661_v60  ;;  %3442 = vmatmul.msk.f32.gmra.mxu3 %vm84_vm1, %v4661_v60 }
  0x93   :  { %v133_v19 = vpop.f32.mrf.mxu0  ;;  %v174_v20 = vpop.f32.mrf.mxu1 }
  0x96   :  { %3464 = vmatmul.msk.f32.vlgmr.msra.gmra.mxu0 %vm84_vm1, %v4504_v43  ;;  %3473 = vmatmul.msk.f32.vlgmr.msra.gmra.mxu1 %vm84_vm1, %v4504_v43 }
  0x97   :  { %3490 = vmatmul.msk.f32.vlgmr.msra.gmra.mxu2 %vm84_vm1, %v4497_v42  ;;  %3499 = vmatmul.msk.f32.vlgmr.msra.gmra.mxu3 %vm84_vm1, %v4497_v42 }
  0x98   :  { %3617 = vmatpush.msk.msra.mxu2 %vm109_vm0, %v3589_v14  ;;  %3626 = vmatpush.msk.msra.mxu3 %vm109_vm0, %v3590_v15 }
  0x99   :  { %3591 = vmatpush.msk.msra.mxu0 %vm109_vm0, %v3589_v14  ;;  %3600 = vmatpush.msk.msra.mxu1 %vm109_vm0, %v3590_v15 }
  0x9a   :  { %v245_v23 = vpop.f32.mrf.mxu2  ;;  %v286_v24 = vpop.f32.mrf.mxu3 }
  0x9b   :  { %v4823_v25 = vadd.f32 %v245_v23, %v133_v19  ;;  %v4825_v26 = vadd.f32 %v286_v24, %v174_v20  ;;  %v136_v27 = vpop.f32.mrf.mxu0  ;;  %v177_v28 = vpop.f32.mrf.mxu1  ;;  %v3587_v23 = vld [vmem:[%s7552_s1 + $0x300] sm:$0xff]  ;;  %v3588_v24 = vld [vmem:[%s7552_s1 + $0x308] sm:$0xff] }
  0x9c   :  { %1184 = vmatpush.msra.mxu2 %v3587_v23  ;;  %1225 = vmatpush.msra.mxu3 %v3588_v24 }
  0x9d   :  { %7560 = vst [vmem:[#allocation2_spill] sm:$0xff] %v4823_v25  ;;  %1053 = vmatpush.msra.mxu0 %v3587_v23  ;;  %1094 = vmatpush.msra.mxu1 %v3588_v24  ;;  %v5608_v25 = vld [vmem:[%s7553_s0 + $0x80] sm:$0xff] }
  0x9e   :  { %7561 = vst [vmem:[#allocation3_spill] sm:$0xff] %v4825_v26  ;;  %3465 = vmatmul.msk.f32.gmra.mxu0 %vm84_vm1, %v4534_v45  ;;  %3474 = vmatmul.msk.f32.gmra.mxu1 %vm84_vm1, %v4534_v45 }
  0x9f   :  { %3491 = vmatmul.msk.f32.gmra.mxu2 %vm84_vm1, %v4527_v44  ;;  %3500 = vmatmul.msk.f32.gmra.mxu3 %vm84_vm1, %v4527_v44 }
  0xa2   :  { %v248_v33 = vpop.f32.mrf.mxu2  ;;  %v289_v34 = vpop.f32.mrf.mxu3 }
  0xa3   :  { %v4847_v35 = vadd.f32 %v248_v33, %v136_v27  ;;  %v4849_v36 = vadd.f32 %v289_v34, %v177_v28  ;;  %v139_v37 = vpop.f32.mrf.mxu0  ;;  %v180_v38 = vpop.f32.mrf.mxu1  ;;  %v3585_v33 = vld [vmem:[%s7552_s1 + $0x2f0] sm:$0xff]  ;;  %v3586_v34 = vld [vmem:[%s7552_s1 + $0x2f8] sm:$0xff] }
  0xa4   :  { %1185 = vmatpush.msra.mxu2 %v3585_v33  ;;  %1226 = vmatpush.msra.mxu3 %v3586_v34 }
  0xa5   :  { %7562 = vst [vmem:[#allocation4_spill] sm:$0xff] %v4847_v35  ;;  %1054 = vmatpush.msra.mxu0 %v3585_v33  ;;  %1095 = vmatpush.msra.mxu1 %v3586_v34 }
  0xa6   :  { %7563 = vst [vmem:[#allocation5_spill] sm:$0xff] %v4849_v36  ;;  %3466 = vmatmul.msk.f32.gmra.mxu0 %vm84_vm1, %v4564_v47  ;;  %3475 = vmatmul.msk.f32.gmra.mxu1 %vm84_vm1, %v4564_v47 }
  0xa7   :  { %3492 = vmatmul.msk.f32.gmra.mxu2 %vm84_vm1, %v4557_v46  ;;  %3501 = vmatmul.msk.f32.gmra.mxu3 %vm84_vm1, %v4557_v46 }
  0xa8   :  { %1227 = vmatpush.msra.mxu3 %v3584_v58  ;;  %1096 = vmatpush.msra.mxu1 %v3584_v58  ;;  %v3574_v58 = vld [vmem:[%s7552_s1 + $0x298] sm:$0xff] }
  0xaa   :  { %v251_v41 = vpop.f32.mrf.mxu2  ;;  %v292_v43 = vpop.f32.mrf.mxu3 }
  0xab   :  { %v4865_v52 = vadd.f32 %v251_v41, %v139_v37  ;;  %v4867_v53 = vadd.f32 %v292_v43, %v180_v38  ;;  %v142_v56 = vpop.f32.mrf.mxu0  ;;  %v183_v57 = vpop.f32.mrf.mxu1  ;;  %v4960_v37 = vld [vmem:[%s7553_s0 + $0xa8] sm:$0xff] }
  0xad   :  { %7564 = vst [vmem:[#allocation6_spill] sm:$0xff] %v4865_v52 }
  0xae   :  { %7565 = vst [vmem:[#allocation7_spill] sm:$0xff] %v4867_v53  ;;  %3467 = vmatmul.msk.f32.gmra.mxu0 %vm84_vm1, %v4590_v49  ;;  %3476 = vmatmul.msk.f32.gmra.mxu1 %vm84_vm1, %v4590_v49  ;;  %v5425_v53 = vld [vmem:[%s7553_s0 + $0x28] sm:$0xff] }
  0xaf   :  { %3493 = vmatmul.msk.f32.gmra.mxu2 %vm84_vm1, %v4585_v48  ;;  %3502 = vmatmul.msk.f32.gmra.mxu3 %vm84_vm1, %v4585_v48 }
  0xb2   :  { %v254_v62 = vpop.f32.mrf.mxu2  ;;  %v295_v63 = vpop.f32.mrf.mxu3 }
  0xb3   :  { %v4883_v0 = vadd.f32 %v254_v62, %v142_v56  ;;  %v4885_v1 = vadd.f32 %v295_v63, %v183_v57  ;;  %v145_v2 = vpop.f32.mrf.mxu0  ;;  %v186_v3 = vpop.f32.mrf.mxu1  ;;  %v3583_v57 = vld [vmem:[%s7552_s1 + $0x2e0] sm:$0xff] }
  0xb4   :  { %1186 = vmatpush.msra.mxu2 %v3583_v57  ;;  %1055 = vmatpush.msra.mxu0 %v3583_v57  ;;  %v3573_v57 = vld [vmem:[%s7552_s1 + $0x290] sm:$0xff] }
  0xb5   :  { %7566 = vst [vmem:[#allocation8_spill] sm:$0xff] %v4883_v0 }
  0xb6   :  { %7567 = vst [vmem:[#allocation9_spill] sm:$0xff] %v4885_v1  ;;  %3468 = vmatmul.msk.f32.gmra.mxu0 %vm84_vm1, %v4608_v51  ;;  %3477 = vmatmul.msk.f32.gmra.mxu1 %vm84_vm1, %v4608_v51 }
  0xb7   :  { %3494 = vmatmul.msk.f32.gmra.mxu2 %vm84_vm1, %v4603_v50  ;;  %3503 = vmatmul.msk.f32.gmra.mxu3 %vm84_vm1, %v4603_v50 }
  0xb8   :  { %1187 = vmatpush.msra.mxu2 %v3581_v5  ;;  %1056 = vmatpush.msra.mxu0 %v3581_v5 }
  0xba   :  { %v257_v8 = vpop.f32.mrf.mxu2  ;;  %v298_v9 = vpop.f32.mrf.mxu3  ;;  %1188 = vmatpush.msra.mxu2 %v3579_v6  ;;  %1057 = vmatpush.msra.mxu0 %v3579_v6 }
  0xbb   :  { %v4907_v10 = vadd.f32 %v257_v8, %v145_v2  ;;  %v4909_v11 = vadd.f32 %v298_v9, %v186_v3  ;;  %v148_v12 = vpop.f32.mrf.mxu0  ;;  %v189_v13 = vpop.f32.mrf.mxu1 }
  0xbd   :  { %7568 = vst [vmem:[#allocation10_spill] sm:$0xff] %v4907_v10  ;;  %v5765_v10 = vld [vmem:[%s7553_s0 + $0xa8] sm:$0xff] }
  0xbe   :  { %7569 = vst [vmem:[#allocation11_spill] sm:$0xff] %v4909_v11  ;;  %3469 = vmatmul.msk.f32.gmra.mxu0 %vm84_vm1, %v4636_v55  ;;  %3478 = vmatmul.msk.f32.gmra.mxu1 %vm84_vm1, %v4636_v55 }
  0xbf   :  { %3495 = vmatmul.msk.f32.gmra.mxu2 %vm84_vm1, %v4631_v54  ;;  %3504 = vmatmul.msk.f32.gmra.mxu3 %vm84_vm1, %v4631_v54 }
  0xc2   :  { %v260_v17 = vpop.f32.mrf.mxu2  ;;  %v301_v18 = vpop.f32.mrf.mxu3 }
  0xc3   :  { %v4929_v19 = vadd.f32 %v260_v17, %v148_v12  ;;  %v4931_v20 = vadd.f32 %v301_v18, %v189_v13  ;;  %v151_v21 = vpop.f32.mrf.mxu0  ;;  %v192_v22 = vpop.f32.mrf.mxu1  ;;  %v3577_v17 = vld [vmem:[%s7552_s1 + $0x2b0] sm:$0xff]  ;;  %v3578_v18 = vld [vmem:[%s7552_s1 + $0x2b8] sm:$0xff] }
  0xc4   :  { %1189 = vmatpush.msra.mxu2 %v3577_v17  ;;  %1058 = vmatpush.msra.mxu0 %v3577_v17 }
  0xc6   :  { %3470 = vmatmul.msk.f32.gmra.mxu0 %vm84_vm1, %v4666_v61  ;;  %3479 = vmatmul.msk.f32.gmra.mxu1 %vm84_vm1, %v4666_v61 }
  0xc7   :  { %3496 = vmatmul.msk.f32.gmra.mxu2 %vm84_vm1, %v4661_v60  ;;  %3505 = vmatmul.msk.f32.gmra.mxu3 %vm84_vm1, %v4661_v60 }
  0xca   :  { %v263_v27 = vpop.f32.mrf.mxu2  ;;  %v304_v28 = vpop.f32.mrf.mxu3 }
  0xcb   :  { %v4947_v29 = vadd.f32 %v263_v27, %v151_v21  ;;  %v4949_v30 = vadd.f32 %v304_v28, %v192_v22  ;;  %v154_v31 = vpop.f32.mrf.mxu0  ;;  %v195_v32 = vpop.f32.mrf.mxu1 }
  0xce   :  { %3471 = vmatmul.msk.f32.gmra.mxu0 %vm84_vm1, %v4793_v16  ;;  %3480 = vmatmul.msk.f32.gmra.mxu1 %vm84_vm1, %v4793_v16 }
  0xcf   :  { %3497 = vmatmul.msk.f32.gmra.mxu2 %vm84_vm1, %v4960_v37  ;;  %3506 = vmatmul.msk.f32.gmra.mxu3 %vm84_vm1, %v4960_v37 }
  0xd2   :  { %v266_v38 = vpop.f32.mrf.mxu2  ;;  %v307_v39 = vpop.f32.mrf.mxu3 }
  0xd3   :  { %v4970_v40 = vadd.f32 %v266_v38, %v154_v31  ;;  %v4972_v41 = vadd.f32 %v307_v39, %v195_v32  ;;  %v360_v43 = vpop.f32.mrf.mxu0  ;;  %v401_v56 = vpop.f32.mrf.mxu1  ;;  %v3575_v31 = vld [vmem:[%s7552_s1 + $0x2a0] sm:$0xff]  ;;  %v3576_v32 = vld [vmem:[%s7552_s1 + $0x2a8] sm:$0xff] }
  0xd4   :  { %1190 = vmatpush.msra.mxu2 %v3575_v31  ;;  %1059 = vmatpush.msra.mxu0 %v3575_v31 }
  0xd6   :  { %3528 = vmatmul.msk.f32.vlgmr.msrb.gmra.mxu0 %vm84_vm1, %v4497_v42  ;;  %3537 = vmatmul.msk.f32.vlgmr.msrb.gmra.mxu1 %vm84_vm1, %v4497_v42  ;;  %v3582_v42 = vld [vmem:[%s7552_s1 + $0x2d8] sm:$0xff] }
  0xd7   :  { %3554 = vmatmul.msk.f32.vlgmr.msrb.gmra.mxu2 %vm84_vm1, %v4534_v45  ;;  %3563 = vmatmul.msk.f32.vlgmr.msrb.gmra.mxu3 %vm84_vm1, %v4534_v45 }
  0xd8   :  { %1228 = vmatpush.msra.mxu3 %v3582_v42  ;;  %1097 = vmatpush.msra.mxu1 %v3582_v42 }
  0xd9   :  { %1060 = vmatpush.msra.mxu0 %v3573_v57  ;;  %1191 = vmatpush.msra.mxu2 %v3573_v57  ;;  %v5119_v57 = vld [vmem:[%s7553_s0 + $0x48] sm:$0xff] }
  0xda   :  { %v442_v59 = vpop.f32.mrf.mxu2  ;;  %v483_v62 = vpop.f32.mrf.mxu3  ;;  %1229 = vmatpush.msra.mxu3 %v3580_v7  ;;  %1098 = vmatpush.msra.mxu1 %v3580_v7 }
  0xdb   :  { %v4988_v63 = vadd.f32 %v442_v59, %v360_v43  ;;  %v4990_v2 = vadd.f32 %v483_v62, %v401_v56  ;;  %v363_v3 = vpop.f32.mrf.mxu0  ;;  %v404_v4 = vpop.f32.mrf.mxu1  ;;  %v3571_v59 = vld [vmem:[%s7552_s1 + $0x280] sm:$0xff]  ;;  %v3572_v62 = vld [vmem:[%s7552_s1 + $0x288] sm:$0xff] }
  0xdc   :  { %1230 = vmatpush.msra.mxu3 %v3578_v18  ;;  %1099 = vmatpush.msra.mxu1 %v3578_v18 }
  0xdd   :  { %1061 = vmatpush.msra.mxu0 %v3571_v59  ;;  %1192 = vmatpush.msra.mxu2 %v3571_v59  ;;  %v3650_v59 = vld [vmem:[%s7552_s1 + $0x398] sm:$0xff] }
  0xde   :  { %3529 = vmatmul.msk.f32.gmra.mxu0 %vm84_vm1, %v4527_v44  ;;  %3538 = vmatmul.msk.f32.gmra.mxu1 %vm84_vm1, %v4527_v44 }
  0xdf   :  { %3555 = vmatmul.msk.f32.gmra.mxu2 %vm84_vm1, %v4564_v47  ;;  %3564 = vmatmul.msk.f32.gmra.mxu3 %vm84_vm1, %v4564_v47 }
  0xe0   :  { %1231 = vmatpush.msra.mxu3 %v3576_v32  ;;  %1100 = vmatpush.msra.mxu1 %v3576_v32 }
  0xe2   :  { %v445_v8 = vpop.f32.mrf.mxu2  ;;  %v486_v9 = vpop.f32.mrf.mxu3  ;;  %1101 = vmatpush.msra.mxu1 %v3574_v58  ;;  %1232 = vmatpush.msra.mxu3 %v3574_v58  ;;  %v3649_v58 = vld [vmem:[%s7552_s1 + $0x390] sm:$0xff] }
  0xe3   :  { %v5012_v12 = vadd.f32 %v445_v8, %v363_v3  ;;  %v5014_v13 = vadd.f32 %v486_v9, %v404_v4  ;;  %v366_v14 = vpop.f32.mrf.mxu0  ;;  %v407_v15 = vpop.f32.mrf.mxu1  ;;  %v3653_v8 = vld [vmem:[%s7552_s1 + $0x3b0] sm:$0x7]  ;;  %v3654_v9 = vld [vmem:[%s7552_s1 + $0x3b8] sm:$0x7] }
  0xe4   :  { %1102 = vmatpush.msra.mxu1 %v3572_v62  ;;  %1233 = vmatpush.msra.mxu3 %v3572_v62 }
  0xe5   :  { %3681 = vmatpush.msk.msrb.mxu2 %vm109_vm0, %v3653_v8  ;;  %3655 = vmatpush.msk.msrb.mxu0 %vm109_vm0, %v3653_v8 }
  0xe6   :  { %3530 = vmatmul.msk.f32.gmra.mxu0 %vm84_vm1, %v4557_v46  ;;  %3539 = vmatmul.msk.f32.gmra.mxu1 %vm84_vm1, %v4557_v46 }
  0xe7   :  { %3556 = vmatmul.msk.f32.gmra.mxu2 %vm84_vm1, %v4590_v49  ;;  %3565 = vmatmul.msk.f32.gmra.mxu3 %vm84_vm1, %v4590_v49 }
  0xe8   :  { %3690 = vmatpush.msk.msrb.mxu3 %vm109_vm0, %v3654_v9  ;;  %3664 = vmatpush.msk.msrb.mxu1 %vm109_vm0, %v3654_v9  ;;  %v3647_v9 = vld [vmem:[%s7552_s1 + $0x380] sm:$0xff] }
  0xea   :  { %v448_v21 = vpop.f32.mrf.mxu2  ;;  %v489_v22 = vpop.f32.mrf.mxu3 }
  0xeb   :  { %v5030_v23 = vadd.f32 %v448_v21, %v366_v14  ;;  %v5032_v24 = vadd.f32 %v489_v22, %v407_v15  ;;  %v369_v27 = vpop.f32.mrf.mxu0  ;;  %v410_v28 = vpop.f32.mrf.mxu1 }
  0xee   :  { %3531 = vmatmul.msk.f32.gmra.mxu0 %vm84_vm1, %v4585_v48  ;;  %3540 = vmatmul.msk.f32.gmra.mxu1 %vm84_vm1, %v4585_v48 }
  0xef   :  { %3557 = vmatmul.msk.f32.gmra.mxu2 %vm84_vm1, %v4608_v51  ;;  %3566 = vmatmul.msk.f32.gmra.mxu3 %vm84_vm1, %v4608_v51 }
  0xf2   :  { %v451_v33 = vpop.f32.mrf.mxu2  ;;  %v492_v34 = vpop.f32.mrf.mxu3 }
  0xf3   :  { %v5048_v38 = vadd.f32 %v451_v33, %v369_v27  ;;  %v5050_v39 = vadd.f32 %v492_v34, %v410_v28  ;;  %v372_v43 = vpop.f32.mrf.mxu0  ;;  %v413_v56 = vpop.f32.mrf.mxu1  ;;  %v3651_v27 = vld [vmem:[%s7552_s1 + $0x3a0] sm:$0xff]  ;;  %v3652_v28 = vld [vmem:[%s7552_s1 + $0x3a8] sm:$0xff] }
  0xf4   :  { %1440 = vmatpush.msrb.mxu2 %v3651_v27  ;;  %1481 = vmatpush.msrb.mxu3 %v3652_v28 }
  0xf5   :  { %1309 = vmatpush.msrb.mxu0 %v3651_v27  ;;  %1350 = vmatpush.msrb.mxu1 %v3652_v28 }
  0xf6   :  { %3532 = vmatmul.msk.f32.gmra.mxu0 %vm84_vm1, %v4603_v50  ;;  %3541 = vmatmul.msk.f32.gmra.mxu1 %vm84_vm1, %v4603_v50 }
  0xf7   :  { %3558 = vmatmul.msk.f32.gmra.mxu2 %vm84_vm1, %v4636_v55  ;;  %3567 = vmatmul.msk.f32.gmra.mxu3 %vm84_vm1, %v4636_v55 }
  0xf8   :  { %1441 = vmatpush.msrb.mxu2 %v3649_v58  ;;  %1482 = vmatpush.msrb.mxu3 %v3650_v59 }
  0xf9   :  { %1310 = vmatpush.msrb.mxu0 %v3649_v58  ;;  %1351 = vmatpush.msrb.mxu1 %v3650_v59 }
  0xfa   :  { %v454_v3 = vpop.f32.mrf.mxu2  ;;  %v495_v4 = vpop.f32.mrf.mxu3  ;;  %1442 = vmatpush.msrb.mxu2 %v3647_v9 }
  0xfb   :  { %v5072_v5 = vadd.f32 %v454_v3, %v372_v43  ;;  %v5074_v42 = vadd.f32 %v495_v4, %v413_v56  ;;  %v375_v6 = vpop.f32.mrf.mxu0  ;;  %v416_v7 = vpop.f32.mrf.mxu1  ;;  %1311 = vmatpush.msrb.mxu0 %v3647_v9 }
  0xfe   :  { %3533 = vmatmul.msk.f32.gmra.mxu0 %vm84_vm1, %v4631_v54  ;;  %3542 = vmatmul.msk.f32.gmra.mxu1 %vm84_vm1, %v4631_v54 }
  0xff   :  { %3559 = vmatmul.msk.f32.gmra.mxu2 %vm84_vm1, %v4666_v61  ;;  %3568 = vmatmul.msk.f32.gmra.mxu3 %vm84_vm1, %v4666_v61 }
 0x102   :  { %v457_v14 = vpop.f32.mrf.mxu2  ;;  %v498_v15 = vpop.f32.mrf.mxu3 }
 0x103   :  { %v5094_v17 = vadd.f32 %v457_v14, %v375_v6  ;;  %v5096_v18 = vadd.f32 %v498_v15, %v416_v7  ;;  %v378_v21 = vpop.f32.mrf.mxu0  ;;  %v419_v22 = vpop.f32.mrf.mxu1  ;;  %v3648_v14 = vld [vmem:[%s7552_s1 + $0x388] sm:$0xff] }
 0x104   :  { %1483 = vmatpush.msrb.mxu3 %v3648_v14  ;;  %1352 = vmatpush.msrb.mxu1 %v3648_v14  ;;  %v3639_v14 = vld [vmem:[%s7552_s1 + $0x340] sm:$0xff] }
 0x106   :  { %3534 = vmatmul.msk.f32.gmra.mxu0 %vm84_vm1, %v4661_v60  ;;  %3543 = vmatmul.msk.f32.gmra.mxu1 %vm84_vm1, %v4661_v60 }
 0x107   :  { %3560 = vmatmul.msk.f32.gmra.mxu2 %vm84_vm1, %v4793_v16  ;;  %3569 = vmatmul.msk.f32.gmra.mxu3 %vm84_vm1, %v4793_v16 }
 0x10a   :  { %v460_v31 = vpop.f32.mrf.mxu2  ;;  %v501_v32 = vpop.f32.mrf.mxu3 }
 0x10b   :  { %v5112_v33 = vadd.f32 %v460_v31, %v378_v21  ;;  %v5114_v34 = vadd.f32 %v501_v32, %v419_v22  ;;  %v381_v43 = vpop.f32.mrf.mxu0  ;;  %v422_v56 = vpop.f32.mrf.mxu1 }
 0x10e   :  { %3535 = vmatmul.msk.f32.gmra.mxu0 %vm84_vm1, %v4960_v37  ;;  %3544 = vmatmul.msk.f32.gmra.mxu1 %vm84_vm1, %v4960_v37 }
 0x10f   :  { %3561 = vmatmul.msk.f32.gmra.mxu2 %vm84_vm1, %v5119_v57  ;;  %3570 = vmatmul.msk.f32.gmra.mxu3 %vm84_vm1, %v5119_v57 }
 0x112   :  { %v463_v62 = vpop.f32.mrf.mxu2  ;;  %v504_v3 = vpop.f32.mrf.mxu3 }
 0x113   :  { %v5135_v4 = vadd.f32 %v463_v62, %v381_v43  ;;  %v5137_v6 = vadd.f32 %v504_v3, %v422_v56  ;;  %v5139_v7 = vpop.f32.mrf.mxu0  ;;  %v5141_v8 = vpop.f32.mrf.mxu1 }
 0x114   :  { %7570 = vst [vmem:[#allocation12_spill] sm:$0xff] %v5139_v7 }
 0x115   :  { %7571 = vst [vmem:[#allocation13_spill] sm:$0xff] %v5141_v8  ;;  %v5579_v8 = vld [vmem:[%s7553_s0 + $0x50] sm:$0xff] }
 0x116   :  { %3592 = vmatmul.msk.f32.vlgmr.msra.gmra.mxu0 %vm84_vm1, %v4534_v45  ;;  %3601 = vmatmul.msk.f32.vlgmr.msra.gmra.mxu1 %vm84_vm1, %v4534_v45  ;;  %v3645_v45 = vld [vmem:[%s7552_s1 + $0x370] sm:$0xff] }
 0x117   :  { %3618 = vmatmul.msk.f32.vlgmr.msra.gmra.mxu2 %vm84_vm1, %v4527_v44  ;;  %3627 = vmatmul.msk.f32.vlgmr.msra.gmra.mxu3 %vm84_vm1, %v4527_v44  ;;  %v3646_v44 = vld [vmem:[%s7552_s1 + $0x378] sm:$0xff] }
 0x118   :  { %1443 = vmatpush.msrb.mxu2 %v3645_v45  ;;  %1484 = vmatpush.msrb.mxu3 %v3646_v44 }
 0x119   :  { %1312 = vmatpush.msrb.mxu0 %v3645_v45  ;;  %1353 = vmatpush.msrb.mxu1 %v3646_v44 }
 0x11a   :  { %v682_v15 = vpop.f32.mrf.mxu2  ;;  %v723_v21 = vpop.f32.mrf.mxu3 }
 0x11b   :  { %v5158_v22 = vadd.f32 %v682_v15, %v4988_v63  ;;  %v5161_v27 = vadd.f32 %v723_v21, %v4990_v2  ;;  %v5163_v28 = vpop.f32.mrf.mxu0  ;;  %v5165_v31 = vpop.f32.mrf.mxu1  ;;  %v3643_v63 = vld [vmem:[%s7552_s1 + $0x360] sm:$0xff]  ;;  %v3644_v2 = vld [vmem:[%s7552_s1 + $0x368] sm:$0xff] }
 0x11c   :  { %7572 = vst [vmem:[#allocation14_spill] sm:$0xff] %v5163_v28  ;;  %1444 = vmatpush.msrb.mxu2 %v3643_v63  ;;  %1485 = vmatpush.msrb.mxu3 %v3644_v2  ;;  %v3640_v15 = vld [vmem:[%s7552_s1 + $0x348] sm:$0xff]  ;;  %v5521_v28 = vld [vmem:[%s7553_s0 + $0x40] sm:$0xff] }
 0x11d   :  { %7573 = vst [vmem:[#allocation15_spill] sm:$0xff] %v5165_v31  ;;  %1313 = vmatpush.msrb.mxu0 %v3643_v63  ;;  %1354 = vmatpush.msrb.mxu1 %v3644_v2 }
 0x11e   :  { %3593 = vmatmul.msk.f32.gmra.mxu0 %vm84_vm1, %v4564_v47  ;;  %3602 = vmatmul.msk.f32.gmra.mxu1 %vm84_vm1, %v4564_v47 }
 0x11f   :  { %3619 = vmatmul.msk.f32.gmra.mxu2 %vm84_vm1, %v4557_v46  ;;  %3628 = vmatmul.msk.f32.gmra.mxu3 %vm84_vm1, %v4557_v46 }
 0x122   :  { %v685_v32 = vpop.f32.mrf.mxu2  ;;  %v726_v47 = vpop.f32.mrf.mxu3 }
 0x123   :  { %v5188_v43 = vadd.f32 %v685_v32, %v5012_v12  ;;  %v5191_v56 = vadd.f32 %v726_v47, %v5014_v13  ;;  %v5193_v46 = vpop.f32.mrf.mxu0  ;;  %v5195_v58 = vpop.f32.mrf.mxu1  ;;  %v3641_v12 = vld [vmem:[%s7552_s1 + $0x350] sm:$0xff]  ;;  %v3642_v13 = vld [vmem:[%s7552_s1 + $0x358] sm:$0xff] }
 0x124   :  { %7574 = vst [vmem:[#allocation16_spill] sm:$0xff] %v5193_v46  ;;  %1445 = vmatpush.msrb.mxu2 %v3641_v12  ;;  %1486 = vmatpush.msrb.mxu3 %v3642_v13  ;;  %v5455_v46 = vld [vmem:[%s7553_s0 + $0x30] sm:$0xff] }
 0x125   :  { %7575 = vst [vmem:[#allocation17_spill] sm:$0xff] %v5195_v58  ;;  %1314 = vmatpush.msrb.mxu0 %v3641_v12  ;;  %1355 = vmatpush.msrb.mxu1 %v3642_v13 }
 0x126   :  { %3594 = vmatmul.msk.f32.gmra.mxu0 %vm84_vm1, %v4590_v49  ;;  %3603 = vmatmul.msk.f32.gmra.mxu1 %vm84_vm1, %v4590_v49 }
 0x127   :  { %3620 = vmatmul.msk.f32.gmra.mxu2 %vm84_vm1, %v4585_v48  ;;  %3629 = vmatmul.msk.f32.gmra.mxu3 %vm84_vm1, %v4585_v48 }
 0x128   :  { %1446 = vmatpush.msrb.mxu2 %v3639_v14  ;;  %1487 = vmatpush.msrb.mxu3 %v3640_v15 }
 0x129   :  { %1315 = vmatpush.msrb.mxu0 %v3639_v14  ;;  %1356 = vmatpush.msrb.mxu1 %v3640_v15 }
 0x12a   :  { %v688_v59 = vpop.f32.mrf.mxu2  ;;  %v729_v49 = vpop.f32.mrf.mxu3 }
 0x12b   :  { %v5212_v62 = vadd.f32 %v688_v59, %v5030_v23  ;;  %v5215_v3 = vadd.f32 %v729_v49, %v5032_v24  ;;  %v5217_v48 = vpop.f32.mrf.mxu0  ;;  %v5219_v9 = vpop.f32.mrf.mxu1 }
 0x12c   :  { %7576 = vst [vmem:[#allocation18_spill] sm:$0xff] %v5217_v48  ;;  %v3839_v48 = vld [vmem:[%s7552_s1 + $0x560] sm:$0xff] }
 0x12d   :  { %7577 = vst [vmem:[#allocation19_spill] sm:$0xff] %v5219_v9 }
 0x12e   :  { %3595 = vmatmul.msk.f32.gmra.mxu0 %vm84_vm1, %v4608_v51  ;;  %3604 = vmatmul.msk.f32.gmra.mxu1 %vm84_vm1, %v4608_v51  ;;  %v3637_v51 = vld [vmem:[%s7552_s1 + $0x330] sm:$0xff] }
 0x12f   :  { %3621 = vmatmul.msk.f32.gmra.mxu2 %vm84_vm1, %v4603_v50  ;;  %3630 = vmatmul.msk.f32.gmra.mxu3 %vm84_vm1, %v4603_v50  ;;  %v3638_v50 = vld [vmem:[%s7552_s1 + $0x338] sm:$0xff] }
 0x130   :  { %1316 = vmatpush.msrb.mxu0 %v3637_v51  ;;  %1357 = vmatpush.msrb.mxu1 %v3638_v50 }
 0x131   :  { %1447 = vmatpush.msrb.mxu2 %v3637_v51  ;;  %1488 = vmatpush.msrb.mxu3 %v3638_v50 }
 0x132   :  { %v691_v23 = vpop.f32.mrf.mxu2  ;;  %v732_v24 = vpop.f32.mrf.mxu3 }
 0x133   :  { %v5236_v21 = vadd.f32 %v691_v23, %v5048_v38  ;;  %v5239_v45 = vadd.f32 %v732_v24, %v5050_v39  ;;  %v5241_v44 = vpop.f32.mrf.mxu0  ;;  %v5243_v63 = vpop.f32.mrf.mxu1  ;;  %v3635_v38 = vld [vmem:[%s7552_s1 + $0x320] sm:$0xff]  ;;  %v3636_v39 = vld [vmem:[%s7552_s1 + $0x328] sm:$0xff] }
 0x134   :  { %7578 = vst [vmem:[#allocation20_spill] sm:$0xff] %v5241_v44  ;;  %1317 = vmatpush.msrb.mxu0 %v3635_v38  ;;  %1358 = vmatpush.msrb.mxu1 %v3636_v39  ;;  %v3765_v44 = vld [vmem:[%s7552_s1 + $0x470] sm:$0xff] }
 0x135   :  { %7579 = vst [vmem:[#allocation21_spill] sm:$0xff] %v5243_v63  ;;  %1448 = vmatpush.msrb.mxu2 %v3635_v38  ;;  %1489 = vmatpush.msrb.mxu3 %v3636_v39  ;;  %v5330_v38 = vld [vmem:[%s7553_s0 + $0xb0] sm:$0xff] }
 0x136   :  { %3596 = vmatmul.msk.f32.gmra.mxu0 %vm84_vm1, %v4636_v55  ;;  %3605 = vmatmul.msk.f32.gmra.mxu1 %vm84_vm1, %v4636_v55  ;;  %v3713_v39 = vld [vmem:[%s7552_s1 + $0x430] sm:$0xff] }
 0x137   :  { %3622 = vmatmul.msk.f32.gmra.mxu2 %vm84_vm1, %v4631_v54  ;;  %3631 = vmatmul.msk.f32.gmra.mxu3 %vm84_vm1, %v4631_v54  ;;  %v3717_v54 = vld [vmem:[%s7552_s1 + $0x450] sm:$0x7] }
 0x138   :  { %3745 = vmatpush.msk.msra.mxu2 %vm109_vm0, %v3717_v54  ;;  %3719 = vmatpush.msk.msra.mxu0 %vm109_vm0, %v3717_v54 }
 0x13a   :  { %v694_v2 = vpop.f32.mrf.mxu2  ;;  %v735_v32 = vpop.f32.mrf.mxu3 }
 0x13b   :  { %v5266_v47 = vadd.f32 %v694_v2, %v5072_v5  ;;  %v5269_v12 = vadd.f32 %v735_v32, %v5074_v42  ;;  %v5271_v13 = vpop.f32.mrf.mxu0  ;;  %v5273_v55 = vpop.f32.mrf.mxu1  ;;  %v3718_v5 = vld [vmem:[%s7552_s1 + $0x458] sm:$0x7] }
 0x13c   :  { %3754 = vmatpush.msk.msra.mxu3 %vm109_vm0, %v3718_v5  ;;  %3728 = vmatpush.msk.msra.mxu1 %vm109_vm0, %v3718_v5 }
 0x13e   :  { %3597 = vmatmul.msk.f32.gmra.mxu0 %vm84_vm1, %v4666_v61  ;;  %3606 = vmatmul.msk.f32.gmra.mxu1 %vm84_vm1, %v4666_v61 }
 0x13f   :  { %3623 = vmatmul.msk.f32.gmra.mxu2 %vm84_vm1, %v4661_v60  ;;  %3632 = vmatmul.msk.f32.gmra.mxu3 %vm84_vm1, %v4661_v60 }
 0x142   :  { %v697_v61 = vpop.f32.mrf.mxu2  ;;  %v738_v42 = vpop.f32.mrf.mxu3 }
 0x143   :  { %v5294_v60 = vadd.f32 %v697_v61, %v5094_v17  ;;  %v5297_v59 = vadd.f32 %v738_v42, %v5096_v18  ;;  %v5299_v49 = vpop.f32.mrf.mxu0  ;;  %v5301_v14 = vpop.f32.mrf.mxu1  ;;  %v3715_v17 = vld [vmem:[%s7552_s1 + $0x440] sm:$0xff]  ;;  %v3716_v18 = vld [vmem:[%s7552_s1 + $0x448] sm:$0xff]  ;;  %v5359_v42 = vld [vmem:[%s7553_s0 + $0x18] sm:$0xff] }
 0x144   :  { %1696 = vmatpush.msra.mxu2 %v3715_v17  ;;  %1737 = vmatpush.msra.mxu3 %v3716_v18 }
 0x145   :  { %1565 = vmatpush.msra.mxu0 %v3715_v17  ;;  %1606 = vmatpush.msra.mxu1 %v3716_v18  ;;  %v3711_v17 = vld [vmem:[%s7552_s1 + $0x420] sm:$0xff] }
 0x146   :  { %3598 = vmatmul.msk.f32.gmra.mxu0 %vm84_vm1, %v4793_v16  ;;  %3607 = vmatmul.msk.f32.gmra.mxu1 %vm84_vm1, %v4793_v16 }
 0x147   :  { %3624 = vmatmul.msk.f32.gmra.mxu2 %vm84_vm1, %v4960_v37  ;;  %3633 = vmatmul.msk.f32.gmra.mxu3 %vm84_vm1, %v4960_v37 }
 0x148   :  { %1697 = vmatpush.msra.mxu2 %v3713_v39  ;;  %1566 = vmatpush.msra.mxu0 %v3713_v39 }
 0x14a   :  { %v700_v15 = vpop.f32.mrf.mxu2  ;;  %v741_v16 = vpop.f32.mrf.mxu3  ;;  %1698 = vmatpush.msra.mxu2 %v3711_v17  ;;  %1567 = vmatpush.msra.mxu0 %v3711_v17  ;;  %v3710_v17 = vld [vmem:[%s7552_s1 + $0x418] sm:$0xff] }
 0x14b   :  { %v5318_v23 = vadd.f32 %v700_v15, %v5112_v33  ;;  %v5321_v24 = vadd.f32 %v741_v16, %v5114_v34  ;;  %v5323_v51 = vpop.f32.mrf.mxu0  ;;  %v5325_v50 = vpop.f32.mrf.mxu1  ;;  %v3714_v33 = vld [vmem:[%s7552_s1 + $0x438] sm:$0xff] }
 0x14c   :  { %1738 = vmatpush.msra.mxu3 %v3714_v33  ;;  %1607 = vmatpush.msra.mxu1 %v3714_v33 }
 0x14e   :  { %3599 = vmatmul.msk.f32.gmra.mxu0 %vm84_vm1, %v5119_v57  ;;  %3608 = vmatmul.msk.f32.gmra.mxu1 %vm84_vm1, %v5119_v57 }
 0x14f   :  { %3625 = vmatmul.msk.f32.gmra.mxu2 %vm84_vm1, %v5330_v38  ;;  %3634 = vmatmul.msk.f32.gmra.mxu3 %vm84_vm1, %v5330_v38 }
 0x152   :  { %v703_v34 = vpop.f32.mrf.mxu2  ;;  %v744_v2 = vpop.f32.mrf.mxu3 }
 0x153   :  { %v5347_v32 = vadd.f32 %v703_v34, %v5135_v4  ;;  %v5350_v54 = vadd.f32 %v744_v2, %v5137_v6  ;;  %v5352_v5 = vpop.f32.mrf.mxu0  ;;  %v5354_v61 = vpop.f32.mrf.mxu1  ;;  %v3712_v4 = vld [vmem:[%s7552_s1 + $0x428] sm:$0xff]  ;;  %v4180_v6 = vld [vmem:[%s7553_s0 + $0x78] sm:$0xff]  ;;  %v3709_v2 = vld [vmem:[%s7552_s1 + $0x410] sm:$0xff] }
 0x154   :  { %7580 = vst [vmem:[#allocation22_spill] sm:$0xff] %v5352_v5  ;;  %1739 = vmatpush.msra.mxu3 %v3712_v4  ;;  %1608 = vmatpush.msra.mxu1 %v3712_v4  ;;  %v3707_v4 = vld [vmem:[%s7552_s1 + $0x400] sm:$0xff] }
 0x155   :  { %7581 = vst [vmem:[#allocation23_spill] sm:$0xff] %v5354_v61  ;;  %1699 = vmatpush.msra.mxu2 %v3709_v2  ;;  %1568 = vmatpush.msra.mxu0 %v3709_v2 }
 0x156   :  { %3656 = vmatmul.msk.f32.vlgmr.msrb.gmra.mxu0 %vm84_vm1, %v4180_v6  ;;  %3665 = vmatmul.msk.f32.vlgmr.msrb.gmra.mxu1 %vm84_vm1, %v4180_v6  ;;  %v3708_v6 = vld [vmem:[%s7552_s1 + $0x408] sm:$0xff] }
 0x157   :  { %3682 = vmatmul.msk.f32.vlgmr.msrb.gmra.mxu2 %vm84_vm1, %v5359_v42  ;;  %3691 = vmatmul.msk.f32.vlgmr.msrb.gmra.mxu3 %vm84_vm1, %v5359_v42 }
 0x158   :  { %1740 = vmatpush.msra.mxu3 %v3710_v17  ;;  %1609 = vmatpush.msra.mxu1 %v3710_v17 }
 0x159   :  { %1700 = vmatpush.msra.mxu2 %v3707_v4  ;;  %1569 = vmatpush.msra.mxu0 %v3707_v4  ;;  %v4182_v4 = vld [vmem:[%s7553_s0 + $0x88] sm:$0xff] }
 0x15a   :  { %v938_v18 = vpop.f32.mrf.mxu2  ;;  %v979_v15 = vpop.f32.mrf.mxu3  ;;  %1741 = vmatpush.msra.mxu3 %v3708_v6  ;;  %1610 = vmatpush.msra.mxu1 %v3708_v6 }
 0x15b   :  { %v5377_v16 = vadd.f32 %v938_v18, %v5158_v22  ;;  %v5380_v39 = vadd.f32 %v979_v15, %v5161_v27  ;;  %v5382_v33 = vpop.f32.mrf.mxu0  ;;  %v5384_v34 = vpop.f32.mrf.mxu1  ;;  %v5395_v22 = vld [vmem:[%s7553_s0 + $0x20] sm:$0xff] }
 0x15c   :  { %7582 = vst [vmem:[#allocation24_spill] sm:$0xff] %v5382_v33  ;;  %v4181_v27 = vld [vmem:[%s7553_s0 + $0x80] sm:$0xff] }
 0x15d   :  { %7583 = vst [vmem:[#allocation25_spill] sm:$0xff] %v5384_v34 }
 0x15e   :  { %3657 = vmatmul.msk.f32.gmra.mxu0 %vm84_vm1, %v4181_v27  ;;  %3666 = vmatmul.msk.f32.gmra.mxu1 %vm84_vm1, %v4181_v27 }
 0x15f   :  { %3683 = vmatmul.msk.f32.gmra.mxu2 %vm84_vm1, %v5395_v22  ;;  %3692 = vmatmul.msk.f32.gmra.mxu3 %vm84_vm1, %v5395_v22 }
 0x162   :  { %v941_v18 = vpop.f32.mrf.mxu2  ;;  %v982_v15 = vpop.f32.mrf.mxu3 }
 0x163   :  { %v5413_v2 = vadd.f32 %v941_v18, %v5188_v43  ;;  %v5416_v17 = vadd.f32 %v982_v15, %v5191_v56  ;;  %v5418_v27 = vpop.f32.mrf.mxu0  ;;  %v5420_v58 = vpop.f32.mrf.mxu1  ;;  %v3705_v43 = vld [vmem:[%s7552_s1 + $0x3f0] sm:$0xff]  ;;  %v3706_v56 = vld [vmem:[%s7552_s1 + $0x3f8] sm:$0xff] }
 0x164   :  { %7584 = vst [vmem:[#allocation26_spill] sm:$0xff] %v5418_v27  ;;  %1701 = vmatpush.msra.mxu2 %v3705_v43  ;;  %1742 = vmatpush.msra.mxu3 %v3706_v56 }
 0x165   :  { %7585 = vst [vmem:[#allocation27_spill] sm:$0xff] %v5420_v58  ;;  %1570 = vmatpush.msra.mxu0 %v3705_v43  ;;  %1611 = vmatpush.msra.mxu1 %v3706_v56  ;;  %v3703_v43 = vld [vmem:[%s7552_s1 + $0x3e0] sm:$0xff] }
 0x166   :  { %3658 = vmatmul.msk.f32.gmra.mxu0 %vm84_vm1, %v4182_v4  ;;  %3667 = vmatmul.msk.f32.gmra.mxu1 %vm84_vm1, %v4182_v4 }
 0x167   :  { %3684 = vmatmul.msk.f32.gmra.mxu2 %vm84_vm1, %v5425_v53  ;;  %3693 = vmatmul.msk.f32.gmra.mxu3 %vm84_vm1, %v5425_v53 }
 0x168   :  { %1702 = vmatpush.msra.mxu2 %v3703_v43  ;;  %1571 = vmatpush.msra.mxu0 %v3703_v43  ;;  %v3702_v43 = vld [vmem:[%s7552_s1 + $0x3d8] sm:$0xff] }
 0x16a   :  { %v944_v6 = vpop.f32.mrf.mxu2  ;;  %v985_v18 = vpop.f32.mrf.mxu3 }
 0x16b   :  { %v5443_v15 = vadd.f32 %v944_v6, %v5212_v62  ;;  %v5446_v4 = vadd.f32 %v985_v18, %v5215_v3  ;;  %v5448_v58 = vpop.f32.mrf.mxu0  ;;  %v5450_v27 = vpop.f32.mrf.mxu1  ;;  %v3704_v62 = vld [vmem:[%s7552_s1 + $0x3e8] sm:$0xff]  ;;  %v4183_v3 = vld [vmem:[%s7553_s0 + $0x90] sm:$0xff] }
 0x16c   :  { %7586 = vst [vmem:[#allocation28_spill] sm:$0xff] %v5448_v58  ;;  %1743 = vmatpush.msra.mxu3 %v3704_v62  ;;  %1612 = vmatpush.msra.mxu1 %v3704_v62  ;;  %v3700_v62 = vld [vmem:[%s7552_s1 + $0x3c8] sm:$0xff]  ;;  %v5822_v58 = vld [vmem:[%s7553_s0 + $0xb8] sm:$0xff] }
 0x16d   :  { %7587 = vst [vmem:[#allocation29_spill] sm:$0xff] %v5450_v27 }
 0x16e   :  { %3659 = vmatmul.msk.f32.gmra.mxu0 %vm84_vm1, %v4183_v3  ;;  %3668 = vmatmul.msk.f32.gmra.mxu1 %vm84_vm1, %v4183_v3  ;;  %v3701_v3 = vld [vmem:[%s7552_s1 + $0x3d0] sm:$0xff] }
 0x16f   :  { %3685 = vmatmul.msk.f32.gmra.mxu2 %vm84_vm1, %v5455_v46  ;;  %3694 = vmatmul.msk.f32.gmra.mxu3 %vm84_vm1, %v5455_v46 }
 0x170   :  { %1572 = vmatpush.msra.mxu0 %v3701_v3  ;;  %1613 = vmatpush.msra.mxu1 %v3702_v43 }
 0x171   :  { %1703 = vmatpush.msra.mxu2 %v3701_v3  ;;  %1744 = vmatpush.msra.mxu3 %v3702_v43 }
 0x172   :  { %v947_v56 = vpop.f32.mrf.mxu2  ;;  %v988_v6 = vpop.f32.mrf.mxu3  ;;  %1614 = vmatpush.msra.mxu1 %v3700_v62 }
 0x173   :  { %v5473_v18 = vadd.f32 %v947_v56, %v5236_v21  ;;  %v5476_v52 = vadd.f32 %v988_v6, %v5239_v45  ;;  %v5478_v34 = vpop.f32.mrf.mxu0  ;;  %v5480_v33 = vpop.f32.mrf.mxu1  ;;  %v5491_v21 = vld [vmem:[%s7553_s0 + $0x38] sm:$0xff]  ;;  %v3699_v45 = vld [vmem:[%s7552_s1 + $0x3c0] sm:$0xff]  ;;  %1745 = vmatpush.msra.mxu3 %v3700_v62 }
 0x174   :  { %7588 = vst [vmem:[#allocation30_spill] sm:$0xff] %v5478_v34  ;;  %v4184_v56 = vld [vmem:[%s7553_s0 + $0x98] sm:$0xff]  ;;  %1573 = vmatpush.msra.mxu0 %v3699_v45  ;;  %1704 = vmatpush.msra.mxu2 %v3699_v45  ;;  %v4185_v45 = vld [vmem:[%s7553_s0 + $0xa0] sm:$0xff] }
 0x175   :  { %7589 = vst [vmem:[#allocation31_spill] sm:$0xff] %v5480_v33  ;;  %v5672_v33 = vld [vmem:[%s7553_s0 + $0x90] sm:$0xff]  ;;  %v5701_v34 = vld [vmem:[%s7553_s0 + $0x98] sm:$0xff] }
 0x176   :  { %3660 = vmatmul.msk.f32.gmra.mxu0 %vm84_vm1, %v4184_v56  ;;  %3669 = vmatmul.msk.f32.gmra.mxu1 %vm84_vm1, %v4184_v56 }
 0x177   :  { %3686 = vmatmul.msk.f32.gmra.mxu2 %vm84_vm1, %v5491_v21  ;;  %3695 = vmatmul.msk.f32.gmra.mxu3 %vm84_vm1, %v5491_v21 }
 0x17a   :  { %v950_v6 = vpop.f32.mrf.mxu2  ;;  %v991_v3 = vpop.f32.mrf.mxu3 }
 0x17b   :  { %v5509_v43 = vadd.f32 %v950_v6, %v5266_v47  ;;  %v5512_v31 = vadd.f32 %v991_v3, %v5269_v12  ;;  %v5514_v36 = vpop.f32.mrf.mxu0  ;;  %v5516_v56 = vpop.f32.mrf.mxu1  ;;  %v3781_v47 = vld [vmem:[%s7552_s1 + $0x4f0] sm:$0x7]  ;;  %v3782_v12 = vld [vmem:[%s7552_s1 + $0x4f8] sm:$0x7] }
 0x17c   :  { %3809 = vmatpush.msk.msrb.mxu2 %vm109_vm0, %v3781_v47  ;;  %3818 = vmatpush.msk.msrb.mxu3 %vm109_vm0, %v3782_v12 }
 0x17d   :  { %3783 = vmatpush.msk.msrb.mxu0 %vm109_vm0, %v3781_v47  ;;  %3792 = vmatpush.msk.msrb.mxu1 %vm109_vm0, %v3782_v12 }
 0x17e   :  { %3661 = vmatmul.msk.f32.gmra.mxu0 %vm84_vm1, %v4185_v45  ;;  %3670 = vmatmul.msk.f32.gmra.mxu1 %vm84_vm1, %v4185_v45 }
 0x17f   :  { %3687 = vmatmul.msk.f32.gmra.mxu2 %vm84_vm1, %v5521_v28  ;;  %3696 = vmatmul.msk.f32.gmra.mxu3 %vm84_vm1, %v5521_v28 }
 0x182   :  { %v953_v62 = vpop.f32.mrf.mxu2  ;;  %v994_v6 = vpop.f32.mrf.mxu3 }
 0x183   :  { %v5543_v3 = vadd.f32 %v953_v62, %v5294_v60  ;;  %v5546_v45 = vadd.f32 %v994_v6, %v5297_v59  ;;  %v5548_v35 = vpop.f32.mrf.mxu0  ;;  %v5550_v61 = vpop.f32.mrf.mxu1  ;;  %v3779_v60 = vld [vmem:[%s7552_s1 + $0x4e0] sm:$0xff]  ;;  %v3780_v59 = vld [vmem:[%s7552_s1 + $0x4e8] sm:$0xff] }
 0x184   :  { %1952 = vmatpush.msrb.mxu2 %v3779_v60  ;;  %1993 = vmatpush.msrb.mxu3 %v3780_v59 }
 0x185   :  { %1821 = vmatpush.msrb.mxu0 %v3779_v60  ;;  %1862 = vmatpush.msrb.mxu1 %v3780_v59  ;;  %v3777_v60 = vld [vmem:[%s7552_s1 + $0x4d0] sm:$0xff] }
 0x186   :  { %3662 = vmatmul.msk.f32.gmra.mxu0 %vm84_vm1, %v4960_v37  ;;  %3671 = vmatmul.msk.f32.gmra.mxu1 %vm84_vm1, %v4960_v37 }
 0x187   :  { %3688 = vmatmul.msk.f32.gmra.mxu2 %vm84_vm1, %v5119_v57  ;;  %3697 = vmatmul.msk.f32.gmra.mxu3 %vm84_vm1, %v5119_v57 }
 0x188   :  { %1953 = vmatpush.msrb.mxu2 %v3777_v60  ;;  %1822 = vmatpush.msrb.mxu0 %v3777_v60  ;;  %v3775_v60 = vld [vmem:[%s7552_s1 + $0x4c0] sm:$0xff] }
 0x18a   :  { %v956_v47 = vpop.f32.mrf.mxu2  ;;  %v997_v37 = vpop.f32.mrf.mxu3  ;;  %1954 = vmatpush.msrb.mxu2 %v3775_v60  ;;  %1823 = vmatpush.msrb.mxu0 %v3775_v60  ;;  %v3774_v60 = vld [vmem:[%s7552_s1 + $0x4b8] sm:$0xff] }
 0x18b   :  { %v5567_v12 = vadd.f32 %v956_v47, %v5318_v23  ;;  %v5570_v62 = vadd.f32 %v997_v37, %v5321_v24  ;;  %v5572_v6 = vpop.f32.mrf.mxu0  ;;  %v5574_v5 = vpop.f32.mrf.mxu1  ;;  %v3778_v23 = vld [vmem:[%s7552_s1 + $0x4d8] sm:$0xff] }
 0x18c   :  { %7590 = vst [vmem:[#allocation32_spill] sm:$0xff] %v5574_v5  ;;  %1994 = vmatpush.msrb.mxu3 %v3778_v23  ;;  %1863 = vmatpush.msrb.mxu1 %v3778_v23  ;;  %v3903_v5 = vld [vmem:[%s7552_s1 + $0x600] sm:$0xff] }
 0x18e   :  { %3663 = vmatmul.msk.f32.gmra.mxu0 %vm84_vm1, %v5330_v38  ;;  %3672 = vmatmul.msk.f32.gmra.mxu1 %vm84_vm1, %v5330_v38 }
 0x18f   :  { %3689 = vmatmul.msk.f32.gmra.mxu2 %vm84_vm1, %v5579_v8  ;;  %3698 = vmatmul.msk.f32.gmra.mxu3 %vm84_vm1, %v5579_v8 }
 0x192   :  { %v959_v24 = vpop.f32.mrf.mxu2  ;;  %v1000_v59 = vpop.f32.mrf.mxu3 }
 0x193   :  { %v5596_v47 = vadd.f32 %v959_v24, %v5347_v32  ;;  %v5599_v37 = vadd.f32 %v1000_v59, %v5350_v54  ;;  %v5601_v26 = vpop.f32.mrf.mxu0  ;;  %v5603_v7 = vpop.f32.mrf.mxu1  ;;  %v3776_v32 = vld [vmem:[%s7552_s1 + $0x4c8] sm:$0xff] }
 0x194   :  { %7591 = vst [vmem:[#allocation33_spill] sm:$0xff] %v5601_v26  ;;  %1995 = vmatpush.msrb.mxu3 %v3776_v32  ;;  %1864 = vmatpush.msrb.mxu1 %v3776_v32  ;;  %v3772_v32 = vld [vmem:[%s7552_s1 + $0x4a8] sm:$0xff] }
 0x195   :  { %7592 = vst [vmem:[#allocation34_spill] sm:$0xff] %v5603_v7 }
 0x196   :  { %3720 = vmatmul.msk.f32.vlgmr.msra.gmra.mxu0 %vm84_vm1, %v5359_v42  ;;  %3729 = vmatmul.msk.f32.vlgmr.msra.gmra.mxu1 %vm84_vm1, %v5359_v42  ;;  %v3773_v42 = vld [vmem:[%s7552_s1 + $0x4b0] sm:$0xff] }
 0x197   :  { %3746 = vmatmul.msk.f32.vlgmr.msra.gmra.mxu2 %vm84_vm1, %v5608_v25  ;;  %3755 = vmatmul.msk.f32.vlgmr.msra.gmra.mxu3 %vm84_vm1, %v5608_v25 }
 0x198   :  { %1955 = vmatpush.msrb.mxu2 %v3773_v42  ;;  %1996 = vmatpush.msrb.mxu3 %v3774_v60 }
 0x199   :  { %1824 = vmatpush.msrb.mxu0 %v3773_v42  ;;  %1865 = vmatpush.msrb.mxu1 %v3774_v60 }
 0x19a   :  { %v1194_v54 = vpop.f32.mrf.mxu2  ;;  %v1235_v23 = vpop.f32.mrf.mxu3  ;;  %1997 = vmatpush.msrb.mxu3 %v3772_v32 }
 0x19b   :  { %v5625_v24 = vadd.f32 %v1194_v54, %v5377_v16  ;;  %v5628_v59 = vadd.f32 %v1235_v23, %v5380_v39  ;;  %v5630_v7 = vpop.f32.mrf.mxu0  ;;  %v5632_v26 = vpop.f32.mrf.mxu1  ;;  %v5643_v16 = vld [vmem:[%s7553_s0 + $0x88] sm:$0xff]  ;;  %v3771_v39 = vld [vmem:[%s7552_s1 + $0x4a0] sm:$0xff]  ;;  %1866 = vmatpush.msrb.mxu1 %v3772_v32 }
 0x19c   :  { %7593 = vst [vmem:[#allocation35_spill] sm:$0xff] %v5630_v7  ;;  %1956 = vmatpush.msrb.mxu2 %v3771_v39  ;;  %1825 = vmatpush.msrb.mxu0 %v3771_v39 }
 0x19d   :  { %7594 = vst [vmem:[#allocation36_spill] sm:$0xff] %v5632_v26 }
 0x19e   :  { %3721 = vmatmul.msk.f32.gmra.mxu0 %vm84_vm1, %v5395_v22  ;;  %3730 = vmatmul.msk.f32.gmra.mxu1 %vm84_vm1, %v5395_v22 }
 0x19f   :  { %3747 = vmatmul.msk.f32.gmra.mxu2 %vm84_vm1, %v5643_v16  ;;  %3756 = vmatmul.msk.f32.gmra.mxu3 %vm84_vm1, %v5643_v16 }
 0x1a2   :  { %v1197_v54 = vpop.f32.mrf.mxu2  ;;  %v1238_v23 = vpop.f32.mrf.mxu3 }
 0x1a3   :  { %v5660_v42 = vadd.f32 %v1197_v54, %v5413_v2  ;;  %v5663_v60 = vadd.f32 %v1238_v23, %v5416_v17  ;;  %v5665_v26 = vpop.f32.mrf.mxu0  ;;  %v5667_v7 = vpop.f32.mrf.mxu1  ;;  %v3769_v2 = vld [vmem:[%s7552_s1 + $0x490] sm:$0xff]  ;;  %v3770_v17 = vld [vmem:[%s7552_s1 + $0x498] sm:$0xff] }
 0x1a4   :  { %7595 = vst [vmem:[#allocation37_spill] sm:$0xff] %v5665_v26  ;;  %1957 = vmatpush.msrb.mxu2 %v3769_v2  ;;  %1998 = vmatpush.msrb.mxu3 %v3770_v17 }
 0x1a5   :  { %7596 = vst [vmem:[#allocation38_spill] sm:$0xff] %v5667_v7  ;;  %1826 = vmatpush.msrb.mxu0 %v3769_v2  ;;  %1867 = vmatpush.msrb.mxu1 %v3770_v17  ;;  %v3767_v2 = vld [vmem:[%s7552_s1 + $0x480] sm:$0xff] }
 0x1a6   :  { %3722 = vmatmul.msk.f32.gmra.mxu0 %vm84_vm1, %v5425_v53  ;;  %3731 = vmatmul.msk.f32.gmra.mxu1 %vm84_vm1, %v5425_v53 }
 0x1a7   :  { %3748 = vmatmul.msk.f32.gmra.mxu2 %vm84_vm1, %v5672_v33  ;;  %3757 = vmatmul.msk.f32.gmra.mxu3 %vm84_vm1, %v5672_v33 }
 0x1a8   :  { %1958 = vmatpush.msrb.mxu2 %v3767_v2  ;;  %1827 = vmatpush.msrb.mxu0 %v3767_v2  ;;  %v3766_v2 = vld [vmem:[%s7552_s1 + $0x478] sm:$0xff] }
 0x1aa   :  { %v1200_v39 = vpop.f32.mrf.mxu2  ;;  %v1241_v32 = vpop.f32.mrf.mxu3  ;;  %1828 = vmatpush.msrb.mxu0 %v3765_v44  ;;  %1959 = vmatpush.msrb.mxu2 %v3765_v44 }
 0x1ab   :  { %v5689_v54 = vadd.f32 %v1200_v39, %v5443_v15  ;;  %v5692_v23 = vadd.f32 %v1241_v32, %v5446_v4  ;;  %v5694_v7 = vpop.f32.mrf.mxu0  ;;  %v5696_v26 = vpop.f32.mrf.mxu1  ;;  %v3768_v15 = vld [vmem:[%s7552_s1 + $0x488] sm:$0xff] }
 0x1ac   :  { %7597 = vst [vmem:[#allocation39_spill] sm:$0xff] %v5694_v7  ;;  %1999 = vmatpush.msrb.mxu3 %v3768_v15  ;;  %1868 = vmatpush.msrb.mxu1 %v3768_v15  ;;  %v3764_v15 = vld [vmem:[%s7552_s1 + $0x468] sm:$0xff] }
 0x1ad   :  { %7598 = vst [vmem:[#allocation40_spill] sm:$0xff] %v5696_v26 }
 0x1ae   :  { %3723 = vmatmul.msk.f32.gmra.mxu0 %vm84_vm1, %v5455_v46  ;;  %3732 = vmatmul.msk.f32.gmra.mxu1 %vm84_vm1, %v5455_v46 }
 0x1af   :  { %3749 = vmatmul.msk.f32.gmra.mxu2 %vm84_vm1, %v5701_v34  ;;  %3758 = vmatmul.msk.f32.gmra.mxu3 %vm84_vm1, %v5701_v34 }
 0x1b0   :  { %1869 = vmatpush.msrb.mxu1 %v3766_v2  ;;  %2000 = vmatpush.msrb.mxu3 %v3766_v2 }
 0x1b2   :  { %v1203_v4 = vpop.f32.mrf.mxu2  ;;  %v1244_v17 = vpop.f32.mrf.mxu3  ;;  %1870 = vmatpush.msrb.mxu1 %v3764_v15  ;;  %2001 = vmatpush.msrb.mxu3 %v3764_v15 }
 0x1b3   :  { %v5718_v39 = vadd.f32 %v1203_v4, %v5473_v18  ;;  %v5721_v32 = vadd.f32 %v1244_v17, %v5476_v52  ;;  %v5723_v63 = vpop.f32.mrf.mxu0  ;;  %v5725_v11 = vpop.f32.mrf.mxu1  ;;  %v5736_v18 = vld [vmem:[%s7553_s0 + $0xa0] sm:$0xff] }
 0x1b4   :  { %7599 = vst [vmem:[#allocation41_spill] sm:$0xff] %v5723_v63  ;;  %v3763_v52 = vld [vmem:[%s7552_s1 + $0x460] sm:$0xff] }
 0x1b5   :  { %7600 = vst [vmem:[#allocation42_spill] sm:$0xff] %v5725_v11  ;;  %1829 = vmatpush.msrb.mxu0 %v3763_v52  ;;  %1960 = vmatpush.msrb.mxu2 %v3763_v52 }
 0x1b6   :  { %3724 = vmatmul.msk.f32.gmra.mxu0 %vm84_vm1, %v5491_v21  ;;  %3733 = vmatmul.msk.f32.gmra.mxu1 %vm84_vm1, %v5491_v21 }
 0x1b7   :  { %3750 = vmatmul.msk.f32.gmra.mxu2 %vm84_vm1, %v5736_v18  ;;  %3759 = vmatmul.msk.f32.gmra.mxu3 %vm84_vm1, %v5736_v18 }
 0x1ba   :  { %v1206_v44 = vpop.f32.mrf.mxu2  ;;  %v1247_v4 = vpop.f32.mrf.mxu3 }
 0x1bb   :  { %v5753_v17 = vadd.f32 %v1206_v44, %v5509_v43  ;;  %v5756_v2 = vadd.f32 %v1247_v4, %v5512_v31  ;;  %v5758_v11 = vpop.f32.mrf.mxu0  ;;  %v5760_v63 = vpop.f32.mrf.mxu1  ;;  %v3845_v31 = vld [vmem:[%s7552_s1 + $0x590] sm:$0x7]  ;;  %v3846_v43 = vld [vmem:[%s7552_s1 + $0x598] sm:$0x7] }
 0x1bc   :  { %3873 = vmatpush.msk.msra.mxu2 %vm109_vm0, %v3845_v31  ;;  %3882 = vmatpush.msk.msra.mxu3 %vm109_vm0, %v3846_v43 }
 0x1bd   :  { %3847 = vmatpush.msk.msra.mxu0 %vm109_vm0, %v3845_v31  ;;  %3856 = vmatpush.msk.msra.mxu1 %vm109_vm0, %v3846_v43 }
 0x1be   :  { %3725 = vmatmul.msk.f32.gmra.mxu0 %vm84_vm1, %v5521_v28  ;;  %3734 = vmatmul.msk.f32.gmra.mxu1 %vm84_vm1, %v5521_v28 }
 0x1bf   :  { %3751 = vmatmul.msk.f32.gmra.mxu2 %vm84_vm1, %v5765_v10  ;;  %3760 = vmatmul.msk.f32.gmra.mxu3 %vm84_vm1, %v5765_v10 }
 0x1c2   :  { %v1209_v52 = vpop.f32.mrf.mxu2  ;;  %v1250_v15 = vpop.f32.mrf.mxu3 }
 0x1c3   :  { %v5786_v44 = vadd.f32 %v1209_v52, %v5543_v3  ;;  %v5789_v4 = vadd.f32 %v1250_v15, %v5546_v45  ;;  %v5791_v26 = vpop.f32.mrf.mxu0  ;;  %v5793_v7 = vpop.f32.mrf.mxu1  ;;  %v3843_v3 = vld [vmem:[%s7552_s1 + $0x580] sm:$0xff]  ;;  %v3844_v45 = vld [vmem:[%s7552_s1 + $0x588] sm:$0xff] }
 0x1c4   :  { %2208 = vmatpush.msra.mxu2 %v3843_v3  ;;  %2249 = vmatpush.msra.mxu3 %v3844_v45 }
 0x1c5   :  { %2077 = vmatpush.msra.mxu0 %v3843_v3  ;;  %2118 = vmatpush.msra.mxu1 %v3844_v45  ;;  %v3841_v3 = vld [vmem:[%s7552_s1 + $0x570] sm:$0xff] }
 0x1c6   :  { %3726 = vmatmul.msk.f32.gmra.mxu0 %vm84_vm1, %v5119_v57  ;;  %3735 = vmatmul.msk.f32.gmra.mxu1 %vm84_vm1, %v5119_v57 }
 0x1c7   :  { %3752 = vmatmul.msk.f32.gmra.mxu2 %vm84_vm1, %v5330_v38  ;;  %3761 = vmatmul.msk.f32.gmra.mxu3 %vm84_vm1, %v5330_v38 }
 0x1c8   :  { %2209 = vmatpush.msra.mxu2 %v3841_v3  ;;  %2078 = vmatpush.msra.mxu0 %v3841_v3  ;;  %v3840_v3 = vld [vmem:[%s7552_s1 + $0x568] sm:$0xff] }
 0x1ca   :  { %v1212_v31 = vpop.f32.mrf.mxu2  ;;  %v1253_v57 = vpop.f32.mrf.mxu3  ;;  %2210 = vmatpush.msra.mxu2 %v3839_v48  ;;  %2079 = vmatpush.msra.mxu0 %v3839_v48  ;;  %v3838_v48 = vld [vmem:[%s7552_s1 + $0x558] sm:$0xff] }
 0x1cb   :  { %v5810_v43 = vadd.f32 %v1212_v31, %v5567_v12  ;;  %v5813_v52 = vadd.f32 %v1253_v57, %v5570_v62  ;;  %v5815_v15 = vpop.f32.mrf.mxu0  ;;  %v5817_v27 = vpop.f32.mrf.mxu1  ;;  %v3842_v12 = vld [vmem:[%s7552_s1 + $0x578] sm:$0xff] }
 0x1cc   :  { %7601 = vst [vmem:[#allocation43_spill] sm:$0xff] %v5815_v15  ;;  %2250 = vmatpush.msra.mxu3 %v3842_v12  ;;  %2119 = vmatpush.msra.mxu1 %v3842_v12  ;;  %v6040_v15 = vld [vmem:[%s7553_s0 + $0x58] sm:$0xff] }
 0x1cd   :  { %7602 = vst [vmem:[#allocation44_spill] sm:$0xff] %v5817_v27 }
 0x1ce   :  { %3727 = vmatmul.msk.f32.gmra.mxu0 %vm84_vm1, %v5579_v8  ;;  %3736 = vmatmul.msk.f32.gmra.mxu1 %vm84_vm1, %v5579_v8 }
 0x1cf   :  { %3753 = vmatmul.msk.f32.gmra.mxu2 %vm84_vm1, %v5822_v58  ;;  %3762 = vmatmul.msk.f32.gmra.mxu3 %vm84_vm1, %v5822_v58 }
 0x1d0   :  { %2251 = vmatpush.msra.mxu3 %v3840_v3  ;;  %2120 = vmatpush.msra.mxu1 %v3840_v3 }
 0x1d2   :  { %v1215_v62 = vpop.f32.mrf.mxu2  ;;  %v1256_v45 = vpop.f32.mrf.mxu3  ;;  %2252 = vmatpush.msra.mxu3 %v3838_v48  ;;  %2121 = vmatpush.msra.mxu1 %v3838_v48 }
 0x1d3   :  { %v5839_v31 = vadd.f32 %v1215_v62, %v5596_v47  ;;  %v5842_v57 = vadd.f32 %v1256_v45, %v5599_v37  ;;  %v5844_v9 = vpop.f32.mrf.mxu0  ;;  %v5846_v1 = vpop.f32.mrf.mxu1 }
 0x1d4   :  { %7603 = vst [vmem:[#allocation45_spill] sm:$0xff] %v5844_v9 }
 0x1d5   :  { %7604 = vst [vmem:[#allocation46_spill] sm:$0xff] %v5846_v1 }
 0x1d6   :  { %3784 = vmatmul.msk.f32.vlgmr.msrb.gmra.mxu0 %vm84_vm1, %v5608_v25  ;;  %3793 = vmatmul.msk.f32.vlgmr.msrb.gmra.mxu1 %vm84_vm1, %v5608_v25  ;;  %v3837_v25 = vld [vmem:[%s7552_s1 + $0x550] sm:$0xff] }
 0x1d7   :  { %3810 = vmatmul.msk.f32.vlgmr.msrb.gmra.mxu2 %vm84_vm1, %v5395_v22  ;;  %3819 = vmatmul.msk.f32.vlgmr.msrb.gmra.mxu3 %vm84_vm1, %v5395_v22 }
 0x1d8   :  { %2211 = vmatpush.msra.mxu2 %v3837_v25  ;;  %2080 = vmatpush.msra.mxu0 %v3837_v25 }
 0x1da   :  { %v1450_v47 = vpop.f32.mrf.mxu2  ;;  %v1491_v37 = vpop.f32.mrf.mxu3 }
 0x1db   :  { %v5863_v12 = vadd.f32 %v1450_v47, %v5625_v24  ;;  %v5866_v62 = vadd.f32 %v1491_v37, %v5628_v59  ;;  %v5868_v45 = vpop.f32.mrf.mxu0  ;;  %v5870_v1 = vpop.f32.mrf.mxu1  ;;  %v3835_v24 = vld [vmem:[%s7552_s1 + $0x540] sm:$0xff]  ;;  %v3836_v59 = vld [vmem:[%s7552_s1 + $0x548] sm:$0xff] }
 0x1dc   :  { %7605 = vst [vmem:[#allocation47_spill] sm:$0xff] %v5868_v45  ;;  %2212 = vmatpush.msra.mxu2 %v3835_v24  ;;  %2253 = vmatpush.msra.mxu3 %v3836_v59  ;;  %v3831_v45 = vld [vmem:[%s7552_s1 + $0x520] sm:$0xff] }
 0x1dd   :  { %7606 = vst [vmem:[#allocation48_spill] sm:$0xff] %v5870_v1  ;;  %2081 = vmatpush.msra.mxu0 %v3835_v24  ;;  %2122 = vmatpush.msra.mxu1 %v3836_v59 }
 0x1de   :  { %3785 = vmatmul.msk.f32.gmra.mxu0 %vm84_vm1, %v5643_v16  ;;  %3794 = vmatmul.msk.f32.gmra.mxu1 %vm84_vm1, %v5643_v16 }
 0x1df   :  { %3811 = vmatmul.msk.f32.gmra.mxu2 %vm84_vm1, %v5425_v53  ;;  %3820 = vmatmul.msk.f32.gmra.mxu3 %vm84_vm1, %v5425_v53 }
 0x1e2   :  { %v1453_v3 = vpop.f32.mrf.mxu2  ;;  %v1494_v47 = vpop.f32.mrf.mxu3 }
 0x1e3   :  { %v5893_v37 = vadd.f32 %v1453_v3, %v5660_v42  ;;  %v5896_v25 = vadd.f32 %v1494_v47, %v5663_v60  ;;  %v5898_v48 = vpop.f32.mrf.mxu0  ;;  %v5900_v1 = vpop.f32.mrf.mxu1  ;;  %v3833_v42 = vld [vmem:[%s7552_s1 + $0x530] sm:$0xff]  ;;  %v3834_v60 = vld [vmem:[%s7552_s1 + $0x538] sm:$0xff] }
 0x1e4   :  { %7607 = vst [vmem:[#allocation49_spill] sm:$0xff] %v5898_v48  ;;  %2213 = vmatpush.msra.mxu2 %v3833_v42  ;;  %2254 = vmatpush.msra.mxu3 %v3834_v60 }
 0x1e5   :  { %7608 = vst [vmem:[#allocation50_spill] sm:$0xff] %v5900_v1  ;;  %2082 = vmatpush.msra.mxu0 %v3833_v42  ;;  %2123 = vmatpush.msra.mxu1 %v3834_v60  ;;  %v3832_v42 = vld [vmem:[%s7552_s1 + $0x528] sm:$0xff] }
 0x1e6   :  { %3786 = vmatmul.msk.f32.gmra.mxu0 %vm84_vm1, %v5672_v33  ;;  %3795 = vmatmul.msk.f32.gmra.mxu1 %vm84_vm1, %v5672_v33 }
 0x1e7   :  { %3812 = vmatmul.msk.f32.gmra.mxu2 %vm84_vm1, %v5455_v46  ;;  %3821 = vmatmul.msk.f32.gmra.mxu3 %vm84_vm1, %v5455_v46 }
 0x1e8   :  { %2214 = vmatpush.msra.mxu2 %v3831_v45  ;;  %2255 = vmatpush.msra.mxu3 %v3832_v42 }
 0x1e9   :  { %2083 = vmatpush.msra.mxu0 %v3831_v45  ;;  %2124 = vmatpush.msra.mxu1 %v3832_v42  ;;  %v3830_v45 = vld [vmem:[%s7552_s1 + $0x518] sm:$0xff] }
 0x1ea   :  { %v1456_v24 = vpop.f32.mrf.mxu2  ;;  %v1497_v59 = vpop.f32.mrf.mxu3  ;;  %2256 = vmatpush.msra.mxu3 %v3830_v45 }
 0x1eb   :  { %v5917_v3 = vadd.f32 %v1456_v24, %v5689_v54  ;;  %v5920_v47 = vadd.f32 %v1497_v59, %v5692_v23  ;;  %v5922_v1 = vpop.f32.mrf.mxu0  ;;  %v5924_v48 = vpop.f32.mrf.mxu1  ;;  %2125 = vmatpush.msra.mxu1 %v3830_v45 }
 0x1ec   :  { %7609 = vst [vmem:[#allocation51_spill] sm:$0xff] %v5922_v1 }
 0x1ed   :  { %7610 = vst [vmem:[#allocation52_spill] sm:$0xff] %v5924_v48  ;;  %v3829_v48 = vld [vmem:[%s7552_s1 + $0x510] sm:$0xff] }
 0x1ee   :  { %3787 = vmatmul.msk.f32.gmra.mxu0 %vm84_vm1, %v5701_v34  ;;  %3796 = vmatmul.msk.f32.gmra.mxu1 %vm84_vm1, %v5701_v34 }
 0x1ef   :  { %3813 = vmatmul.msk.f32.gmra.mxu2 %vm84_vm1, %v5491_v21  ;;  %3822 = vmatmul.msk.f32.gmra.mxu3 %vm84_vm1, %v5491_v21 }
 0x1f0   :  { %2084 = vmatpush.msra.mxu0 %v3829_v48  ;;  %2215 = vmatpush.msra.mxu2 %v3829_v48 }
 0x1f2   :  { %v1459_v54 = vpop.f32.mrf.mxu2  ;;  %v1500_v23 = vpop.f32.mrf.mxu3 }
 0x1f3   :  { %v5941_v60 = vadd.f32 %v1459_v54, %v5718_v39  ;;  %v5944_v24 = vadd.f32 %v1500_v23, %v5721_v32  ;;  %v5946_v59 = vpop.f32.mrf.mxu0  ;;  %v5948_v9 = vpop.f32.mrf.mxu1  ;;  %v3827_v39 = vld [vmem:[%s7552_s1 + $0x500] sm:$0xff]  ;;  %v3828_v32 = vld [vmem:[%s7552_s1 + $0x508] sm:$0xff] }
 0x1f4   :  { %7611 = vst [vmem:[#allocation53_spill] sm:$0xff] %v5946_v59  ;;  %2085 = vmatpush.msra.mxu0 %v3827_v39  ;;  %2126 = vmatpush.msra.mxu1 %v3828_v32  ;;  %v5983_v59 = vld [vmem:[%s7553_s0 + $0x48] sm:$0xff] }
 0x1f5   :  { %7612 = vst [vmem:[#allocation54_spill] sm:$0xff] %v5948_v9  ;;  %2216 = vmatpush.msra.mxu2 %v3827_v39  ;;  %2257 = vmatpush.msra.mxu3 %v3828_v32 }
 0x1f6   :  { %3788 = vmatmul.msk.f32.gmra.mxu0 %vm84_vm1, %v5736_v18  ;;  %3797 = vmatmul.msk.f32.gmra.mxu1 %vm84_vm1, %v5736_v18 }
 0x1f7   :  { %3814 = vmatmul.msk.f32.gmra.mxu2 %vm84_vm1, %v5521_v28  ;;  %3823 = vmatmul.msk.f32.gmra.mxu3 %vm84_vm1, %v5521_v28 }
 0x1fa   :  { %v1462_v48 = vpop.f32.mrf.mxu2  ;;  %v1503_v42 = vpop.f32.mrf.mxu3 }
 0x1fb   :  { %v5971_v54 = vadd.f32 %v1462_v48, %v5753_v17  ;;  %v5974_v23 = vadd.f32 %v1503_v42, %v5756_v2  ;;  %v5976_v45 = vpop.f32.mrf.mxu0  ;;  %v5978_v9 = vpop.f32.mrf.mxu1  ;;  %v3909_v17 = vld [vmem:[%s7552_s1 + $0x630] sm:$0x7]  ;;  %v3910_v2 = vld [vmem:[%s7552_s1 + $0x638] sm:$0x7] }
 0x1fc   :  { %3937 = vmatpush.msk.msrb.mxu2 %vm109_vm0, %v3909_v17  ;;  %3946 = vmatpush.msk.msrb.mxu3 %vm109_vm0, %v3910_v2 }
 0x1fd   :  { %3911 = vmatpush.msk.msrb.mxu0 %vm109_vm0, %v3909_v17  ;;  %3920 = vmatpush.msk.msrb.mxu1 %vm109_vm0, %v3910_v2 }
 0x1fe   :  { %3789 = vmatmul.msk.f32.gmra.mxu0 %vm84_vm1, %v5765_v10  ;;  %3798 = vmatmul.msk.f32.gmra.mxu1 %vm84_vm1, %v5765_v10 }
 0x1ff   :  { %3815 = vmatmul.msk.f32.gmra.mxu2 %vm84_vm1, %v5983_v59  ;;  %3824 = vmatmul.msk.f32.gmra.mxu3 %vm84_vm1, %v5983_v59 }
 0x202   :  { %v1465_v39 = vpop.f32.mrf.mxu2  ;;  %v1506_v32 = vpop.f32.mrf.mxu3 }
 0x203   :  { %v6004_v48 = vadd.f32 %v1465_v39, %v5786_v44  ;;  %v6007_v42 = vadd.f32 %v1506_v32, %v5789_v4  ;;  %v6009_v1 = vpop.f32.mrf.mxu0  ;;  %v6011_v0 = vpop.f32.mrf.mxu1  ;;  %v3907_v44 = vld [vmem:[%s7552_s1 + $0x620] sm:$0xff]  ;;  %v3908_v4 = vld [vmem:[%s7552_s1 + $0x628] sm:$0xff] }
 0x204   :  { %2464 = vmatpush.msrb.mxu2 %v3907_v44  ;;  %2505 = vmatpush.msrb.mxu3 %v3908_v4 }
 0x205   :  { %2333 = vmatpush.msrb.mxu0 %v3907_v44  ;;  %2374 = vmatpush.msrb.mxu1 %v3908_v4  ;;  %v3905_v44 = vld [vmem:[%s7552_s1 + $0x610] sm:$0xff] }
 0x206   :  { %3790 = vmatmul.msk.f32.gmra.mxu0 %vm84_vm1, %v5330_v38  ;;  %3799 = vmatmul.msk.f32.gmra.mxu1 %vm84_vm1, %v5330_v38 }
 0x207   :  { %3816 = vmatmul.msk.f32.gmra.mxu2 %vm84_vm1, %v5579_v8  ;;  %3825 = vmatmul.msk.f32.gmra.mxu3 %vm84_vm1, %v5579_v8 }
 0x208   :  { %2465 = vmatpush.msrb.mxu2 %v3905_v44  ;;  %2334 = vmatpush.msrb.mxu0 %v3905_v44  ;;  %v3904_v44 = vld [vmem:[%s7552_s1 + $0x608] sm:$0xff] }
 0x20a   :  { %v1468_v17 = vpop.f32.mrf.mxu2  ;;  %v1509_v38 = vpop.f32.mrf.mxu3  ;;  %2466 = vmatpush.msrb.mxu2 %v3903_v5  ;;  %2335 = vmatpush.msrb.mxu0 %v3903_v5  ;;  %v3902_v5 = vld [vmem:[%s7552_s1 + $0x5f8] sm:$0xff] }
 0x20b   :  { %v6028_v2 = vadd.f32 %v1468_v17, %v5810_v43  ;;  %v6031_v39 = vadd.f32 %v1509_v38, %v5813_v52  ;;  %v6033_v32 = vpop.f32.mrf.mxu0  ;;  %v6035_v27 = vpop.f32.mrf.mxu1  ;;  %v3906_v43 = vld [vmem:[%s7552_s1 + $0x618] sm:$0xff] }
 0x20c   :  { %7613 = vst [vmem:[#allocation55_spill] sm:$0xff] %v6033_v32  ;;  %2506 = vmatpush.msrb.mxu3 %v3906_v43  ;;  %2375 = vmatpush.msrb.mxu1 %v3906_v43 }
 0x20d   :  { %7614 = vst [vmem:[#allocation56_spill] sm:$0xff] %v6035_v27 }
 0x20e   :  { %3791 = vmatmul.msk.f32.gmra.mxu0 %vm84_vm1, %v5822_v58  ;;  %3800 = vmatmul.msk.f32.gmra.mxu1 %vm84_vm1, %v5822_v58 }
 0x20f   :  { %3817 = vmatmul.msk.f32.gmra.mxu2 %vm84_vm1, %v6040_v15  ;;  %3826 = vmatmul.msk.f32.gmra.mxu3 %vm84_vm1, %v6040_v15 }
 0x210   :  { %2507 = vmatpush.msrb.mxu3 %v3904_v44  ;;  %2376 = vmatpush.msrb.mxu1 %v3904_v44 }
 0x212   :  { %v1471_v52 = vpop.f32.mrf.mxu2  ;;  %v1512_v4 = vpop.f32.mrf.mxu3  ;;  %2508 = vmatpush.msrb.mxu3 %v3902_v5  ;;  %2377 = vmatpush.msrb.mxu1 %v3902_v5 }
 0x213   :  { %v6057_v17 = vadd.f32 %v1471_v52, %v5839_v31  ;;  %v6060_v38 = vadd.f32 %v1512_v4, %v5842_v57  ;;  %v6062_v27 = vpop.f32.mrf.mxu0  ;;  %v6064_v32 = vpop.f32.mrf.mxu1 }
 0x214   :  { %7615 = vst [vmem:[#allocation57_spill] sm:$0xff] %v6064_v32 }
 0x216   :  { %3848 = vmatmul.msk.f32.vlgmr.msra.gmra.mxu0 %vm84_vm1, %v5395_v22  ;;  %3857 = vmatmul.msk.f32.vlgmr.msra.gmra.mxu1 %vm84_vm1, %v5395_v22  ;;  %v3901_v22 = vld [vmem:[%s7552_s1 + $0x5f0] sm:$0xff] }
 0x217   :  { %3874 = vmatmul.msk.f32.vlgmr.msra.gmra.mxu2 %vm84_vm1, %v5643_v16  ;;  %3883 = vmatmul.msk.f32.vlgmr.msra.gmra.mxu3 %vm84_vm1, %v5643_v16 }
 0x218   :  { %2467 = vmatpush.msrb.mxu2 %v3901_v22  ;;  %2336 = vmatpush.msrb.mxu0 %v3901_v22 }
 0x21a   :  { %v1706_v31 = vpop.f32.mrf.mxu2  ;;  %v1747_v57 = vpop.f32.mrf.mxu3 }
 0x21b   :  { %v6081_v43 = vadd.f32 %v1706_v31, %v5863_v12  ;;  %v6084_v52 = vadd.f32 %v1747_v57, %v5866_v62  ;;  %v6086_v4 = vpop.f32.mrf.mxu0  ;;  %v6088_v32 = vpop.f32.mrf.mxu1  ;;  %v3899_v12 = vld [vmem:[%s7552_s1 + $0x5e0] sm:$0xff]  ;;  %v3900_v62 = vld [vmem:[%s7552_s1 + $0x5e8] sm:$0xff] }
 0x21c   :  { %7618 = vst [vmem:[#allocation60_spill] sm:$0xff] %v6086_v4  ;;  %2468 = vmatpush.msrb.mxu2 %v3899_v12  ;;  %2509 = vmatpush.msrb.mxu3 %v3900_v62  ;;  %v3930_v4 = vld [vmem:[%s7553_s0 + $0x30] sm:$0xff] }
 0x21d   :  { %7616 = vst [vmem:[#allocation58_spill] sm:$0xff] %v6081_v43  ;;  %2337 = vmatpush.msrb.mxu0 %v3899_v12  ;;  %2378 = vmatpush.msrb.mxu1 %v3900_v62 }
 0x21e   :  { %7617 = vst [vmem:[#allocation59_spill] sm:$0xff] %v6084_v52  ;;  %3849 = vmatmul.msk.f32.gmra.mxu0 %vm84_vm1, %v5425_v53  ;;  %3858 = vmatmul.msk.f32.gmra.mxu1 %vm84_vm1, %v5425_v53 }
 0x21f   :  { %7619 = vst [vmem:[#allocation61_spill] sm:$0xff] %v6088_v32  ;;  %3875 = vmatmul.msk.f32.gmra.mxu2 %vm84_vm1, %v5672_v33  ;;  %3884 = vmatmul.msk.f32.gmra.mxu3 %vm84_vm1, %v5672_v33  ;;  %v3929_v32 = vld [vmem:[%s7553_s0 + $0x28] sm:$0xff] }
 0x222   :  { %v1709_v44 = vpop.f32.mrf.mxu2  ;;  %v1750_v53 = vpop.f32.mrf.mxu3 }
 0x223   :  { %v6111_v31 = vadd.f32 %v1709_v44, %v5893_v37  ;;  %v6114_v57 = vadd.f32 %v1750_v53, %v5896_v25  ;;  %v6116_v22 = vpop.f32.mrf.mxu0  ;;  %v6118_v5 = vpop.f32.mrf.mxu1  ;;  %v3897_v37 = vld [vmem:[%s7552_s1 + $0x5d0] sm:$0xff]  ;;  %v3898_v25 = vld [vmem:[%s7552_s1 + $0x5d8] sm:$0xff] }
 0x224   :  { %7622 = vst [vmem:[#allocation64_spill] sm:$0xff] %v6116_v22  ;;  %2469 = vmatpush.msrb.mxu2 %v3897_v37  ;;  %2510 = vmatpush.msrb.mxu3 %v3898_v25 }
 0x225   :  { %7620 = vst [vmem:[#allocation62_spill] sm:$0xff] %v6111_v31  ;;  %2338 = vmatpush.msrb.mxu0 %v3897_v37  ;;  %2379 = vmatpush.msrb.mxu1 %v3898_v25  ;;  %v3895_v31 = vld [vmem:[%s7552_s1 + $0x5c0] sm:$0xff]  ;;  %v3896_v37 = vld [vmem:[%s7552_s1 + $0x5c8] sm:$0xff] }
 0x226   :  { %7621 = vst [vmem:[#allocation63_spill] sm:$0xff] %v6114_v57  ;;  %3850 = vmatmul.msk.f32.gmra.mxu0 %vm84_vm1, %v5455_v46  ;;  %3859 = vmatmul.msk.f32.gmra.mxu1 %vm84_vm1, %v5455_v46 }
 0x227   :  { %7623 = vst [vmem:[#allocation65_spill] sm:$0xff] %v6118_v5  ;;  %3876 = vmatmul.msk.f32.gmra.mxu2 %vm84_vm1, %v5701_v34  ;;  %3885 = vmatmul.msk.f32.gmra.mxu3 %vm84_vm1, %v5701_v34 }
 0x228   :  { %2470 = vmatpush.msrb.mxu2 %v3895_v31  ;;  %2511 = vmatpush.msrb.mxu3 %v3896_v37 }
 0x229   :  { %2339 = vmatpush.msrb.mxu0 %v3895_v31  ;;  %2380 = vmatpush.msrb.mxu1 %v3896_v37  ;;  %v3894_v31 = vld [vmem:[%s7552_s1 + $0x5b8] sm:$0xff] }
 0x22a   :  { %v1712_v12 = vpop.f32.mrf.mxu2  ;;  %v1753_v46 = vpop.f32.mrf.mxu3  ;;  %2512 = vmatpush.msrb.mxu3 %v3894_v31 }
 0x22b   :  { %v6135_v62 = vadd.f32 %v1712_v12, %v5917_v3  ;;  %v6138_v44 = vadd.f32 %v1753_v46, %v5920_v47  ;;  %v6140_v53 = vpop.f32.mrf.mxu0  ;;  %v6142_v57 = vpop.f32.mrf.mxu1  ;;  %2381 = vmatpush.msrb.mxu1 %v3894_v31 }
 0x22d   :  { %7624 = vst [vmem:[#allocation66_spill] sm:$0xff] %v6135_v62  ;;  %v6201_v62 = vld [vmem:[%s7553_s0 + $0xb0] sm:$0xff] }
 0x22e   :  { %7625 = vst [vmem:[#allocation67_spill] sm:$0xff] %v6138_v44  ;;  %3851 = vmatmul.msk.f32.gmra.mxu0 %vm84_vm1, %v5491_v21  ;;  %3860 = vmatmul.msk.f32.gmra.mxu1 %vm84_vm1, %v5491_v21  ;;  %v3893_v21 = vld [vmem:[%s7552_s1 + $0x5b0] sm:$0xff] }
 0x22f   :  { %3877 = vmatmul.msk.f32.gmra.mxu2 %vm84_vm1, %v5736_v18  ;;  %3886 = vmatmul.msk.f32.gmra.mxu3 %vm84_vm1, %v5736_v18 }
 0x230   :  { %2340 = vmatpush.msrb.mxu0 %v3893_v21  ;;  %2471 = vmatpush.msrb.mxu2 %v3893_v21 }
 0x232   :  { %v1715_v3 = vpop.f32.mrf.mxu2  ;;  %v1756_v47 = vpop.f32.mrf.mxu3 }
 0x233   :  { %v6159_v25 = vadd.f32 %v1715_v3, %v5941_v60  ;;  %v6162_v12 = vadd.f32 %v1756_v47, %v5944_v24  ;;  %v6164_v46 = vpop.f32.mrf.mxu0  ;;  %v6166_v44 = vpop.f32.mrf.mxu1  ;;  %v3891_v60 = vld [vmem:[%s7552_s1 + $0x5a0] sm:$0xff]  ;;  %v3892_v24 = vld [vmem:[%s7552_s1 + $0x5a8] sm:$0xff] }
 0x234   :  { %2341 = vmatpush.msrb.mxu0 %v3891_v60  ;;  %2382 = vmatpush.msrb.mxu1 %v3892_v24 }
 0x235   :  { %2472 = vmatpush.msrb.mxu2 %v3891_v60  ;;  %2513 = vmatpush.msrb.mxu3 %v3892_v24 }
 0x236   :  { %3852 = vmatmul.msk.f32.gmra.mxu0 %vm84_vm1, %v5521_v28  ;;  %3861 = vmatmul.msk.f32.gmra.mxu1 %vm84_vm1, %v5521_v28 }
 0x237   :  { %3878 = vmatmul.msk.f32.gmra.mxu2 %vm84_vm1, %v5765_v10  ;;  %3887 = vmatmul.msk.f32.gmra.mxu3 %vm84_vm1, %v5765_v10 }
 0x23a   :  { %v1718_v37 = vpop.f32.mrf.mxu2  ;;  %v1759_v3 = vpop.f32.mrf.mxu3 }
 0x23b   :  { %v6189_v47 = vadd.f32 %v1718_v37, %v5971_v54  ;;  %v6192_v21 = vadd.f32 %v1759_v3, %v5974_v23  ;;  %v6194_v31 = vpop.f32.mrf.mxu0  ;;  %v6196_v28 = vpop.f32.mrf.mxu1 }
 0x23e   :  { %3853 = vmatmul.msk.f32.gmra.mxu0 %vm84_vm1, %v5983_v59  ;;  %3862 = vmatmul.msk.f32.gmra.mxu1 %vm84_vm1, %v5983_v59 }
 0x23f   :  { %3879 = vmatmul.msk.f32.gmra.mxu2 %vm84_vm1, %v6201_v62  ;;  %3888 = vmatmul.msk.f32.gmra.mxu3 %vm84_vm1, %v6201_v62 }
 0x242   :  { %v1721_v54 = vpop.f32.mrf.mxu2  ;;  %v1762_v23 = vpop.f32.mrf.mxu3 }
 0x243   :  { %v6212_v60 = vadd.f32 %v1721_v54, %v6004_v48  ;;  %v6215_v24 = vadd.f32 %v1762_v23, %v6007_v42  ;;  %v6217_v37 = vpop.f32.mrf.mxu0  ;;  %v6219_v3 = vpop.f32.mrf.mxu1 }
 0x246   :  { %3854 = vmatmul.msk.f32.gmra.mxu0 %vm84_vm1, %v5579_v8  ;;  %3863 = vmatmul.msk.f32.gmra.mxu1 %vm84_vm1, %v5579_v8  ;;  %v6242_v8 = vld [vmem:[%s7553_s0 + $0xc0] sm:$0xff] }
 0x247   :  { %3880 = vmatmul.msk.f32.gmra.mxu2 %vm84_vm1, %v5822_v58  ;;  %3889 = vmatmul.msk.f32.gmra.mxu3 %vm84_vm1, %v5822_v58 }
 0x24a   :  { %v1724_v48 = vpop.f32.mrf.mxu2  ;;  %v1765_v54 = vpop.f32.mrf.mxu3 }
 0x24b   :  { %v6230_v42 = vadd.f32 %v1724_v48, %v6028_v2  ;;  %v6233_v23 = vadd.f32 %v1765_v54, %v6031_v39  ;;  %v6235_v5 = vpop.f32.mrf.mxu0  ;;  %v6237_v22 = vpop.f32.mrf.mxu1 }
 0x24e   :  { %3855 = vmatmul.msk.f32.gmra.mxu0 %vm84_vm1, %v6040_v15  ;;  %3864 = vmatmul.msk.f32.gmra.mxu1 %vm84_vm1, %v6040_v15 }
 0x24f   :  { %3881 = vmatmul.msk.f32.gmra.mxu2 %vm84_vm1, %v6242_v8  ;;  %3890 = vmatmul.msk.f32.gmra.mxu3 %vm84_vm1, %v6242_v8 }
 0x252   :  { %v1727_v2 = vpop.f32.mrf.mxu2  ;;  %v1768_v39 = vpop.f32.mrf.mxu3 }
 0x253   :  { %v6253_v48 = vadd.f32 %v1727_v2, %v6057_v17  ;;  %v6256_v54 = vadd.f32 %v1768_v39, %v6060_v38  ;;  %v6258_v52 = vpop.f32.mrf.mxu0  ;;  %v6260_v43 = vpop.f32.mrf.mxu1 }
 0x254   :  { %7626 = vst [vmem:[#allocation68_spill] sm:$0xff] %v6258_v52 }
 0x255   :  { %7627 = vst [vmem:[#allocation69_spill] sm:$0xff] %v6260_v43 }
 0x256   :  { %3912 = vmatmul.msk.f32.vlgmr.msrb.gmra.mxu0 %vm84_vm1, %v5643_v16  ;;  %3921 = vmatmul.msk.f32.vlgmr.msrb.gmra.mxu1 %vm84_vm1, %v5643_v16 }
 0x257   :  { %3938 = vmatmul.msk.f32.vlgmr.msrb.gmra.mxu2 %vm84_vm1, %v3929_v32  ;;  %3947 = vmatmul.msk.f32.vlgmr.msrb.gmra.mxu3 %vm84_vm1, %v3929_v32 }
 0x25a   :  { %v6271_v17 = vpop.f32.mrf.mxu2  ;;  %v6273_v38 = vpop.f32.mrf.mxu3 }
 0x25b   :  { %7628 = vst [vmem:[#allocation70_spill] sm:$0xff] %v6271_v17  ;;  %v6275_v2 = vpop.f32.mrf.mxu0  ;;  %v6277_v39 = vpop.f32.mrf.mxu1 }
 0x25c   :  { %7629 = vst [vmem:[#allocation71_spill] sm:$0xff] %v6273_v38  ;;  %v3931_v38 = vld [vmem:[%s7553_s0 + $0x38] sm:$0xff] }
 0x25d   :  { %7630 = vst [vmem:[#allocation72_spill] sm:$0xff] %v6275_v2 }
 0x25e   :  { %7631 = vst [vmem:[#allocation73_spill] sm:$0xff] %v6277_v39  ;;  %3913 = vmatmul.msk.f32.gmra.mxu0 %vm84_vm1, %v5672_v33  ;;  %3922 = vmatmul.msk.f32.gmra.mxu1 %vm84_vm1, %v5672_v33 }
 0x25f   :  { %3939 = vmatmul.msk.f32.gmra.mxu2 %vm84_vm1, %v3930_v4  ;;  %3948 = vmatmul.msk.f32.gmra.mxu3 %vm84_vm1, %v3930_v4 }
 0x262   :  { %v6288_v16 = vpop.f32.mrf.mxu2  ;;  %v6290_v32 = vpop.f32.mrf.mxu3 }
 0x263   :  { %7632 = vst [vmem:[#allocation74_spill] sm:$0xff] %v6288_v16  ;;  %v6292_v2 = vpop.f32.mrf.mxu0  ;;  %v6294_v39 = vpop.f32.mrf.mxu1 }
 0x264   :  { %7633 = vst [vmem:[#allocation75_spill] sm:$0xff] %v6290_v32  ;;  %v3932_v32 = vld [vmem:[%s7553_s0 + $0x40] sm:$0xff] }
 0x265   :  { %7634 = vst [vmem:[#allocation76_spill] sm:$0xff] %v6292_v2 }
 0x266   :  { %7635 = vst [vmem:[#allocation77_spill] sm:$0xff] %v6294_v39  ;;  %3914 = vmatmul.msk.f32.gmra.mxu0 %vm84_vm1, %v5701_v34  ;;  %3923 = vmatmul.msk.f32.gmra.mxu1 %vm84_vm1, %v5701_v34  ;;  %v626_v34 = vadd.f32 %v5271_v13, %v4929_v19 }
 0x267   :  { %3940 = vmatmul.msk.f32.gmra.mxu2 %vm84_vm1, %v3931_v38  ;;  %3949 = vmatmul.msk.f32.gmra.mxu3 %vm84_vm1, %v3931_v38  ;;  %v627_v38 = vadd.f32 %v5273_v55, %v4931_v20  ;;  %v629_v20 = vadd.f32 %v5301_v14, %v4949_v30  ;;  %v3934_v14 = vld [vmem:[%s7553_s0 + $0x50] sm:$0xff] }
 0x269   :  { %v883_v43 = vadd.f32 %v5516_v56, %v627_v38 }
 0x26a   :  { %v6305_v33 = vpop.f32.mrf.mxu2  ;;  %v6307_v4 = vpop.f32.mrf.mxu3 }
 0x26b   :  { %7636 = vst [vmem:[#allocation78_spill] sm:$0xff] %v6305_v33  ;;  %v6309_v2 = vpop.f32.mrf.mxu0  ;;  %v6311_v39 = vpop.f32.mrf.mxu1  ;;  %v1139_v52 = vadd.f32 %v5760_v63, %v883_v43 }
 0x26c   :  { %7637 = vst [vmem:[#allocation79_spill] sm:$0xff] %v6307_v4 }
 0x26d   :  { %v1395_v19 = vadd.f32 %v5978_v9, %v1139_v52 }
 0x26e   :  { %3915 = vmatmul.msk.f32.gmra.mxu0 %vm84_vm1, %v5736_v18  ;;  %3924 = vmatmul.msk.f32.gmra.mxu1 %vm84_vm1, %v5736_v18  ;;  %v882_v18 = vadd.f32 %v5514_v36, %v626_v34 }
 0x26f   :  { %3941 = vmatmul.msk.f32.gmra.mxu2 %vm84_vm1, %v3932_v32  ;;  %3950 = vmatmul.msk.f32.gmra.mxu3 %vm84_vm1, %v3932_v32 }
 0x270   :  { %v1138_v32 = vadd.f32 %v5758_v11, %v882_v18  ;;  %v628_v11 = vadd.f32 %v5299_v49, %v4947_v29  ;;  %v885_v29 = vadd.f32 %v5550_v61, %v629_v20 }
 0x272   :  { %v6326_v4 = vpop.f32.mrf.mxu2  ;;  %v6328_v33 = vpop.f32.mrf.mxu3  ;;  %v1394_v36 = vadd.f32 %v5976_v45, %v1138_v32  ;;  %v884_v43 = vadd.f32 %v5548_v35, %v628_v11  ;;  %v7641_v11 = vld [vmem:[#allocation55_spill] sm:$0xff] }
 0x273   :  { %v6330_v16 = vpop.f32.mrf.mxu0  ;;  %v6332_v17 = vpop.f32.mrf.mxu1 }
 0x274   :  { %v1650_v63 = vadd.f32 %v6194_v31, %v1394_v36  ;;  %v1140_v52 = vadd.f32 %v5791_v26, %v884_v43  ;;  %v631_v26 = vadd.f32 %v5325_v50, %v4972_v41  ;;  %v2679_v50 = vld [vmem:[%s7554_s3 + $0xf0] sm:$0xff] }
 0x275   :  { %2754 = vmatpush.msra.mxu2 %v2679_v50  ;;  %v7640_v36 = vld [vmem:[#allocation44_spill] sm:$0xff] }
 0x276   :  { %3916 = vmatmul.msk.f32.gmra.mxu0 %vm84_vm1, %v5765_v10  ;;  %3925 = vmatmul.msk.f32.gmra.mxu1 %vm84_vm1, %v5765_v10  ;;  %v1651_v10 = vadd.f32 %v6196_v28, %v1395_v19  ;;  %v1396_v35 = vadd.f32 %v6009_v1, %v1140_v52 }
 0x277   :  { %3942 = vmatmul.msk.f32.gmra.mxu2 %vm84_vm1, %v5983_v59  ;;  %3951 = vmatmul.msk.f32.gmra.mxu3 %vm84_vm1, %v5983_v59 }
 0x27a   :  { %v1974_v13 = vpop.f32.mrf.mxu2  ;;  %v2015_v55 = vpop.f32.mrf.mxu3 }
 0x27b   :  { %v6355_v56 = vadd.f32 %v1974_v13, %v6189_v47  ;;  %v6358_v59 = vadd.f32 %v2015_v55, %v6192_v21  ;;  %v1846_v45 = vpop.f32.mrf.mxu0  ;;  %v1887_v9 = vpop.f32.mrf.mxu1  ;;  %v1141_v47 = vadd.f32 %v5793_v7, %v885_v29  ;;  %v630_v21 = vadd.f32 %v5323_v51, %v4970_v40  ;;  %v7638_v40 = vld [vmem:[#allocation32_spill] sm:$0xff] }
 0x27c   :  { %v6362_v49 = vadd.f32 %v1846_v45, %v1650_v63  ;;  %v6364_v30 = vadd.f32 %v1887_v9, %v1651_v10  ;;  %v1652_v7 = vadd.f32 %v6217_v37, %v1396_v35  ;;  %v887_v51 = vadd.f32 %v7638_v40, %v631_v26  ;;  %v7639_v37 = vld [vmem:[#allocation43_spill] sm:$0xff]  ;;  %v7642_v63 = vld [vmem:[#allocation56_spill] sm:$0xff]  ;;  %v2672_v26 = vld [vmem:[%s7554_s3 + $0xb8] sm:$0xff] }
 0x27d   :  { %v1397_v61 = vadd.f32 %v6011_v0, %v1141_v47  ;;  %v886_v18 = vadd.f32 %v5572_v6, %v630_v21  ;;  %v2677_v6 = vld [vmem:[%s7554_s3 + $0xe0] sm:$0xff]  ;;  %v3985_v35 = vld [vmem:[%s7554_s3 + $0x1f0] sm:$0xff] }
 0x27e   :  { %3917 = vmatmul.msk.f32.gmra.mxu0 %vm84_vm1, %v6201_v62  ;;  %3926 = vmatmul.msk.f32.gmra.mxu1 %vm84_vm1, %v6201_v62  ;;  %v1143_v19 = vadd.f32 %v7640_v36, %v887_v51  ;;  %v3936_v47 = vld [vmem:[%s7553_s0 + $0x60] sm:$0xff]  ;;  %v2671_v21 = vld [vmem:[%s7554_s3 + $0xb0] sm:$0xff] }
 0x27f   :  { %3943 = vmatmul.msk.f32.gmra.mxu2 %vm84_vm1, %v3934_v14  ;;  %3952 = vmatmul.msk.f32.gmra.mxu3 %vm84_vm1, %v3934_v14  ;;  %v1653_v31 = vadd.f32 %v6219_v3, %v1397_v61  ;;  %v1142_v3 = vadd.f32 %v7639_v37, %v886_v18  ;;  %v3986_v61 = vld [vmem:[%s7554_s3 + $0x1f8] sm:$0xff]  ;;  %v2667_v40 = vld [vmem:[%s7554_s3 + $0x90] sm:$0xff]  ;;  %v2665_v37 = vld [vmem:[%s7554_s3 + $0x80] sm:$0xff] }
 0x280   :  { %v1399_v10 = vadd.f32 %v7642_v63, %v1143_v19  ;;  %2755 = vmatpush.msra.mxu2 %v2677_v6  ;;  %2714 = vmatpush.msra.mxu0 %v3985_v35  ;;  %v3982_v18 = vld [vmem:[%s7554_s3 + $0x1d8] sm:$0xff]  ;;  %v3977_v36 = vld [vmem:[%s7554_s3 + $0x1b0] sm:$0xff]  ;;  %v3975_v63 = vld [vmem:[%s7554_s3 + $0x1a0] sm:$0xff] }
 0x281   :  { %v1398_v20 = vadd.f32 %v7641_v11, %v1142_v3  ;;  %2734 = vmatpush.msra.mxu1 %v3986_v61  ;;  %v2666_v3 = vld [vmem:[%s7554_s3 + $0x88] sm:$0xff]  ;;  %v3978_v19 = vld [vmem:[%s7554_s3 + $0x1b8] sm:$0xff]  ;;  %v2663_v11 = vld [vmem:[%s7554_s3 + $0x70] sm:$0xff] }
 0x282   :  { %v1977_v28 = vpop.f32.mrf.mxu2  ;;  %v2018_v62 = vpop.f32.mrf.mxu3  ;;  %v1655_v55 = vadd.f32 %v6237_v22, %v1399_v10  ;;  %v3976_v10 = vld [vmem:[%s7554_s3 + $0x1a8] sm:$0xff]  ;;  %v2657_v61 = vld [vmem:[%s7554_s3 + $0x40] sm:$0xff] }
 0x283   :  { %v6386_v34 = vadd.f32 %v1977_v28, %v6212_v60  ;;  %v6389_v38 = vadd.f32 %v2018_v62, %v6215_v24  ;;  %v1849_v1 = vpop.f32.mrf.mxu0  ;;  %v1890_v0 = vpop.f32.mrf.mxu1  ;;  %v2680_v60 = vld [vmem:[%s7554_s3 + $0xf8] sm:$0xff]  ;;  %v2678_v24 = vld [vmem:[%s7554_s3 + $0xe8] sm:$0xff]  ;;  %v1654_v13 = vadd.f32 %v6235_v5, %v1398_v20 }
 0x284   :  { %v6393_v32 = vadd.f32 %v1849_v1, %v1652_v7  ;;  %v6395_v41 = vadd.f32 %v1890_v0, %v1653_v31  ;;  %2774 = vmatpush.msra.mxu3 %v2680_v60  ;;  %v3983_v7 = vld [vmem:[%s7554_s3 + $0x1e0] sm:$0xff]  ;;  %v2670_v28 = vld [vmem:[%s7554_s3 + $0xa8] sm:$0xff]  ;;  %v3981_v0 = vld [vmem:[%s7554_s3 + $0x1d0] sm:$0xff] }
 0x285   :  { %v2669_v31 = vld [vmem:[%s7554_s3 + $0xa0] sm:$0xff]  ;;  %2715 = vmatpush.msra.mxu0 %v3983_v7  ;;  %v2664_v20 = vld [vmem:[%s7554_s3 + $0x78] sm:$0xff]  ;;  %v3972_v35 = vld [vmem:[%s7554_s3 + $0x188] sm:$0xff] }
 0x286   :  { %3918 = vmatmul.msk.f32.gmra.mxu0 %vm84_vm1, %v5822_v58  ;;  %3927 = vmatmul.msk.f32.gmra.mxu1 %vm84_vm1, %v5822_v58  ;;  %v2675_v58 = vld [vmem:[%s7554_s3 + $0xd0] sm:$0xff]  ;;  %v3970_v7 = vld [vmem:[%s7554_s3 + $0x178] sm:$0xff] }
 0x287   :  { %3944 = vmatmul.msk.f32.gmra.mxu2 %vm84_vm1, %v6040_v15  ;;  %3953 = vmatmul.msk.f32.gmra.mxu3 %vm84_vm1, %v6040_v15  ;;  %v2676_v15 = vld [vmem:[%s7554_s3 + $0xd8] sm:$0xff] }
 0x288   :  { %2775 = vmatpush.msra.mxu3 %v2678_v24  ;;  %2756 = vmatpush.msra.mxu2 %v2675_v58  ;;  %v2668_v24 = vld [vmem:[%s7554_s3 + $0x98] sm:$0xff]  ;;  %v3973_v58 = vld [vmem:[%s7554_s3 + $0x190] sm:$0xff] }
 0x289   :  { %2716 = vmatpush.msra.mxu0 %v3981_v0  ;;  %v7644_v0 = vld [vmem:[#allocation18_spill] sm:$0xff] }
 0x28a   :  { %v1980_v45 = vpop.f32.mrf.mxu2  ;;  %v2021_v9 = vpop.f32.mrf.mxu3  ;;  %2776 = vmatpush.msra.mxu3 %v2676_v15  ;;  %v3974_v15 = vld [vmem:[%s7554_s3 + $0x198] sm:$0xff] }
 0x28b   :  { %v6430_v43 = vadd.f32 %v1980_v45, %v6230_v42  ;;  %v6433_v29 = vadd.f32 %v2021_v9, %v6233_v23  ;;  %v1852_v14 = vpop.f32.mrf.mxu0  ;;  %v1893_v5 = vpop.f32.mrf.mxu1  ;;  %v2673_v42 = vld [vmem:[%s7554_s3 + $0xc0] sm:$0xff]  ;;  %v2674_v23 = vld [vmem:[%s7554_s3 + $0xc8] sm:$0xff] }
 0x28c   :  { %v6435_v22 = vadd.f32 %v1852_v14, %v1654_v13  ;;  %v6437_v52 = vadd.f32 %v1893_v5, %v1655_v55  ;;  %2757 = vmatpush.msra.mxu2 %v2673_v42  ;;  %2777 = vmatpush.msra.mxu3 %v2674_v23  ;;  %v2661_v13 = vld [vmem:[%s7554_s3 + $0x60] sm:$0xff]  ;;  %v2662_v55 = vld [vmem:[%s7554_s3 + $0x68] sm:$0xff]  ;;  %v2659_v14 = vld [vmem:[%s7554_s3 + $0x50] sm:$0xff] }
 0x28d   :  { %v2660_v42 = vld [vmem:[%s7554_s3 + $0x58] sm:$0xff]  ;;  %v3971_v23 = vld [vmem:[%s7554_s3 + $0x180] sm:$0xff] }
 0x28e   :  { %3919 = vmatmul.msk.f32.gmra.mxu0 %vm84_vm1, %v6242_v8  ;;  %3928 = vmatmul.msk.f32.gmra.mxu1 %vm84_vm1, %v6242_v8  ;;  %v3984_v8 = vld [vmem:[%s7554_s3 + $0x1e8] sm:$0xff] }
 0x28f   :  { %3945 = vmatmul.msk.f32.gmra.mxu2 %vm84_vm1, %v3936_v47  ;;  %3954 = vmatmul.msk.f32.gmra.mxu3 %vm84_vm1, %v3936_v47 }
 0x290   :  { %2758 = vmatpush.msra.mxu2 %v2671_v21  ;;  %2778 = vmatpush.msra.mxu3 %v2672_v26  ;;  %v2658_v21 = vld [vmem:[%s7554_s3 + $0x48] sm:$0xff]  ;;  %v3969_v26 = vld [vmem:[%s7554_s3 + $0x170] sm:$0xff] }
 0x291   :  { %2735 = vmatpush.msra.mxu1 %v3984_v8  ;;  %v2655_v8 = vld [vmem:[%s7554_s3 + $0x30] sm:$0xff] }
 0x292   :  { %v1983_v62 = vpop.f32.mrf.mxu2  ;;  %v2024_v1 = vpop.f32.mrf.mxu3  ;;  %2759 = vmatpush.msra.mxu2 %v2669_v31  ;;  %2779 = vmatpush.msra.mxu3 %v2670_v28  ;;  %v2656_v31 = vld [vmem:[%s7554_s3 + $0x38] sm:$0xff]  ;;  %v3967_v28 = vld [vmem:[%s7554_s3 + $0x160] sm:$0xff] }
 0x293   :  { %v6488_v51 = vadd.f32 %v1983_v62, %v6253_v48  ;;  %v6491_v50 = vadd.f32 %v2024_v1, %v6256_v54  ;;  %v6493_v60 = vpop.f32.mrf.mxu0  ;;  %v6495_v6 = vpop.f32.mrf.mxu1  ;;  %2736 = vmatpush.msra.mxu1 %v3982_v18  ;;  %v3979_v48 = vld [vmem:[%s7554_s3 + $0x1c0] sm:$0xff]  ;;  %v3980_v54 = vld [vmem:[%s7554_s3 + $0x1c8] sm:$0xff]  ;;  %v7643_v1 = vld [vmem:[#allocation8_spill] sm:$0xff] }
 0x294   :  { %2760 = vmatpush.msra.mxu2 %v2667_v40  ;;  %2780 = vmatpush.msra.mxu3 %v2668_v24  ;;  %v3968_v62 = vld [vmem:[%s7554_s3 + $0x168] sm:$0xff]  ;;  %v622_v18 = vadd.f32 %v7644_v0, %v7643_v1  ;;  %v7645_v40 = vld [vmem:[#allocation9_spill] sm:$0xff]  ;;  %v7652_v0 = vld [vmem:[#allocation52_spill] sm:$0xff] }
 0x295   :  { %2717 = vmatpush.msra.mxu0 %v3979_v48  ;;  %2737 = vmatpush.msra.mxu1 %v3980_v54  ;;  %v7646_v24 = vld [vmem:[#allocation19_spill] sm:$0xff]  ;;  %v2653_v54 = vld [vmem:[%s7554_s3 + $0x20] sm:$0xff] }
 0x296   :  { %2761 = vmatpush.msra.mxu2 %v2665_v37  ;;  %2781 = vmatpush.msra.mxu3 %v2666_v3  ;;  %v623_v48 = vadd.f32 %v7646_v24, %v7645_v40  ;;  %v2654_v37 = vld [vmem:[%s7554_s3 + $0x28] sm:$0xff]  ;;  %v7647_v3 = vld [vmem:[#allocation28_spill] sm:$0xff]  ;;  %v3962_v24 = vld [vmem:[%s7554_s3 + $0x138] sm:$0xff] }
 0x297   :  { %2718 = vmatpush.msra.mxu0 %v3977_v36  ;;  %2738 = vmatpush.msra.mxu1 %v3978_v19  ;;  %v878_v36 = vadd.f32 %v7647_v3, %v622_v18  ;;  %v7648_v19 = vld [vmem:[#allocation29_spill] sm:$0xff]  ;;  %v3961_v40 = vld [vmem:[%s7554_s3 + $0x130] sm:$0xff]  ;;  %v4047_v3 = vld [vmem:[%s7554_s3 + $0x3e0] sm:$0xff] }
 0x298   :  { %2762 = vmatpush.msra.mxu2 %v2663_v11  ;;  %2782 = vmatpush.msra.mxu3 %v2664_v20  ;;  %v879_v11 = vadd.f32 %v7648_v19, %v623_v48  ;;  %v7653_v48 = vld [vmem:[#allocation10_spill] sm:$0xff]  ;;  %v7655_v19 = vld [vmem:[#allocation11_spill] sm:$0xff] }
 0x299   :  { %2719 = vmatpush.msra.mxu0 %v3975_v63  ;;  %2739 = vmatpush.msra.mxu1 %v3976_v10  ;;  %v3965_v10 = vld [vmem:[%s7554_s3 + $0x150] sm:$0xff] }
 0x29a   :  { %v6536_v45 = vpop.f32.mrf.mxu2  ;;  %v6538_v9 = vpop.f32.mrf.mxu3  ;;  %2763 = vmatpush.msra.mxu2 %v2661_v13  ;;  %2783 = vmatpush.msra.mxu3 %v2662_v55  ;;  %v3966_v13 = vld [vmem:[%s7554_s3 + $0x158] sm:$0xff]  ;;  %v2651_v55 = vld [vmem:[%s7554_s3 + $0x10] sm:$0xff] }
 0x29b   :  { %v6549_v5 = vpop.f32.mrf.mxu0  ;;  %v6551_v47 = vpop.f32.mrf.mxu1  ;;  %2720 = vmatpush.msra.mxu0 %v3973_v58  ;;  %2740 = vmatpush.msra.mxu1 %v3974_v15 }
 0x29c   :  { %2764 = vmatpush.msra.mxu2 %v2659_v14  ;;  %2784 = vmatpush.msra.mxu3 %v2660_v42  ;;  %v2652_v14 = vld [vmem:[%s7554_s3 + $0x18] sm:$0xff]  ;;  %v7649_v42 = vld [vmem:[#allocation39_spill] sm:$0xff] }
 0x29d   :  { %2721 = vmatpush.msra.mxu0 %v3971_v23  ;;  %2741 = vmatpush.msra.mxu1 %v3972_v35  ;;  %v1134_v23 = vadd.f32 %v7649_v42, %v878_v36  ;;  %v7650_v35 = vld [vmem:[#allocation40_spill] sm:$0xff]  ;;  %v4048_v36 = vld [vmem:[%s7554_s3 + $0x3e8] sm:$0xff] }
 0x29e   :  { %2765 = vmatpush.msra.mxu2 %v2657_v61  ;;  %2785 = vmatpush.msra.mxu3 %v2658_v21  ;;  %v1135_v61 = vadd.f32 %v7650_v35, %v879_v11  ;;  %v3963_v21 = vld [vmem:[%s7554_s3 + $0x140] sm:$0xff]  ;;  %v7656_v11 = vld [vmem:[#allocation21_spill] sm:$0xff]  ;;  %v3960_v42 = vld [vmem:[%s7554_s3 + $0x128] sm:$0xff] }
 0x29f   :  { %2722 = vmatpush.msra.mxu0 %v3969_v26  ;;  %2742 = vmatpush.msra.mxu1 %v3970_v7  ;;  %v3964_v26 = vld [vmem:[%s7554_s3 + $0x148] sm:$0xff]  ;;  %v2649_v7 = vld [vmem:[%s7554_s3] sm:$0xff] }
 0x2a0   :  { %2766 = vmatpush.msra.mxu2 %v2655_v8  ;;  %2786 = vmatpush.msra.mxu3 %v2656_v31  ;;  %v2650_v8 = vld [vmem:[%s7554_s3 + $0x8] sm:$0xff]  ;;  %v4049_v31 = vld [vmem:[%s7554_s3 + $0x3f0] sm:$0xff]  ;;  %v1391_v18 = vadd.f32 %v7652_v0, %v1135_v61 }
 0x2a1   :  { %2723 = vmatpush.msra.mxu0 %v3967_v28  ;;  %2743 = vmatpush.msra.mxu1 %v3968_v62  ;;  %v4050_v28 = vld [vmem:[%s7554_s3 + $0x3f8] sm:$0xff]  ;;  %v7651_v62 = vld [vmem:[#allocation51_spill] sm:$0xff] }
 0x2a2   :  { %v6598_v20 = vpop.f32.mrf.mxu2  ;;  %v6600_v63 = vpop.f32.mrf.mxu3  ;;  %2767 = vmatpush.msra.mxu2 %v2653_v54  ;;  %2787 = vmatpush.msra.mxu3 %v2654_v37  ;;  %v1390_v1 = vadd.f32 %v7651_v62, %v1134_v23  ;;  %v7654_v54 = vld [vmem:[#allocation20_spill] sm:$0xff]  ;;  %v7657_v23 = vld [vmem:[#allocation30_spill] sm:$0xff]  ;;  %v7658_v61 = vld [vmem:[#allocation31_spill] sm:$0xff] }
 0x2a3   :  { %v6611_v58 = vpop.f32.mrf.mxu0  ;;  %v6613_v15 = vpop.f32.mrf.mxu1  ;;  %2724 = vmatpush.msra.mxu0 %v3965_v10  ;;  %2744 = vmatpush.msra.mxu1 %v3966_v13  ;;  %v624_v37 = vadd.f32 %v7654_v54, %v7653_v48  ;;  %v625_v10 = vadd.f32 %v7656_v11, %v7655_v19  ;;  %v3958_v62 = vld [vmem:[%s7554_s3 + $0x118] sm:$0xff]  ;;  %v4017_v19 = vld [vmem:[%s7554_s3 + $0x2f0] sm:$0xff] }
 0x2a4   :  { %2768 = vmatpush.msra.mxu2 %v2651_v55  ;;  %2788 = vmatpush.msra.mxu3 %v2652_v14  ;;  %v1646_v13 = vadd.f32 %v6140_v53, %v1390_v1  ;;  %v1647_v55 = vadd.f32 %v6142_v57, %v1391_v18  ;;  %v3959_v14 = vld [vmem:[%s7554_s3 + $0x120] sm:$0xff]  ;;  %v4045_v53 = vld [vmem:[%s7554_s3 + $0x3d0] sm:$0xff]  ;;  %v4046_v57 = vld [vmem:[%s7554_s3 + $0x3d8] sm:$0xff] }
 0x2a5   :  { %2725 = vmatpush.msra.mxu0 %v3963_v21  ;;  %2745 = vmatpush.msra.mxu1 %v3964_v26  ;;  %v880_v35 = vadd.f32 %v7657_v23, %v624_v37  ;;  %v881_v21 = vadd.f32 %v7658_v61, %v625_v10  ;;  %v7659_v1 = vld [vmem:[#allocation41_spill] sm:$0xff] }
 0x2a6   :  { %2769 = vmatpush.msra.mxu2 %v2649_v7  ;;  %2789 = vmatpush.msra.mxu3 %v2650_v8  ;;  %v1902_v26 = vadd.f32 %v6309_v2, %v1646_v13  ;;  %v1903_v7 = vadd.f32 %v6311_v39, %v1647_v55  ;;  %v4043_v39 = vld [vmem:[%s7554_s3 + $0x3c0] sm:$0xff]  ;;  %v4018_v11 = vld [vmem:[%s7554_s3 + $0x2f8] sm:$0xff] }
 0x2a7   :  { %2726 = vmatpush.msra.mxu0 %v3961_v40  ;;  %2746 = vmatpush.msra.mxu1 %v3962_v24  ;;  %v1136_v0 = vadd.f32 %v7659_v1, %v880_v35  ;;  %v4044_v40 = vld [vmem:[%s7554_s3 + $0x3c8] sm:$0xff]  ;;  %v7660_v24 = vld [vmem:[#allocation42_spill] sm:$0xff]  ;;  %v7661_v10 = vld [vmem:[#allocation53_spill] sm:$0xff] }
 0x2a8   :  { %2902 = vmatpush.msrb.mxu2 %v4049_v31  ;;  %2922 = vmatpush.msrb.mxu3 %v4050_v28  ;;  %v3957_v28 = vld [vmem:[%s7554_s3 + $0x110] sm:$0xff]  ;;  %v1137_v48 = vadd.f32 %v7660_v24, %v881_v21  ;;  %v7662_v55 = vld [vmem:[#allocation54_spill] sm:$0xff]  ;;  %v4042_v23 = vld [vmem:[%s7554_s3 + $0x3b8] sm:$0xff] }
 0x2a9   :  { %2727 = vmatpush.msra.mxu0 %v3959_v14  ;;  %2747 = vmatpush.msra.mxu1 %v3960_v42  ;;  %v1392_v13 = vadd.f32 %v7661_v10, %v1136_v0  ;;  %v4041_v42 = vld [vmem:[%s7554_s3 + $0x3b0] sm:$0xff]  ;;  %v4015_v35 = vld [vmem:[%s7554_s3 + $0x2e0] sm:$0xff]  ;;  %v4034_v10 = vld [vmem:[%s7554_s3 + $0x378] sm:$0xff] }
 0x2aa   :  { %v6674_v8 = vpop.f32.mrf.mxu2  ;;  %v6676_v31 = vpop.f32.mrf.mxu3  ;;  %2903 = vmatpush.msrb.mxu2 %v4047_v3  ;;  %2923 = vmatpush.msrb.mxu3 %v4048_v36  ;;  %v3955_v3 = vld [vmem:[%s7554_s3 + $0x100] sm:$0xff]  ;;  %v3956_v36 = vld [vmem:[%s7554_s3 + $0x108] sm:$0xff]  ;;  %v1393_v14 = vadd.f32 %v7662_v55, %v1137_v48 }
 0x2ab   :  { %v2096_v18 = vpop.f32.mrf.mxu0  ;;  %v2137_v2 = vpop.f32.mrf.mxu1  ;;  %2728 = vmatpush.msra.mxu0 %v3957_v28  ;;  %2748 = vmatpush.msra.mxu1 %v3958_v62  ;;  %v4039_v21 = vld [vmem:[%s7554_s3 + $0x3a0] sm:$0xff]  ;;  %v2034_v28 = vadd.f32 %v6328_v33, %v6162_v12  ;;  %v4038_v12 = vld [vmem:[%s7554_s3 + $0x398] sm:$0xff]  ;;  %v4008_v55 = vld [vmem:[%s7554_s3 + $0x2a8] sm:$0xff] }
 0x2ac   :  { %v6692_v54 = vadd.f32 %v2096_v18, %v1902_v26  ;;  %v6694_v37 = vadd.f32 %v2137_v2, %v1903_v7  ;;  %2904 = vmatpush.msrb.mxu2 %v4045_v53  ;;  %2924 = vmatpush.msrb.mxu3 %v4046_v57  ;;  %v4016_v53 = vld [vmem:[%s7554_s3 + $0x2e8] sm:$0xff]  ;;  %v1648_v57 = vadd.f32 %v6164_v46, %v1392_v13  ;;  %v4014_v46 = vld [vmem:[%s7554_s3 + $0x2d8] sm:$0xff]  ;;  %v4035_v48 = vld [vmem:[%s7554_s3 + $0x380] sm:$0xff] }
 0x2ad   :  { %2729 = vmatpush.msra.mxu0 %v3955_v3  ;;  %2749 = vmatpush.msra.mxu1 %v3956_v36  ;;  %v1649_v61 = vadd.f32 %v6166_v44, %v1393_v14  ;;  %v4040_v26 = vld [vmem:[%s7554_s3 + $0x3a8] sm:$0xff]  ;;  %v2033_v7 = vadd.f32 %v6326_v4, %v6159_v25  ;;  %v4013_v44 = vld [vmem:[%s7554_s3 + $0x2d0] sm:$0xff]  ;;  %v4007_v13 = vld [vmem:[%s7554_s3 + $0x2a0] sm:$0xff] }
 0x2ae   :  { %2905 = vmatpush.msrb.mxu2 %v4043_v39  ;;  %2925 = vmatpush.msrb.mxu3 %v4044_v40  ;;  %v1904_v62 = vadd.f32 %v6330_v16, %v1648_v57  ;;  %v4037_v25 = vld [vmem:[%s7554_s3 + $0x390] sm:$0xff]  ;;  %v4012_v39 = vld [vmem:[%s7554_s3 + $0x2c8] sm:$0xff]  ;;  %v4031_v14 = vld [vmem:[%s7554_s3 + $0x360] sm:$0xff] }
 0x2af   :  { %2827 = vmatpush.msrb.mxu0 %v4017_v19  ;;  %2847 = vmatpush.msrb.mxu1 %v4018_v11  ;;  %v1905_v1 = vadd.f32 %v6332_v17, %v1649_v61  ;;  %v4011_v17 = vld [vmem:[%s7554_s3 + $0x2c0] sm:$0xff]  ;;  %v4036_v3 = vld [vmem:[%s7554_s3 + $0x388] sm:$0xff]  ;;  %v4009_v36 = vld [vmem:[%s7554_s3 + $0x2b0] sm:$0xff] }
 0x2b0   :  { %2906 = vmatpush.msrb.mxu2 %v4041_v42  ;;  %2926 = vmatpush.msrb.mxu3 %v4042_v23  ;;  %v4010_v19 = vld [vmem:[%s7554_s3 + $0x2b8] sm:$0xff]  ;;  %v4033_v11 = vld [vmem:[%s7554_s3 + $0x370] sm:$0xff]  ;;  %v4032_v42 = vld [vmem:[%s7554_s3 + $0x368] sm:$0xff] }
 0x2b1   :  { %2828 = vmatpush.msrb.mxu0 %v4015_v35  ;;  %2848 = vmatpush.msrb.mxu1 %v4016_v53  ;;  %v4005_v23 = vld [vmem:[%s7554_s3 + $0x290] sm:$0xff]  ;;  %v4006_v35 = vld [vmem:[%s7554_s3 + $0x298] sm:$0xff] }
 0x2b2   :  { %v2227_v0 = vpop.f32.mrf.mxu2  ;;  %v2268_v18 = vpop.f32.mrf.mxu3  ;;  %2907 = vmatpush.msrb.mxu2 %v4039_v21  ;;  %2927 = vmatpush.msrb.mxu3 %v4040_v26  ;;  %v4029_v61 = vld [vmem:[%s7554_s3 + $0x350] sm:$0xff]  ;;  %v4030_v21 = vld [vmem:[%s7554_s3 + $0x358] sm:$0xff] }
 0x2b3   :  { %v6748_v33 = vadd.f32 %v2227_v0, %v2033_v7  ;;  %v6750_v4 = vadd.f32 %v2268_v18, %v2034_v28  ;;  %v2099_v2 = vpop.f32.mrf.mxu0  ;;  %v2140_v16 = vpop.f32.mrf.mxu1  ;;  %2829 = vmatpush.msrb.mxu0 %v4013_v44  ;;  %2849 = vmatpush.msrb.mxu1 %v4014_v46  ;;  %v4003_v46 = vld [vmem:[%s7554_s3 + $0x280] sm:$0xff]  ;;  %v4028_v0 = vld [vmem:[%s7554_s3 + $0x348] sm:$0xff]  ;;  %v4025_v18 = vld [vmem:[%s7554_s3 + $0x330] sm:$0xff] }
 0x2b4   :  { %v6758_v40 = vadd.f32 %v2099_v2, %v1904_v62  ;;  %v6760_v24 = vadd.f32 %v2140_v16, %v1905_v1  ;;  %2908 = vmatpush.msrb.mxu2 %v4037_v25  ;;  %2928 = vmatpush.msrb.mxu3 %v4038_v12  ;;  %v4004_v62 = vld [vmem:[%s7554_s3 + $0x288] sm:$0xff]  ;;  %v4026_v25 = vld [vmem:[%s7554_s3 + $0x338] sm:$0xff]  ;;  %v3999_v12 = vld [vmem:[%s7554_s3 + $0x260] sm:$0xff] }
 0x2b5   :  { %2830 = vmatpush.msrb.mxu0 %v4011_v17  ;;  %2850 = vmatpush.msrb.mxu1 %v4012_v39  ;;  %v4000_v2 = vld [vmem:[%s7554_s3 + $0x268] sm:$0xff]  ;;  %v4023_v16 = vld [vmem:[%s7554_s3 + $0x320] sm:$0xff]  ;;  %v3997_v39 = vld [vmem:[%s7554_s3 + $0x250] sm:$0xff] }
 0x2b6   :  { %2909 = vmatpush.msrb.mxu2 %v4035_v48  ;;  %2929 = vmatpush.msrb.mxu3 %v4036_v3  ;;  %v4024_v17 = vld [vmem:[%s7554_s3 + $0x328] sm:$0xff]  ;;  %v3998_v48 = vld [vmem:[%s7554_s3 + $0x258] sm:$0xff] }
 0x2b7   :  { %2831 = vmatpush.msrb.mxu0 %v4009_v36  ;;  %2851 = vmatpush.msrb.mxu1 %v4010_v19  ;;  %v4021_v19 = vld [vmem:[%s7554_s3 + $0x310] sm:$0xff] }
 0x2b8   :  { %2910 = vmatpush.msrb.mxu2 %v4033_v11  ;;  %2930 = vmatpush.msrb.mxu3 %v4034_v10  ;;  %v4022_v11 = vld [vmem:[%s7554_s3 + $0x318] sm:$0xff] }
 0x2b9   :  { %2832 = vmatpush.msrb.mxu0 %v4007_v13  ;;  %2852 = vmatpush.msrb.mxu1 %v4008_v55 }
 0x2ba   :  { %v2230_v53 = vpop.f32.mrf.mxu2  ;;  %v2271_v57 = vpop.f32.mrf.mxu3  ;;  %2911 = vmatpush.msrb.mxu2 %v4031_v14  ;;  %2931 = vmatpush.msrb.mxu3 %v4032_v42  ;;  %v3995_v42 = vld [vmem:[%s7554_s3 + $0x240] sm:$0xff] }
 0x2bb   :  { %v6805_v26 = vadd.f32 %v2230_v53, %v6355_v56  ;;  %v6808_v7 = vadd.f32 %v2271_v57, %v6358_v59  ;;  %v2102_v28 = vpop.f32.mrf.mxu0  ;;  %v2143_v44 = vpop.f32.mrf.mxu1  ;;  %2833 = vmatpush.msrb.mxu0 %v4005_v23  ;;  %2853 = vmatpush.msrb.mxu1 %v4006_v35  ;;  %v4027_v59 = vld [vmem:[%s7554_s3 + $0x340] sm:$0xff]  ;;  %v3996_v23 = vld [vmem:[%s7554_s3 + $0x248] sm:$0xff] }
 0x2bc   :  { %v6817_v1 = vadd.f32 %v2102_v28, %v6362_v49  ;;  %v6820_v56 = vadd.f32 %v2143_v44, %v6364_v30  ;;  %2912 = vmatpush.msrb.mxu2 %v4029_v61  ;;  %2932 = vmatpush.msrb.mxu3 %v4030_v21  ;;  %v4001_v49 = vld [vmem:[%s7554_s3 + $0x270] sm:$0xff]  ;;  %v4002_v30 = vld [vmem:[%s7554_s3 + $0x278] sm:$0xff]  ;;  %v4020_v53 = vld [vmem:[%s7554_s3 + $0x308] sm:$0xff] }
 0x2bd   :  { %2834 = vmatpush.msrb.mxu0 %v4003_v46  ;;  %2854 = vmatpush.msrb.mxu1 %v4004_v62  ;;  %v7663_v57 = vld [vmem:[#allocation2_spill] sm:$0xff]  ;;  %v7664_v61 = vld [vmem:[#allocation12_spill] sm:$0xff]  ;;  %v7666_v28 = vld [vmem:[#allocation13_spill] sm:$0xff] }
 0x2be   :  { %2913 = vmatpush.msrb.mxu2 %v4027_v59  ;;  %2933 = vmatpush.msrb.mxu3 %v4028_v0  ;;  %v616_v21 = vadd.f32 %v7664_v61, %v7663_v57  ;;  %v3994_v46 = vld [vmem:[%s7554_s3 + $0x238] sm:$0xff]  ;;  %v7667_v62 = vld [vmem:[#allocation22_spill] sm:$0xff]  ;;  %v7668_v0 = vld [vmem:[#allocation23_spill] sm:$0xff] }
 0x2bf   :  { %2835 = vmatpush.msrb.mxu0 %v4001_v49  ;;  %2855 = vmatpush.msrb.mxu1 %v4002_v30  ;;  %v3991_v30 = vld [vmem:[%s7554_s3 + $0x220] sm:$0xff]  ;;  %v7673_v61 = vld [vmem:[#allocation4_spill] sm:$0xff] }
 0x2c0   :  { %2914 = vmatpush.msrb.mxu2 %v4025_v18  ;;  %2934 = vmatpush.msrb.mxu3 %v4026_v25  ;;  %v872_v59 = vadd.f32 %v7667_v62, %v616_v21  ;;  %v3992_v18 = vld [vmem:[%s7554_s3 + $0x228] sm:$0xff]  ;;  %v7669_v25 = vld [vmem:[#allocation33_spill] sm:$0xff]  ;;  %v7674_v21 = vld [vmem:[#allocation14_spill] sm:$0xff] }
 0x2c1   :  { %2836 = vmatpush.msrb.mxu0 %v3999_v12  ;;  %2856 = vmatpush.msrb.mxu1 %v4000_v2  ;;  %v7670_v2 = vld [vmem:[#allocation34_spill] sm:$0xff]  ;;  %v7678_v62 = vld [vmem:[#allocation24_spill] sm:$0xff] }
 0x2c2   :  { %v2233_v3 = vpop.f32.mrf.mxu2  ;;  %v2274_v36 = vpop.f32.mrf.mxu3  ;;  %2915 = vmatpush.msrb.mxu2 %v4023_v16  ;;  %2935 = vmatpush.msrb.mxu3 %v4024_v17  ;;  %v1128_v12 = vadd.f32 %v7669_v25, %v872_v59 }
 0x2c3   :  { %v6865_v10 = vadd.f32 %v2233_v3, %v6386_v34  ;;  %v6868_v13 = vadd.f32 %v2274_v36, %v6389_v38  ;;  %v2105_v55 = vpop.f32.mrf.mxu0  ;;  %v2146_v14 = vpop.f32.mrf.mxu1  ;;  %2837 = vmatpush.msrb.mxu0 %v3997_v39  ;;  %2857 = vmatpush.msrb.mxu1 %v3998_v48  ;;  %v4019_v38 = vld [vmem:[%s7554_s3 + $0x300] sm:$0xff]  ;;  %v3989_v48 = vld [vmem:[%s7554_s3 + $0x210] sm:$0xff]  ;;  %v3990_v3 = vld [vmem:[%s7554_s3 + $0x218] sm:$0xff] }
 0x2c4   :  { %v6877_v35 = vadd.f32 %v2105_v55, %v6393_v32  ;;  %v6880_v34 = vadd.f32 %v2146_v14, %v6395_v41  ;;  %2916 = vmatpush.msrb.mxu2 %v4021_v19  ;;  %2936 = vmatpush.msrb.mxu3 %v4022_v11  ;;  %v7665_v32 = vld [vmem:[#allocation3_spill] sm:$0xff]  ;;  %v3993_v41 = vld [vmem:[%s7554_s3 + $0x230] sm:$0xff]  ;;  %v7671_v36 = vld [vmem:[#allocation45_spill] sm:$0xff] }
 0x2c5   :  { %v617_v44 = vadd.f32 %v7666_v28, %v7665_v32  ;;  %2838 = vmatpush.msrb.mxu0 %v3995_v42  ;;  %2858 = vmatpush.msrb.mxu1 %v3996_v23  ;;  %v1384_v19 = vadd.f32 %v7671_v36, %v1128_v12  ;;  %v7672_v23 = vld [vmem:[#allocation46_spill] sm:$0xff]  ;;  %v618_v32 = vadd.f32 %v7674_v21, %v7673_v61  ;;  %v7675_v28 = vld [vmem:[#allocation5_spill] sm:$0xff]  ;;  %v7684_v61 = vld [vmem:[#allocation47_spill] sm:$0xff] }
 0x2c6   :  { %2917 = vmatpush.msrb.mxu2 %v4019_v38  ;;  %2937 = vmatpush.msrb.mxu3 %v4020_v53  ;;  %v7681_v12 = vld [vmem:[#allocation69_spill] sm:$0xff] }
 0x2c7   :  { %v873_v49 = vadd.f32 %v7668_v0, %v617_v44  ;;  %2839 = vmatpush.msrb.mxu0 %v3993_v41  ;;  %2859 = vmatpush.msrb.mxu1 %v3994_v46  ;;  %v7676_v44 = vld [vmem:[#allocation15_spill] sm:$0xff]  ;;  %v1640_v41 = vadd.f32 %v6062_v27, %v1384_v19  ;;  %v874_v59 = vadd.f32 %v7678_v62, %v618_v32  ;;  %v7679_v0 = vld [vmem:[#allocation25_spill] sm:$0xff]  ;;  %v7685_v32 = vld [vmem:[#allocation48_spill] sm:$0xff] }
 0x2c9   :  { %v1129_v16 = vadd.f32 %v7670_v2, %v873_v49  ;;  %2840 = vmatpush.msrb.mxu0 %v3991_v30  ;;  %2860 = vmatpush.msrb.mxu1 %v3992_v18  ;;  %v2555_v30 = vld [vmem:[%s7555_s2] sm:$0x3]  ;;  %v7680_v18 = vld [vmem:[#allocation68_spill] sm:$0xff] }
 0x2ca   :  { %v2236_v17 = vpop.f32.mrf.mxu2  ;;  %v2277_v39 = vpop.f32.mrf.mxu3  ;;  %v1896_v25 = vadd.f32 %v7680_v18, %v1640_v41  ;;  %v7692_v18 = vld [vmem:[#allocation26_spill] sm:$0xff] }
 0x2cb   :  { %v6916_v11 = vadd.f32 %v2236_v17, %v6430_v43  ;;  %v6919_v55 = vadd.f32 %v2277_v39, %v6433_v29  ;;  %v2108_v14 = vpop.f32.mrf.mxu0  ;;  %v2149_v42 = vpop.f32.mrf.mxu1  ;;  %v1385_v38 = vadd.f32 %v7672_v23, %v1129_v16  ;;  %2841 = vmatpush.msrb.mxu0 %v3989_v48  ;;  %2861 = vmatpush.msrb.mxu1 %v3990_v3  ;;  %v3987_v43 = vld [vmem:[%s7554_s3 + $0x200] sm:$0xff]  ;;  %v3988_v29 = vld [vmem:[%s7554_s3 + $0x208] sm:$0xff]  ;;  %v7683_v39 = vld [vmem:[#allocation36_spill] sm:$0xff] }
 0x2cc   :  { %v6923_v53 = vadd.f32 %v2108_v14, %v6435_v22  ;;  %v6926_v57 = vadd.f32 %v2149_v42, %v6437_v52  ;;  %v619_v22 = vadd.f32 %v7676_v44, %v7675_v28  ;;  %v7677_v52 = vld [vmem:[#allocation57_spill] sm:$0xff]  ;;  %v7682_v16 = vld [vmem:[#allocation35_spill] sm:$0xff]  ;;  %v2152_v48 = vadd.f32 %v6493_v60, %v1896_v25  ;;  %v7686_v44 = vld [vmem:[#allocation6_spill] sm:$0xff] }
 0x2cd   :  { %v1641_v46 = vadd.f32 %v7677_v52, %v1385_v38  ;;  %2842 = vmatpush.msrb.mxu0 %v3987_v43  ;;  %2862 = vmatpush.msrb.mxu1 %v3988_v29  ;;  %v1130_v17 = vadd.f32 %v7682_v16, %v874_v59  ;;  %v6951_v14 = vperm.slane %v2555_v30, 0  ;;  %v6953_v42 = vperm.slane %v2555_v30, 1  ;;  %v7688_v52 = vld [vmem:[#allocation7_spill] sm:$0xff]  ;;  %v7690_v59 = vld [vmem:[#allocation60_spill] sm:$0xff]  ;;  %v7694_v16 = vld [vmem:[#allocation58_spill] sm:$0xff] }
 0x2ce   :  { %v875_v49 = vadd.f32 %v7679_v0, %v619_v22  ;;  %v7687_v22 = vld [vmem:[#allocation16_spill] sm:$0xff]  ;;  %v7691_v0 = vld [vmem:[#allocation61_spill] sm:$0xff] }
 0x2cf   :  { %v1897_v2 = vadd.f32 %v7681_v12, %v1641_v46  ;;  %v1386_v21 = vadd.f32 %v7684_v61, %v1130_v17  ;;  %v620_v41 = vadd.f32 %v7687_v22, %v7686_v44  ;;  %v7689_v46 = vld [vmem:[#allocation17_spill] sm:$0xff]  ;;  %v7693_v12 = vld [vmem:[#allocation27_spill] sm:$0xff]  ;;  %v7695_v17 = vld [vmem:[#allocation70_spill] sm:$0xff] }
 0x2d0   :  { %v1131_v27 = vadd.f32 %v7683_v39, %v875_v49  ;;  %v621_v62 = vadd.f32 %v7689_v46, %v7688_v52  ;;  %v2027_v39 = vadd.f32 %v7695_v17, %v7694_v16  ;;  %v7701_v44 = vld [vmem:[#allocation38_spill] sm:$0xff] }
 0x2d1   :  { %v2153_v3 = vadd.f32 %v6495_v6, %v1897_v2  ;;  %v876_v25 = vadd.f32 %v7692_v18, %v620_v41 }
 0x2d2   :  { %v2239_v36 = vpop.f32.mrf.mxu2  ;;  %v2280_v19 = vpop.f32.mrf.mxu3  ;;  %v1387_v60 = vadd.f32 %v7685_v32, %v1131_v27  ;;  %v877_v2 = vadd.f32 %v7693_v12, %v621_v62  ;;  %v7696_v27 = vld [vmem:[#allocation59_spill] sm:$0xff]  ;;  %v7700_v32 = vld [vmem:[#allocation37_spill] sm:$0xff] }
 0x2d3   :  { %v6956_v23 = vadd.f32 %v2239_v36, %v6488_v51  ;;  %v6959_v38 = vadd.f32 %v2280_v19, %v6491_v50  ;;  %v2343_v43 = vpop.f32.mrf.mxu0  ;;  %v2384_v29 = vpop.f32.mrf.mxu1  ;;  %v1642_v51 = vadd.f32 %v7690_v59, %v1386_v21  ;;  %v7698_v36 = vld [vmem:[#allocation72_spill] sm:$0xff] }
 0x2d4   :  { %v2408_v28 = vadd.f32 %v2343_v43, %v2152_v48  ;;  %v2409_v6 = vadd.f32 %v2384_v29, %v2153_v3  ;;  %v1643_v49 = vadd.f32 %v7691_v0, %v1387_v60  ;;  %v7697_v48 = vld [vmem:[#allocation71_spill] sm:$0xff]  ;;  %v7699_v43 = vld [vmem:[#allocation73_spill] sm:$0xff]  ;;  %v1132_v60 = vadd.f32 %v7700_v32, %v876_v25  ;;  %v7703_v25 = vld [vmem:[#allocation50_spill] sm:$0xff] }
 0x2d5   :  { %v2028_v3 = vadd.f32 %v7697_v48, %v7696_v27  ;;  %v1898_v19 = vadd.f32 %v7698_v36, %v1642_v51  ;;  %v1133_v22 = vadd.f32 %v7701_v44, %v877_v2  ;;  %v7707_v36 = vld [vmem:[#allocation74_spill] sm:$0xff] }
 0x2d6   :  { %v2561_v50 = vadd.f32 %v6951_v14, %v2408_v28  ;;  %v2562_v30 = vadd.f32 %v6953_v42, %v2409_v6  ;;  %v1899_v29 = vadd.f32 %v7699_v43, %v1643_v49  ;;  %v2283_v28 = vadd.f32 %v6536_v45, %v2027_v39  ;;  %v7708_v43 = vld [vmem:[#allocation63_spill] sm:$0xff] }
 0x2d7   :  { %v2284_v6 = vadd.f32 %v6538_v9, %v2028_v3  ;;  %v2154_v41 = vadd.f32 %v6549_v5, %v1898_v19  ;;  %v1389_v12 = vadd.f32 %v7703_v25, %v1133_v22  ;;  %v7704_v5 = vld [vmem:[#allocation64_spill] sm:$0xff]  ;;  %v7706_v3 = vld [vmem:[#allocation62_spill] sm:$0xff] }
 0x2d8   :  { %v2577_v61 = vmax.f32 %v2561_v50, 0.0  ;;  %v2578_v21 = vmax.f32 %v2562_v30, 0.0  ;;  %v2155_v52 = vadd.f32 %v6551_v47, %v1899_v29  ;;  %v7702_v30 = vld [vmem:[#allocation49_spill] sm:$0xff]  ;;  %v2029_v19 = vadd.f32 %v7707_v36, %v7706_v3  ;;  %v7709_v29 = vld [vmem:[#allocation75_spill] sm:$0xff] }
 0x2d9   :  { %v1388_v18 = vadd.f32 %v7702_v30, %v1132_v60  ;;  %v7705_v47 = vld [vmem:[#allocation65_spill] sm:$0xff]  ;;  %v7710_v60 = vld [vmem:[#allocation76_spill] sm:$0xff]  ;;  %v7714_v3 = vld [vmem:[#allocation67_spill] sm:$0xff] }
 0x2da   :  { %v2593_v46 = vmax.f32 %v2577_v61, %v2578_v21  ;;  %v2474_v62 = vpop.f32.mrf.mxu2  ;;  %v2515_v59 = vpop.f32.mrf.mxu3  ;;  %v1645_v39 = vadd.f32 %v7705_v47, %v1389_v12  ;;  %v2030_v61 = vadd.f32 %v7709_v29, %v7708_v43  ;;  %v7715_v36 = vld [vmem:[#allocation79_spill] sm:$0xff] }
 0x2db   :  { %v2539_v51 = vadd.f32 %v2474_v62, %v2283_v28  ;;  %v2540_v0 = vadd.f32 %v2515_v59, %v2284_v6  ;;  %v2346_v49 = vpop.f32.mrf.mxu0  ;;  %v2387_v50 = vpop.f32.mrf.mxu1  ;;  %v1644_v17 = vadd.f32 %v7704_v5, %v1388_v18  ;;  %v7711_v6 = vld [vmem:[#allocation77_spill] sm:$0xff]  ;;  %v4112_v5 = vld [vmem:[%s7554_s3 + $0x5e8] sm:$0xff] }
 0x2dc   :  { %v2410_v45 = vadd.f32 %v2346_v49, %v2154_v41  ;;  %v2411_v16 = vadd.f32 %v2387_v50, %v2155_v52  ;;  %v1901_v44 = vadd.f32 %v7711_v6, %v1645_v39  ;;  %v2285_v52 = vadd.f32 %v6598_v20, %v2029_v19  ;;  %v4114_v20 = vld [vmem:[%s7554_s3 + $0x5f8] sm:$0xff]  ;;  %v7712_v39 = vld [vmem:[#allocation66_spill] sm:$0xff] }
 0x2dd   :  { %v2601_v9 = vadd.f32 %v6951_v14, %v2539_v51  ;;  %v2602_v2 = vadd.f32 %v6953_v42, %v2540_v0  ;;  %v1900_v28 = vadd.f32 %v7710_v60, %v1644_v17  ;;  %v2286_v62 = vadd.f32 %v6600_v63, %v2030_v61  ;;  %v4109_v61 = vld [vmem:[%s7554_s3 + $0x5d0] sm:$0xff] }
 0x2de   :  { %v2563_v27 = vadd.f32 %v6951_v14, %v2410_v45  ;;  %v2564_v48 = vadd.f32 %v6953_v42, %v2411_v16  ;;  %v2157_v0 = vadd.f32 %v6613_v15, %v1901_v44  ;;  %v2032_v19 = vadd.f32 %v7715_v36, %v7714_v3  ;;  %v4075_v36 = vld [vmem:[%s7554_s3 + $0x4c0] sm:$0xff] }
 0x2df   :  { %v2617_v21 = vmax.f32 %v2601_v9, 0.0  ;;  %v2618_v32 = vmax.f32 %v2602_v2, 0.0  ;;  %v2156_v51 = vadd.f32 %v6611_v58, %v1900_v28  ;;  %v4113_v9 = vld [vmem:[%s7554_s3 + $0x5f0] sm:$0xff] }
 0x2e0   :  { %v2579_v22 = vmax.f32 %v2563_v27, 0.0  ;;  %v2580_v41 = vmax.f32 %v2564_v48, 0.0  ;;  %v7713_v27 = vld [vmem:[#allocation78_spill] sm:$0xff]  ;;  %v2288_v6 = vadd.f32 %v6676_v31, %v2032_v19  ;;  %v4081_v31 = vld [vmem:[%s7554_s3 + $0x4f0] sm:$0xff]  ;;  %v4076_v19 = vld [vmem:[%s7554_s3 + $0x4c8] sm:$0xff] }
 0x2e1   :  { %v2633_v59 = vmax.f32 %v2617_v21, %v2618_v32  ;;  %v2031_v48 = vadd.f32 %v7713_v27, %v7712_v39  ;;  %v4110_v21 = vld [vmem:[%s7554_s3 + $0x5d8] sm:$0xff]  ;;  %v4101_v27 = vld [vmem:[%s7554_s3 + $0x590] sm:$0xff] }
 0x2e2   :  { %v2594_v49 = vmax.f32 %v2579_v22, %v2580_v41  ;;  %v2477_v50 = vpop.f32.mrf.mxu2  ;;  %v2518_v30 = vpop.f32.mrf.mxu3  ;;  %v4107_v22 = vld [vmem:[%s7554_s3 + $0x5c0] sm:$0xff]  ;;  %v4108_v41 = vld [vmem:[%s7554_s3 + $0x5c8] sm:$0xff] }
 0x2e3   :  { %v2641_v18 = vmax.f32 %v2593_v46, %v2633_v59  ;;  %v2541_v25 = vadd.f32 %v2477_v50, %v2285_v52  ;;  %v2542_v12 = vadd.f32 %v2518_v30, %v2286_v62  ;;  %v2349_v45 = vpop.f32.mrf.mxu0  ;;  %v2390_v16 = vpop.f32.mrf.mxu1  ;;  %v4111_v46 = vld [vmem:[%s7554_s3 + $0x5e0] sm:$0xff]  ;;  %v2287_v28 = vadd.f32 %v6674_v8, %v2031_v48  ;;  %v4102_v48 = vld [vmem:[%s7554_s3 + $0x598] sm:$0xff] }
 0x2e4   :  { %v2412_v63 = vadd.f32 %v2349_v45, %v2156_v51  ;;  %v2413_v58 = vadd.f32 %v2390_v16, %v2157_v0  ;;  %v4106_v45 = vld [vmem:[%s7554_s3 + $0x5b8] sm:$0xff] }
 0x2e5   :  { %v2603_v15 = vadd.f32 %v6951_v14, %v2541_v25  ;;  %v2604_v2 = vadd.f32 %v6953_v42, %v2542_v12  ;;  %2770 = vmatmul.f32.vlgmr.msra.gmra.mxu2 %v2641_v18  ;;  %2790 = vmatmul.f32.vlgmr.msra.gmra.mxu3 %v2641_v18  ;;  %v4082_v18 = vld [vmem:[%s7554_s3 + $0x4f8] sm:$0xff] }
 0x2e6   :  { %v2565_v17 = vadd.f32 %v6951_v14, %v2412_v63  ;;  %v2566_v47 = vadd.f32 %v6953_v42, %v2413_v58  ;;  %3052 = vmatpush.msra.mxu2 %v4113_v9  ;;  %3072 = vmatpush.msra.mxu3 %v4114_v20  ;;  %v4103_v58 = vld [vmem:[%s7554_s3 + $0x5a0] sm:$0xff] }
 0x2e7   :  { %v2619_v43 = vmax.f32 %v2603_v15, 0.0  ;;  %v2620_v29 = vmax.f32 %v2604_v2, 0.0  ;;  %v4104_v15 = vld [vmem:[%s7554_s3 + $0x5a8] sm:$0xff] }
 0x2e8   :  { %v2581_v32 = vmax.f32 %v2565_v17, 0.0  ;;  %v2582_v60 = vmax.f32 %v2566_v47, 0.0  ;;  %3053 = vmatpush.msra.mxu2 %v4111_v46  ;;  %3073 = vmatpush.msra.mxu3 %v4112_v5  ;;  %v4077_v5 = vld [vmem:[%s7554_s3 + $0x4d0] sm:$0xff]  ;;  %v4078_v17 = vld [vmem:[%s7554_s3 + $0x4d8] sm:$0xff] }
 0x2e9   :  { %v2634_v44 = vmax.f32 %v2619_v43, %v2620_v29 }
 0x2ea   :  { %v2595_v52 = vmax.f32 %v2581_v32, %v2582_v60  ;;  %3054 = vmatpush.msra.mxu2 %v4109_v61  ;;  %3074 = vmatpush.msra.mxu3 %v4110_v21  ;;  %v2480_v62 = vpop.f32.mrf.mxu2  ;;  %v2521_v59 = vpop.f32.mrf.mxu3  ;;  %v4099_v21 = vld [vmem:[%s7554_s3 + $0x580] sm:$0xff]  ;;  %v4100_v32 = vld [vmem:[%s7554_s3 + $0x588] sm:$0xff] }
 0x2eb   :  { %v2642_v51 = vmax.f32 %v2594_v49, %v2634_v44  ;;  %v2543_v0 = vadd.f32 %v2480_v62, %v2287_v28  ;;  %v2544_v50 = vadd.f32 %v2521_v59, %v2288_v6  ;;  %v2352_v8 = vpop.f32.mrf.mxu0  ;;  %v2393_v30 = vpop.f32.mrf.mxu1  ;;  %v4105_v49 = vld [vmem:[%s7554_s3 + $0x5b0] sm:$0xff] }
 0x2ec   :  { %3055 = vmatpush.msra.mxu2 %v4107_v22  ;;  %3075 = vmatpush.msra.mxu3 %v4108_v41  ;;  %v2414_v25 = vadd.f32 %v2352_v8, %v6692_v54  ;;  %v2415_v12 = vadd.f32 %v2393_v30, %v6694_v37  ;;  %v4079_v54 = vld [vmem:[%s7554_s3 + $0x4e0] sm:$0xff]  ;;  %v4080_v37 = vld [vmem:[%s7554_s3 + $0x4e8] sm:$0xff]  ;;  %v4073_v59 = vld [vmem:[%s7554_s3 + $0x4b0] sm:$0xff] }
 0x2ed   :  { %v2605_v16 = vadd.f32 %v6951_v14, %v2543_v0  ;;  %v2606_v9 = vadd.f32 %v6953_v42, %v2544_v50  ;;  %2730 = vmatmul.f32.vlgmr.msra.gmra.mxu0 %v2642_v51  ;;  %2750 = vmatmul.f32.vlgmr.msra.gmra.mxu1 %v2642_v51  ;;  %v4071_v50 = vld [vmem:[%s7554_s3 + $0x4a0] sm:$0xff]  ;;  %v4072_v8 = vld [vmem:[%s7554_s3 + $0x4a8] sm:$0xff] }
 0x2ee   :  { %v2567_v20 = vadd.f32 %v6951_v14, %v2414_v25  ;;  %v2568_v63 = vadd.f32 %v6953_v42, %v2415_v12  ;;  %2977 = vmatpush.msra.mxu0 %v4081_v31  ;;  %2997 = vmatpush.msra.mxu1 %v4082_v18  ;;  %v4095_v18 = vld [vmem:[%s7554_s3 + $0x560] sm:$0xff]  ;;  %v4096_v25 = vld [vmem:[%s7554_s3 + $0x568] sm:$0xff] }
 0x2ef   :  { %v2621_v2 = vmax.f32 %v2605_v16, 0.0  ;;  %v2622_v46 = vmax.f32 %v2606_v9, 0.0  ;;  %3056 = vmatpush.msra.mxu2 %v4105_v49  ;;  %3076 = vmatpush.msra.mxu3 %v4106_v45  ;;  %v4069_v45 = vld [vmem:[%s7554_s3 + $0x490] sm:$0xff]  ;;  %v4070_v16 = vld [vmem:[%s7554_s3 + $0x498] sm:$0xff] }
 0x2f0   :  { %v2583_v47 = vmax.f32 %v2567_v20, 0.0  ;;  %v2584_v39 = vmax.f32 %v2568_v63, 0.0  ;;  %2978 = vmatpush.msra.mxu0 %v4079_v54  ;;  %2998 = vmatpush.msra.mxu1 %v4080_v37  ;;  %v4093_v54 = vld [vmem:[%s7554_s3 + $0x550] sm:$0xff]  ;;  %v4094_v37 = vld [vmem:[%s7554_s3 + $0x558] sm:$0xff] }
 0x2f1   :  { %v2635_v3 = vmax.f32 %v2621_v2, %v2622_v46  ;;  %3057 = vmatpush.msra.mxu2 %v4103_v58  ;;  %3077 = vmatpush.msra.mxu3 %v4104_v15  ;;  %v4067_v15 = vld [vmem:[%s7554_s3 + $0x480] sm:$0xff]  ;;  %v4068_v2 = vld [vmem:[%s7554_s3 + $0x488] sm:$0xff] }
 0x2f2   :  { %v2596_v43 = vmax.f32 %v2583_v47, %v2584_v39  ;;  %2979 = vmatpush.msra.mxu0 %v4077_v5  ;;  %2999 = vmatpush.msra.mxu1 %v4078_v17  ;;  %v2483_v29 = vpop.f32.mrf.mxu2  ;;  %v2524_v61 = vpop.f32.mrf.mxu3  ;;  %v4091_v47 = vld [vmem:[%s7554_s3 + $0x540] sm:$0xff]  ;;  %v4092_v39 = vld [vmem:[%s7554_s3 + $0x548] sm:$0xff] }
 0x2f3   :  { %v2643_v60 = vmax.f32 %v2595_v52, %v2635_v3  ;;  %3058 = vmatpush.msra.mxu2 %v4101_v27  ;;  %3078 = vmatpush.msra.mxu3 %v4102_v48  ;;  %v2545_v28 = vadd.f32 %v2483_v29, %v6748_v33  ;;  %v2546_v6 = vadd.f32 %v2524_v61, %v6750_v4  ;;  %v2355_v44 = vpop.f32.mrf.mxu0  ;;  %v2396_v22 = vpop.f32.mrf.mxu1  ;;  %v4074_v52 = vld [vmem:[%s7554_s3 + $0x4b8] sm:$0xff]  ;;  %v4089_v29 = vld [vmem:[%s7554_s3 + $0x530] sm:$0xff] }
 0x2f4   :  { %2980 = vmatpush.msra.mxu0 %v4075_v36  ;;  %3000 = vmatpush.msra.mxu1 %v4076_v19  ;;  %v2416_v41 = vadd.f32 %v2355_v44, %v6758_v40  ;;  %v2417_v62 = vadd.f32 %v2396_v22, %v6760_v24  ;;  %v4097_v40 = vld [vmem:[%s7554_s3 + $0x570] sm:$0xff]  ;;  %v4098_v24 = vld [vmem:[%s7554_s3 + $0x578] sm:$0xff]  ;;  %v4087_v22 = vld [vmem:[%s7554_s3 + $0x520] sm:$0xff] }
 0x2f5   :  { %v2607_v33 = vadd.f32 %v6951_v14, %v2545_v28  ;;  %v2608_v4 = vadd.f32 %v6953_v42, %v2546_v6  ;;  %3059 = vmatpush.msra.mxu2 %v4099_v21  ;;  %3079 = vmatpush.msra.mxu3 %v4100_v32  ;;  %v4065_v19 = vld [vmem:[%s7554_s3 + $0x470] sm:$0xff]  ;;  %v4090_v61 = vld [vmem:[%s7554_s3 + $0x538] sm:$0xff]  ;;  %v4064_v28 = vld [vmem:[%s7554_s3 + $0x468] sm:$0xff] }
 0x2f6   :  { %v2569_v51 = vadd.f32 %v6951_v14, %v2416_v41  ;;  %v2570_v0 = vadd.f32 %v6953_v42, %v2417_v62  ;;  %2843 = vmatmul.f32.vlgmr.msrb.gmra.mxu0 %v2643_v60  ;;  %2863 = vmatmul.f32.vlgmr.msrb.gmra.mxu1 %v2643_v60  ;;  %v4063_v60 = vld [vmem:[%s7554_s3 + $0x460] sm:$0xff]  ;;  %v4088_v41 = vld [vmem:[%s7554_s3 + $0x528] sm:$0xff] }
 0x2f7   :  { %v2623_v30 = vmax.f32 %v2607_v33, 0.0  ;;  %v2624_v31 = vmax.f32 %v2608_v4, 0.0  ;;  %2981 = vmatpush.msra.mxu0 %v4073_v59  ;;  %3001 = vmatpush.msra.mxu1 %v4074_v52  ;;  %v4061_v59 = vld [vmem:[%s7554_s3 + $0x450] sm:$0xff]  ;;  %v4062_v52 = vld [vmem:[%s7554_s3 + $0x458] sm:$0xff] }
 0x2f8   :  { %v2585_v12 = vmax.f32 %v2569_v51, 0.0  ;;  %v2586_v49 = vmax.f32 %v2570_v0, 0.0  ;;  %3060 = vmatpush.msra.mxu2 %v4097_v40  ;;  %3080 = vmatpush.msra.mxu3 %v4098_v24  ;;  %v4085_v4 = vld [vmem:[%s7554_s3 + $0x510] sm:$0xff]  ;;  %v4086_v40 = vld [vmem:[%s7554_s3 + $0x518] sm:$0xff] }
 0x2f9   :  { %v2636_v9 = vmax.f32 %v2623_v30, %v2624_v31  ;;  %2982 = vmatpush.msra.mxu0 %v4071_v50  ;;  %3002 = vmatpush.msra.mxu1 %v4072_v8  ;;  %v4059_v30 = vld [vmem:[%s7554_s3 + $0x440] sm:$0xff]  ;;  %v4060_v31 = vld [vmem:[%s7554_s3 + $0x448] sm:$0xff] }
 0x2fa   :  { %v2597_v20 = vmax.f32 %v2585_v12, %v2586_v49  ;;  %3061 = vmatpush.msra.mxu2 %v4095_v18  ;;  %3081 = vmatpush.msra.mxu3 %v4096_v25  ;;  %v2486_v63 = vpop.f32.mrf.mxu2  ;;  %v2527_v58 = vpop.f32.mrf.mxu3  ;;  %v4083_v12 = vld [vmem:[%s7554_s3 + $0x500] sm:$0xff] }
 0x2fb   :  { %v2644_v46 = vmax.f32 %v2596_v43, %v2636_v9  ;;  %2983 = vmatpush.msra.mxu0 %v4069_v45  ;;  %3003 = vmatpush.msra.mxu1 %v4070_v16  ;;  %v2547_v5 = vadd.f32 %v2486_v63, %v6805_v26  ;;  %v2548_v17 = vadd.f32 %v2527_v58, %v6808_v7  ;;  %v2358_v27 = vpop.f32.mrf.mxu0  ;;  %v2399_v48 = vpop.f32.mrf.mxu1  ;;  %v4066_v43 = vld [vmem:[%s7554_s3 + $0x478] sm:$0xff]  ;;  %v4177_v9 = vld [vmem:[%s7554_s3 + $0x7f0] sm:$0xff] }
 0x2fc   :  { %3062 = vmatpush.msra.mxu2 %v4093_v54  ;;  %3082 = vmatpush.msra.mxu3 %v4094_v37  ;;  %v2418_v3 = vadd.f32 %v2358_v27, %v6817_v1  ;;  %v2419_v36 = vadd.f32 %v2399_v48, %v6820_v56  ;;  %v4178_v54 = vld [vmem:[%s7554_s3 + $0x7f8] sm:$0xff]  ;;  %v4057_v37 = vld [vmem:[%s7554_s3 + $0x430] sm:$0xff] }
 0x2fd   :  { %v2609_v26 = vadd.f32 %v6951_v14, %v2547_v5  ;;  %v2610_v7 = vadd.f32 %v6953_v42, %v2548_v17  ;;  %2984 = vmatpush.msra.mxu0 %v4067_v15  ;;  %3004 = vmatpush.msra.mxu1 %v4068_v2  ;;  %v4175_v15 = vld [vmem:[%s7554_s3 + $0x7e0] sm:$0xff]  ;;  %v4176_v2 = vld [vmem:[%s7554_s3 + $0x7e8] sm:$0xff]  ;;  %v4173_v27 = vld [vmem:[%s7554_s3 + $0x7d0] sm:$0xff] }
 0x2fe   :  { %3063 = vmatpush.msra.mxu2 %v4091_v47  ;;  %3083 = vmatpush.msra.mxu3 %v4092_v39  ;;  %v2571_v1 = vadd.f32 %v6951_v14, %v2418_v3  ;;  %v2572_v56 = vadd.f32 %v6953_v42, %v2419_v36  ;;  %v4055_v17 = vld [vmem:[%s7554_s3 + $0x420] sm:$0xff]  ;;  %v4056_v47 = vld [vmem:[%s7554_s3 + $0x428] sm:$0xff]  ;;  %v4174_v48 = vld [vmem:[%s7554_s3 + $0x7d8] sm:$0xff] }
 0x2ff   :  { %v2625_v21 = vmax.f32 %v2609_v26, 0.0  ;;  %v2626_v32 = vmax.f32 %v2610_v7, 0.0  ;;  %2918 = vmatmul.f32.vlgmr.msrb.gmra.mxu2 %v2644_v46  ;;  %2938 = vmatmul.f32.vlgmr.msrb.gmra.mxu3 %v2644_v46  ;;  %v4053_v36 = vld [vmem:[%s7554_s3 + $0x410] sm:$0xff]  ;;  %v4054_v26 = vld [vmem:[%s7554_s3 + $0x418] sm:$0xff] }
 0x300   :  { %v2587_v6 = vmax.f32 %v2571_v1, 0.0  ;;  %v2588_v44 = vmax.f32 %v2572_v56, 0.0  ;;  %2985 = vmatpush.msra.mxu0 %v4065_v19  ;;  %3005 = vmatpush.msra.mxu1 %v4066_v43 }
 0x301   :  { %v2637_v62 = vmax.f32 %v2625_v21, %v2626_v32  ;;  %3064 = vmatpush.msra.mxu2 %v4089_v29  ;;  %3084 = vmatpush.msra.mxu3 %v4090_v61  ;;  %v4171_v29 = vld [vmem:[%s7554_s3 + $0x7c0] sm:$0xff]  ;;  %v4172_v61 = vld [vmem:[%s7554_s3 + $0x7c8] sm:$0xff] }
 0x302   :  { %v2598_v33 = vmax.f32 %v2587_v6, %v2588_v44  ;;  %2986 = vmatpush.msra.mxu0 %v4063_v60  ;;  %3006 = vmatpush.msra.mxu1 %v4064_v28  ;;  %v2489_v24 = vpop.f32.mrf.mxu2  ;;  %v2530_v51 = vpop.f32.mrf.mxu3  ;;  %v4051_v60 = vld [vmem:[%s7554_s3 + $0x400] sm:$0xff] }
 0x303   :  { %v7191_v0 = vmax.f32 %v2597_v20, %v2637_v62  ;;  %3065 = vmatpush.msra.mxu2 %v4087_v22  ;;  %3085 = vmatpush.msra.mxu3 %v4088_v41  ;;  %v2549_v50 = vadd.f32 %v2489_v24, %v6865_v10  ;;  %v2550_v8 = vadd.f32 %v2530_v51, %v6868_v13  ;;  %v2361_v18 = vpop.f32.mrf.mxu0  ;;  %v2402_v25 = vpop.f32.mrf.mxu1  ;;  %v4084_v10 = vld [vmem:[%s7554_s3 + $0x508] sm:$0xff]  ;;  %v4058_v20 = vld [vmem:[%s7554_s3 + $0x438] sm:$0xff]  ;;  %v4145_v62 = vld [vmem:[%s7554_s3 + $0x6f0] sm:$0xff] }
 0x304   :  { %2987 = vmatpush.msra.mxu0 %v4061_v59  ;;  %3007 = vmatpush.msra.mxu1 %v4062_v52  ;;  %v2420_v13 = vadd.f32 %v2361_v18, %v6877_v35  ;;  %v2421_v49 = vadd.f32 %v2402_v25, %v6880_v34  ;;  %v4169_v52 = vld [vmem:[%s7554_s3 + $0x7b0] sm:$0xff]  ;;  %v4143_v51 = vld [vmem:[%s7554_s3 + $0x6e0] sm:$0xff] }
 0x305   :  { %3066 = vmatpush.msra.mxu2 %v4085_v4  ;;  %3086 = vmatpush.msra.mxu3 %v4086_v40  ;;  %v2611_v45 = vadd.f32 %v6951_v14, %v2549_v50  ;;  %v2612_v16 = vadd.f32 %v6953_v42, %v2550_v8  ;;  %v4144_v50 = vld [vmem:[%s7554_s3 + $0x6e8] sm:$0xff] }
 0x306   :  { %2988 = vmatpush.msra.mxu0 %v4059_v30  ;;  %3008 = vmatpush.msra.mxu1 %v4060_v31  ;;  %v2573_v35 = vadd.f32 %v6951_v14, %v2420_v13  ;;  %v2574_v34 = vadd.f32 %v6953_v42, %v2421_v49  ;;  %v4167_v30 = vld [vmem:[%s7554_s3 + $0x7a0] sm:$0xff] }
 0x307   :  { %v2627_v63 = vmax.f32 %v2611_v45, 0.0  ;;  %v2628_v58 = vmax.f32 %v2612_v16, 0.0  ;;  %3067 = vmatpush.msra.mxu2 %v4083_v12  ;;  %3087 = vmatpush.msra.mxu3 %v4084_v10  ;;  %v4141_v12 = vld [vmem:[%s7554_s3 + $0x6d0] sm:$0xff]  ;;  %v4142_v10 = vld [vmem:[%s7554_s3 + $0x6d8] sm:$0xff] }
 0x308   :  { %v2589_v46 = vmax.f32 %v2573_v35, 0.0  ;;  %v2590_v5 = vmax.f32 %v2574_v34, 0.0  ;;  %2989 = vmatpush.msra.mxu0 %v4057_v37  ;;  %3009 = vmatpush.msra.mxu1 %v4058_v20  ;;  %v4165_v45 = vld [vmem:[%s7554_s3 + $0x790] sm:$0xff]  ;;  %v4166_v16 = vld [vmem:[%s7554_s3 + $0x798] sm:$0xff]  ;;  %v4163_v35 = vld [vmem:[%s7554_s3 + $0x780] sm:$0xff] }
 0x309   :  { %3202 = vmatpush.msrb.mxu2 %v4177_v9  ;;  %3222 = vmatpush.msrb.mxu3 %v4178_v54  ;;  %v2638_v39 = vmax.f32 %v2627_v63, %v2628_v58  ;;  %v4137_v37 = vld [vmem:[%s7554_s3 + $0x6b0] sm:$0xff]  ;;  %v4138_v20 = vld [vmem:[%s7554_s3 + $0x6b8] sm:$0xff] }
 0x30a   :  { %v2599_v3 = vmax.f32 %v2589_v46, %v2590_v5  ;;  %v2492_v7 = vpop.f32.mrf.mxu2  ;;  %v2533_v19 = vpop.f32.mrf.mxu3  ;;  %2990 = vmatpush.msra.mxu0 %v4055_v17  ;;  %3010 = vmatpush.msra.mxu1 %v4056_v47  ;;  %v4161_v63 = vld [vmem:[%s7554_s3 + $0x770] sm:$0xff]  ;;  %v4162_v58 = vld [vmem:[%s7554_s3 + $0x778] sm:$0xff]  ;;  %v4136_v46 = vld [vmem:[%s7554_s3 + $0x6a8] sm:$0xff] }
 0x30b   :  { %3203 = vmatpush.msrb.mxu2 %v4175_v15  ;;  %3223 = vmatpush.msrb.mxu3 %v4176_v2  ;;  %v2646_v43 = vmax.f32 %v2598_v33, %v2638_v39  ;;  %v2551_v1 = vadd.f32 %v2492_v7, %v6916_v11  ;;  %v2552_v56 = vadd.f32 %v2533_v19, %v6919_v55  ;;  %v2364_v21 = vpop.f32.mrf.mxu0  ;;  %v2405_v32 = vpop.f32.mrf.mxu1  ;;  %v4052_v11 = vld [vmem:[%s7554_s3 + $0x408] sm:$0xff]  ;;  %v4170_v33 = vld [vmem:[%s7554_s3 + $0x7b8] sm:$0xff]  ;;  %v4135_v2 = vld [vmem:[%s7554_s3 + $0x6a0] sm:$0xff] }
 0x30c   :  { %v2422_v55 = vadd.f32 %v2364_v21, %v6923_v53  ;;  %v2423_v28 = vadd.f32 %v2405_v32, %v6926_v57  ;;  %2991 = vmatpush.msra.mxu0 %v4053_v36  ;;  %3011 = vmatpush.msra.mxu1 %v4054_v26  ;;  %v4146_v53 = vld [vmem:[%s7554_s3 + $0x6f8] sm:$0xff]  ;;  %v4159_v5 = vld [vmem:[%s7554_s3 + $0x760] sm:$0xff]  ;;  %v4160_v17 = vld [vmem:[%s7554_s3 + $0x768] sm:$0xff] }
 0x30d   :  { %3204 = vmatpush.msrb.mxu2 %v4173_v27  ;;  %3224 = vmatpush.msrb.mxu3 %v4174_v48  ;;  %v2613_v6 = vadd.f32 %v6951_v14, %v2551_v1  ;;  %v2614_v44 = vadd.f32 %v6953_v42, %v2552_v56  ;;  %v4133_v39 = vld [vmem:[%s7554_s3 + $0x690] sm:$0xff]  ;;  %v4134_v27 = vld [vmem:[%s7554_s3 + $0x698] sm:$0xff]  ;;  %v4131_v36 = vld [vmem:[%s7554_s3 + $0x680] sm:$0xff] }
 0x30e   :  { %v2575_v22 = vadd.f32 %v6951_v14, %v2422_v55  ;;  %v2576_v41 = vadd.f32 %v6953_v42, %v2423_v28  ;;  %2992 = vmatpush.msra.mxu0 %v4051_v60  ;;  %3012 = vmatpush.msra.mxu1 %v4052_v11  ;;  %v4157_v48 = vld [vmem:[%s7554_s3 + $0x750] sm:$0xff]  ;;  %v4132_v26 = vld [vmem:[%s7554_s3 + $0x688] sm:$0xff]  ;;  %v4155_v7 = vld [vmem:[%s7554_s3 + $0x740] sm:$0xff] }
 0x30f   :  { %3205 = vmatpush.msrb.mxu2 %v4171_v29  ;;  %3225 = vmatpush.msrb.mxu3 %v4172_v61  ;;  %v2629_v57 = vmax.f32 %v2613_v6, 0.0  ;;  %v2630_v59 = vmax.f32 %v2614_v44, 0.0  ;;  %v4156_v19 = vld [vmem:[%s7554_s3 + $0x748] sm:$0xff]  ;;  %v4130_v1 = vld [vmem:[%s7554_s3 + $0x678] sm:$0xff]  ;;  %v4153_v56 = vld [vmem:[%s7554_s3 + $0x730] sm:$0xff] }
 0x310   :  { %v2591_v4 = vmax.f32 %v2575_v22, 0.0  ;;  %v2592_v40 = vmax.f32 %v2576_v41, 0.0  ;;  %2993 = vmatmul.f32.vlgmr.msra.gmra.mxu0 %v7191_v0  ;;  %3013 = vmatmul.f32.vlgmr.msra.gmra.mxu1 %v7191_v0  ;;  %v4168_v0 = vld [vmem:[%s7554_s3 + $0x7a8] sm:$0xff]  ;;  %v4154_v29 = vld [vmem:[%s7554_s3 + $0x738] sm:$0xff]  ;;  %v4127_v61 = vld [vmem:[%s7554_s3 + $0x660] sm:$0xff] }
 0x311   :  { %v2639_v24 = vmax.f32 %v2629_v57, %v2630_v59  ;;  %3127 = vmatpush.msrb.mxu0 %v4145_v62  ;;  %3147 = vmatpush.msrb.mxu1 %v4146_v53  ;;  %v4128_v21 = vld [vmem:[%s7554_s3 + $0x668] sm:$0xff]  ;;  %v4151_v32 = vld [vmem:[%s7554_s3 + $0x720] sm:$0xff]  ;;  %v4125_v11 = vld [vmem:[%s7554_s3 + $0x650] sm:$0xff] }
 0x312   :  { %v2600_v8 = vmax.f32 %v2591_v4, %v2592_v40  ;;  %3206 = vmatpush.msrb.mxu2 %v4169_v52  ;;  %3226 = vmatpush.msrb.mxu3 %v4170_v33  ;;  %v2495_v31 = vpop.f32.mrf.mxu2  ;;  %v2536_v18 = vpop.f32.mrf.mxu3  ;;  %v4152_v60 = vld [vmem:[%s7554_s3 + $0x728] sm:$0xff]  ;;  %v4126_v55 = vld [vmem:[%s7554_s3 + $0x658] sm:$0xff]  ;;  %v4149_v28 = vld [vmem:[%s7554_s3 + $0x710] sm:$0xff] }
 0x313   :  { %v7295_v25 = vmax.f32 %v2599_v3, %v2639_v24  ;;  %3068 = vmatmul.f32.vlgmr.msra.gmra.mxu2 %v2646_v43  ;;  %3088 = vmatmul.f32.vlgmr.msra.gmra.mxu3 %v2646_v43  ;;  %v2553_v13 = vadd.f32 %v2495_v31, %v6956_v23  ;;  %v2554_v49 = vadd.f32 %v2536_v18, %v6959_v38  ;;  %v4139_v23 = vld [vmem:[%s7554_s3 + $0x6c0] sm:$0xff]  ;;  %v4140_v38 = vld [vmem:[%s7554_s3 + $0x6c8] sm:$0xff]  ;;  %v4158_v3 = vld [vmem:[%s7554_s3 + $0x758] sm:$0xff] }
 0x314   :  { %3128 = vmatpush.msrb.mxu0 %v4143_v51  ;;  %3148 = vmatpush.msrb.mxu1 %v4144_v50  ;;  %v4129_v43 = vld [vmem:[%s7554_s3 + $0x670] sm:$0xff]  ;;  %v4150_v6 = vld [vmem:[%s7554_s3 + $0x718] sm:$0xff]  ;;  %v4123_v44 = vld [vmem:[%s7554_s3 + $0x640] sm:$0xff] }
 0x315   :  { %3207 = vmatpush.msrb.mxu2 %v4167_v30  ;;  %3227 = vmatpush.msrb.mxu3 %v4168_v0  ;;  %v2615_v9 = vadd.f32 %v6951_v14, %v2553_v13  ;;  %v2616_v54 = vadd.f32 %v6953_v42, %v2554_v49  ;;  %v4164_v14 = vld [vmem:[%s7554_s3 + $0x788] sm:$0xff]  ;;  %v4147_v41 = vld [vmem:[%s7554_s3 + $0x700] sm:$0xff]  ;;  %v4121_v53 = vld [vmem:[%s7554_s3 + $0x630] sm:$0xff] }
 0x316   :  { %3129 = vmatpush.msrb.mxu0 %v4141_v12  ;;  %3149 = vmatpush.msrb.mxu1 %v4142_v10  ;;  %v4124_v22 = vld [vmem:[%s7554_s3 + $0x648] sm:$0xff]  ;;  %v4122_v57 = vld [vmem:[%s7554_s3 + $0x638] sm:$0xff]  ;;  %v4119_v59 = vld [vmem:[%s7554_s3 + $0x620] sm:$0xff] }
 0x317   :  { %3208 = vmatpush.msrb.mxu2 %v4165_v45  ;;  %3228 = vmatpush.msrb.mxu3 %v4166_v16  ;;  %v2631_v42 = vmax.f32 %v2615_v9, 0.0  ;;  %v2632_v34 = vmax.f32 %v2616_v54, 0.0  ;;  %v4148_v62 = vld [vmem:[%s7554_s3 + $0x708] sm:$0xff]  ;;  %v4117_v33 = vld [vmem:[%s7554_s3 + $0x610] sm:$0xff]  ;;  %v4118_v4 = vld [vmem:[%s7554_s3 + $0x618] sm:$0xff] }
 0x318   :  { %3130 = vmatpush.msrb.mxu0 %v4139_v23  ;;  %3150 = vmatpush.msrb.mxu1 %v4140_v38  ;;  %v4120_v52 = vld [vmem:[%s7554_s3 + $0x628] sm:$0xff]  ;;  %v4115_v40 = vld [vmem:[%s7554_s3 + $0x600] sm:$0xff]  ;;  %v3269_v51 = vld [vmem:[%s7557_s5 + $0x78] sm:$0xff] }
 0x319   :  { %v2640_v15 = vmax.f32 %v2631_v42, %v2632_v34  ;;  %3209 = vmatpush.msrb.mxu2 %v4163_v35  ;;  %3229 = vmatpush.msrb.mxu3 %v4164_v14  ;;  %v4116_v24 = vld [vmem:[%s7554_s3 + $0x608] sm:$0xff]  ;;  %v3285_v50 = vld [vmem:[%s7557_s5 + $0xf8] sm:$0xff]  ;;  %v3284_v30 = vld [vmem:[%s7557_s5 + $0xf0] sm:$0xff] }
 0x31a   :  { %3131 = vmatpush.msrb.mxu0 %v4137_v37  ;;  %3151 = vmatpush.msrb.mxu1 %v4138_v20  ;;  %v3267_v0 = vld [vmem:[%s7557_s5 + $0x68] sm:$0xff]  ;;  %v3266_v18 = vld [vmem:[%s7557_s5 + $0x60] sm:$0xff]  ;;  %v3265_v12 = vld [vmem:[%s7557_s5 + $0x58] sm:$0xff] }
 0x31b   :  { %v2648_v47 = vmax.f32 %v2600_v8, %v2640_v15  ;;  %3210 = vmatpush.msrb.mxu2 %v4161_v63  ;;  %3230 = vmatpush.msrb.mxu3 %v4162_v58  ;;  %v3268_v8 = vld [vmem:[%s7557_s5 + $0x70] sm:$0xff]  ;;  %v3283_v31 = vld [vmem:[%s7557_s5 + $0xe8] sm:$0xff]  ;;  %v3281_v10 = vld [vmem:[%s7557_s5 + $0xd8] sm:$0xff] }
 0x31c   :  { %3132 = vmatpush.msrb.mxu0 %v4135_v2  ;;  %3152 = vmatpush.msrb.mxu1 %v4136_v46  ;;  %v3264_v13 = vld [vmem:[%s7557_s5 + $0x50] sm:$0xff]  ;;  %v3263_v45 = vld [vmem:[%s7557_s5 + $0x48] sm:$0xff]  ;;  %v3262_v9 = vld [vmem:[%s7557_s5 + $0x40] sm:$0xff] }
 0x31d   :  { %3211 = vmatpush.msrb.mxu2 %v4159_v5  ;;  %3231 = vmatpush.msrb.mxu3 %v4160_v17  ;;  %v3280_v49 = vld [vmem:[%s7557_s5 + $0xd0] sm:$0xff]  ;;  %v3279_v16 = vld [vmem:[%s7557_s5 + $0xc8] sm:$0xff]  ;;  %v3278_v54 = vld [vmem:[%s7557_s5 + $0xc0] sm:$0xff] }
 0x31e   :  { %3133 = vmatpush.msrb.mxu0 %v4133_v39  ;;  %3153 = vmatpush.msrb.mxu1 %v4134_v27  ;;  %v3261_v23 = vld [vmem:[%s7557_s5 + $0x38] sm:$0xff]  ;;  %v3260_v35 = vld [vmem:[%s7557_s5 + $0x30] sm:$0xff]  ;;  %v3259_v42 = vld [vmem:[%s7557_s5 + $0x28] sm:$0xff] }
 0x31f   :  { %3212 = vmatpush.msrb.mxu2 %v4157_v48  ;;  %3232 = vmatpush.msrb.mxu3 %v4158_v3  ;;  %v3277_v38 = vld [vmem:[%s7557_s5 + $0xb8] sm:$0xff]  ;;  %v3276_v14 = vld [vmem:[%s7557_s5 + $0xb0] sm:$0xff]  ;;  %v3275_v34 = vld [vmem:[%s7557_s5 + $0xa8] sm:$0xff] }
 0x320   :  { %3134 = vmatpush.msrb.mxu0 %v4131_v36  ;;  %3154 = vmatpush.msrb.mxu1 %v4132_v26  ;;  %v3258_v37 = vld [vmem:[%s7557_s5 + $0x20] sm:$0xff]  ;;  %v3257_v63 = vld [vmem:[%s7557_s5 + $0x18] sm:$0xff]  ;;  %v3256_v15 = vld [vmem:[%s7557_s5 + $0x10] sm:$0xff] }
 0x321   :  { %3213 = vmatpush.msrb.mxu2 %v4155_v7  ;;  %3233 = vmatpush.msrb.mxu3 %v4156_v19  ;;  %v3274_v20 = vld [vmem:[%s7557_s5 + $0xa0] sm:$0xff]  ;;  %v3273_v58 = vld [vmem:[%s7557_s5 + $0x98] sm:$0xff]  ;;  %v3272_v2 = vld [vmem:[%s7557_s5 + $0x90] sm:$0xff] }
 0x322   :  { %3135 = vmatpush.msrb.mxu0 %v4129_v43  ;;  %3155 = vmatpush.msrb.mxu1 %v4130_v1  ;;  %v3255_v46 = vld [vmem:[%s7557_s5 + $0x8] sm:$0xff]  ;;  %v3254_v39 = vld [vmem:[%s7557_s5] sm:$0xff] }
 0x323   :  { %3214 = vmatpush.msrb.mxu2 %v4153_v56  ;;  %3234 = vmatpush.msrb.mxu3 %v4154_v29  ;;  %v3271_v5 = vld [vmem:[%s7557_s5 + $0x88] sm:$0xff]  ;;  %v3270_v27 = vld [vmem:[%s7557_s5 + $0x80] sm:$0xff] }
 0x324   :  { %3136 = vmatpush.msrb.mxu0 %v4127_v61  ;;  %3156 = vmatpush.msrb.mxu1 %v4128_v21 }
 0x325   :  { %3215 = vmatpush.msrb.mxu2 %v4151_v32  ;;  %3235 = vmatpush.msrb.mxu3 %v4152_v60 }
 0x326   :  { %3137 = vmatpush.msrb.mxu0 %v4125_v11  ;;  %3157 = vmatpush.msrb.mxu1 %v4126_v55 }
 0x327   :  { %3216 = vmatpush.msrb.mxu2 %v4149_v28  ;;  %3236 = vmatpush.msrb.mxu3 %v4150_v6 }
 0x328   :  { %3138 = vmatpush.msrb.mxu0 %v4123_v44  ;;  %3158 = vmatpush.msrb.mxu1 %v4124_v22  ;;  %v3244_v44 = vld [vmem:[%s7558_s4] sm:$0x3] }
 0x329   :  { %3217 = vmatpush.msrb.mxu2 %v4147_v41  ;;  %3237 = vmatpush.msrb.mxu3 %v4148_v62 }
 0x32a   :  { %3218 = vmatmul.f32.vlgmr.msrb.gmra.mxu2 %v2648_v47  ;;  %3238 = vmatmul.f32.vlgmr.msrb.gmra.mxu3 %v2648_v47 }
 0x32b   :  { %3139 = vmatpush.msrb.mxu0 %v4121_v53  ;;  %3159 = vmatpush.msrb.mxu1 %v4122_v57 }
 0x32d   :  { %3140 = vmatpush.msrb.mxu0 %v4119_v59  ;;  %3160 = vmatpush.msrb.mxu1 %v4120_v52  ;;  %v3246_v59 = vperm.slane %v3244_v44, 0 }
 0x32f   :  { %3141 = vmatpush.msrb.mxu0 %v4117_v33  ;;  %3161 = vmatpush.msrb.mxu1 %v4118_v4  ;;  %v3247_v33 = vperm.slane %v3244_v44, 1 }
 0x331   :  { %3142 = vmatpush.msrb.mxu0 %v4115_v40  ;;  %3162 = vmatpush.msrb.mxu1 %v4116_v24 }
 0x332   :  { %3143 = vmatmul.f32.vlgmr.msrb.gmra.mxu0 %v7295_v25  ;;  %3163 = vmatmul.f32.vlgmr.msrb.gmra.mxu1 %v7295_v25  ;;  %v3282_v25 = vld [vmem:[%s7557_s5 + $0xe0] sm:$0xff] }
 0x333   :  { %3290 = vmatpush.msra.mxu0 %v3269_v51  ;;  %3310 = vmatpush.msra.mxu1 %v3285_v50 }
 0x335   :  { %3291 = vmatpush.msra.mxu0 %v3268_v8  ;;  %3311 = vmatpush.msra.mxu1 %v3284_v30 }
 0x337   :  { %3292 = vmatpush.msra.mxu0 %v3267_v0  ;;  %3312 = vmatpush.msra.mxu1 %v3283_v31  ;;  %v4179_v31 = vld [vmem:[%s7556_s6] ss:$0 sm:$0xff] }
 0x339   :  { %3293 = vmatpush.msra.mxu0 %v3266_v18  ;;  %3313 = vmatpush.msra.mxu1 %v3282_v25 }
 0x33b   :  { %3294 = vmatpush.msra.mxu0 %v3265_v12  ;;  %3314 = vmatpush.msra.mxu1 %v3281_v10 }
 0x33d   :  { %3295 = vmatpush.msra.mxu0 %v3264_v13  ;;  %3315 = vmatpush.msra.mxu1 %v3280_v49 }
 0x33f   :  { %3296 = vmatpush.msra.mxu0 %v3263_v45  ;;  %3316 = vmatpush.msra.mxu1 %v3279_v16 }
 0x341   :  { %3297 = vmatpush.msra.mxu0 %v3262_v9  ;;  %3317 = vmatpush.msra.mxu1 %v3278_v54 }
 0x343   :  { %3298 = vmatpush.msra.mxu0 %v3261_v23  ;;  %3318 = vmatpush.msra.mxu1 %v3277_v38 }
 0x345   :  { %3299 = vmatpush.msra.mxu0 %v3260_v35  ;;  %3319 = vmatpush.msra.mxu1 %v3276_v14 }
 0x347   :  { %3300 = vmatpush.msra.mxu0 %v3259_v42  ;;  %3320 = vmatpush.msra.mxu1 %v3275_v34 }
 0x349   :  { %3301 = vmatpush.msra.mxu0 %v3258_v37  ;;  %3321 = vmatpush.msra.mxu1 %v3274_v20 }
 0x34b   :  { %3302 = vmatpush.msra.mxu0 %v3257_v63  ;;  %3322 = vmatpush.msra.mxu1 %v3273_v58 }
 0x34d   :  { %3303 = vmatpush.msra.mxu0 %v3256_v15  ;;  %3323 = vmatpush.msra.mxu1 %v3272_v2 }
 0x34f   :  { %3304 = vmatpush.msra.mxu0 %v3255_v46  ;;  %3324 = vmatpush.msra.mxu1 %v3271_v5 }
 0x351   :  { %3305 = vmatpush.msra.mxu0 %v3254_v39  ;;  %3325 = vmatpush.msra.mxu1 %v3270_v27 }
 0x368   :  { %v2771_v48 = vpop.f32.mrf.mxu2  ;;  %v2791_v3 = vpop.f32.mrf.mxu3 }
 0x36a   :  { %v2731_v17 = vpop.f32.mrf.mxu0  ;;  %v2751_v47 = vpop.f32.mrf.mxu1 }
 0x36b   :  { %v2772_v43 = vadd.f32 %v2771_v48, %v2731_v17  ;;  %v2792_v1 = vadd.f32 %v2791_v3, %v2751_v47 }
 0x373   :  { %v2844_v36 = vpop.f32.mrf.mxu0  ;;  %v2864_v26 = vpop.f32.mrf.mxu1 }
 0x374   :  { %v2867_v61 = vadd.f32 %v2844_v36, %v2772_v43  ;;  %v2868_v21 = vadd.f32 %v2864_v26, %v2792_v1 }
 0x382   :  { %v2919_v7 = vpop.f32.mrf.mxu2  ;;  %v2939_v19 = vpop.f32.mrf.mxu3 }
 0x383   :  { %v2942_v11 = vadd.f32 %v2919_v7, %v2867_v61  ;;  %v2943_v55 = vadd.f32 %v2939_v19, %v2868_v21 }
 0x38d   :  { %v2994_v56 = vpop.f32.mrf.mxu0  ;;  %v3014_v29 = vpop.f32.mrf.mxu1 }
 0x38e   :  { %v3017_v28 = vadd.f32 %v2994_v56, %v2942_v11  ;;  %v3018_v6 = vadd.f32 %v3014_v29, %v2943_v55 }
 0x396   :  { %v3069_v32 = vpop.f32.mrf.mxu2  ;;  %v3089_v60 = vpop.f32.mrf.mxu3 }
 0x397   :  { %v3092_v22 = vadd.f32 %v3069_v32, %v3017_v28  ;;  %v3093_v41 = vadd.f32 %v3089_v60, %v3018_v6 }
 0x3ad   :  { %v3219_v4 = vpop.f32.mrf.mxu2  ;;  %v3239_v40 = vpop.f32.mrf.mxu3 }
 0x3af   :  { %v3144_v62 = vpop.f32.mrf.mxu0  ;;  %v3164_v53 = vpop.f32.mrf.mxu1 }
 0x3b0   :  { %v3167_v57 = vadd.f32 %v3144_v62, %v3092_v22  ;;  %v3168_v52 = vadd.f32 %v3164_v53, %v3093_v41 }
 0x3b2   :  { %v3242_v24 = vadd.f32 %v3219_v4, %v3167_v57  ;;  %v3243_v51 = vadd.f32 %v3239_v40, %v3168_v52 }
 0x3b4   :  { %v3250_v50 = vadd.f32 %v3246_v59, %v3242_v24  ;;  %v3251_v8 = vadd.f32 %v3247_v33, %v3243_v51 }
 0x3b6   :  { %v3252_v30 = vmax.f32 %v3250_v50, 0.0  ;;  %v3253_v0 = vmax.f32 %v3251_v8, 0.0 }
 0x3b8   :  { %3306 = vmatmul.f32.vlgmr.msra.gmra.mxu0 %v3252_v30  ;;  %3326 = vmatmul.f32.vlgmr.msra.gmra.mxu1 %v3253_v0 }
 0x435   :  { %v3307_v18 = vpop.f32.mrf.mxu0  ;;  %v3327_v12 = vpop.f32.mrf.mxu1 }
 0x436   :  { %v3308_v25 = vadd.f32 %v4179_v31, %v3307_v18 }
 0x438   :  { %v3328_v10 = vadd.f32 %v3327_v12, %v3308_v25 }
 0x43a   :  { %3330 = vst [vmem:[%s7559_s7] sm:$0xff] %v3328_v10 }

</bundles_post_ra>
